<compile_context>
chip_gen: v7x
topology: tpu7x:2x2x1
jax: 0.10.0
libtpu: 0.0.40
codegen_flags: <defaults>
</compile_context>

<pallas_src>
import functools
import math

import jax
import jax.numpy as jnp
from jax.experimental import pallas as pl
from jax.experimental.pallas import tpu as pltpu


def _attention_layer_kernel(x_ref,
                            wqkv_ref, bqkv_ref,
                            wo_ref, bo_ref,
                            g1_ref, be1_ref,
                            w1_ref, bf1_ref, w2_ref, bf2_ref,
                            g2_ref, be2_ref,
                            o_ref,
                            *, num_heads, mxu_dtype):
    B, L, E = x_ref.shape            # one grid step == B batch elements
    H = num_heads
    hd = E // H
    M = B * L

    # Flatten the batch tile into the matmul M dimension (fills the MXU rows).
    x = x_ref[...].astype(jnp.float32).reshape(M, E)

    def mm(a, w_ref, b_ref):
        # Weights are pre-cast to mxu_dtype in the wrapper; only activations cast here.
        return (jnp.dot(a.astype(mxu_dtype), w_ref[...],
                        preferred_element_type=jnp.float32) + b_ref[0])

    # --- fused QKV in-projection (softmax scale pre-folded into the Q columns) ---
    qkv = mm(x, wqkv_ref, bqkv_ref)                          # (M, 3E) f32
    qkv3 = qkv.reshape(B, L, 3 * E)

    # --- head regroup: one static-slice concat (single relayout) ---
    # Column block j of the fused output is (tensor j//H, head j%H); move it to the
    # leading batch axis so attention is a single-batch-dim einsum over H*B.
    heads = jnp.concatenate(
        [qkv3[:, :, j * hd:(j + 1) * hd] for j in range(3 * H)], axis=0)  # (3*H*B, L, hd)
    HB = H * B
    qh = heads[:HB]                                           # index = h*B + b
    kh = heads[HB:2 * HB]
    vh = heads[2 * HB:]

    # --- batched multi-head attention (scores already scaled via weight pre-scale) ---
    s = jnp.einsum('bqd,bkd->bqk', qh.astype(mxu_dtype), kh.astype(mxu_dtype),
                   preferred_element_type=jnp.float32)        # (H*B, L, L)
    s = s - jnp.max(s, axis=-1, keepdims=True)
    p = jnp.exp(s)
    # EUP approximate reciprocal instead of a VALU divide.
    p = p * pl.reciprocal(jnp.sum(p, axis=-1, keepdims=True), approx=True)
    ctx = jnp.einsum('bqk,bkd->bqd', p.astype(mxu_dtype), vh.astype(mxu_dtype),
                     preferred_element_type=jnp.float32)      # (H*B, L, hd)

    # Merge heads: cheap leading-axis slices + one lane concat, then flatten to rows.
    attn = jnp.concatenate([ctx[h * B:(h + 1) * B] for h in range(H)], axis=-1)  # (B, L, E)
    attn = attn.reshape(M, E)

    # --- output projection ---
    attn = mm(attn, wo_ref, bo_ref)

    # --- residual + LayerNorm1 (dropout1 == identity in eval mode) ---
    y1 = x + attn
    mu1 = jnp.mean(y1, axis=-1, keepdims=True)
    var1 = jnp.mean(jnp.square(y1 - mu1), axis=-1, keepdims=True)
    out1 = (y1 - mu1) * jax.lax.rsqrt(var1 + 1e-6) * g1_ref[0] + be1_ref[0]

    # --- feed-forward: Linear -> ReLU -> (Dropout=id) -> Linear ---
    h1 = jnp.maximum(mm(out1, w1_ref, bf1_ref), 0.0)
    ff = mm(h1, w2_ref, bf2_ref)

    # --- residual + LayerNorm2 (dropout2 == identity in eval mode) ---
    y2 = out1 + ff
    mu2 = jnp.mean(y2, axis=-1, keepdims=True)
    var2 = jnp.mean(jnp.square(y2 - mu2), axis=-1, keepdims=True)
    out2 = (y2 - mu2) * jax.lax.rsqrt(var2 + 1e-6) * g2_ref[0] + be2_ref[0]

    # Single lane-dense slab store for the whole tile.
    o_ref[...] = out2.reshape(B, L, E).astype(o_ref.dtype)


def _weight_spec(shape, single_buffer):
    """Whole-array weight block, constant across the batch grid."""
    index_map = (lambda nd: (lambda i: (0,) * nd))(len(shape))
    if single_buffer:
        # Constant block index -> single buffer. Explicit opt-in (no silent fallback);
        # enable once pl.Buffered(1) is verified on the target JAX version.
        return pl.BlockSpec(shape, index_map, pipeline_mode=pl.Buffered(1))
    return pl.BlockSpec(shape, index_map)


def _min_grid_steps():
    """>=2 'parallel' steps only on dual-TensorCore parts (v7x); 1 big step otherwise."""
    try:
        kind = jax.devices()[0].device_kind.lower()
    except Exception:
        return 1
    return 2 if ("v7" in kind or "7x" in kind) else 1


def _footprint_bytes(batch_tile, L, E, hidden, H, weight_bytes):
    """Rough per-step VMEM footprint: pipelined blocks + f32 intermediates + weights."""
    M = batch_tile * L
    hd = E // H
    f32 = 4
    blocks = 2 * 2 * batch_tile * L * E * f32               # in + out block, double-buffered
    acts = (M * 3 * E                                        # fused qkv
            + 3 * H * batch_tile * L * hd                    # head regroup copy
            + 2 * H * batch_tile * L * L                     # scores + probs
            + H * batch_tile * L * hd                        # ctx
            + 4 * M * E                                      # attn / out1 / residual temps
            + M * hidden) * f32                              # ffn hidden
    return blocks + acts + 2 * weight_bytes


def _choose_batch_tile(N, L, E, hidden, H, weight_bytes, budget_bytes, min_steps):
    """Largest divisor of N that fits the VMEM budget and leaves >= min_steps grid steps."""
    best = 1
    for d in range(1, N + 1):
        if N % d != 0 or N // d < min_steps:
            continue
        if _footprint_bytes(d, L, E, hidden, H, weight_bytes) <= budget_bytes:
            best = d            # scanned in increasing order -> largest valid divisor wins
    return best


_VMEM_TILE_BUDGET = 24 << 20     # conservative: fits v7x's 64 MiB/TC with headroom


def attention_layer_forward(x_lne, params, *, num_heads, batch_tile=None,
                            use_bf16_matmul=True, single_buffer_weights=False):
    """x_lne: (L, N, E) — PyTorch MultiheadAttention default layout."""
    L, N, E = x_lne.shape
    hd = E // num_heads
    hidden = params["w1_t"].shape[1]
    x = jnp.transpose(x_lne, (1, 0, 2))                      # (N, L, E) for the kernel

    # MXU operand dtype; accumulation, softmax, residuals and LayerNorms stay f32.
    wdt = jnp.bfloat16 if use_bf16_matmul else jnp.float32

    # Fused QKV weight/bias with the softmax scale folded into the Q columns.
    scale = 1.0 / math.sqrt(hd)
    wqkv = jnp.concatenate(
        [params["wq_t"] * scale, params["wk_t"], params["wv_t"]], axis=1).astype(wdt)
    bqkv = jnp.concatenate(
        [params["bq"] * scale, params["bk"], params["bv"]], axis=1)        # stays f32

    weight_args = (
        wqkv, bqkv,
        params["wo_t"].astype(wdt), params["bo"],
        params["g1"], params["be1"],
        params["w1_t"].astype(wdt), params["bf1"],
        params["w2_t"].astype(wdt), params["bf2"],
        params["g2"], params["be2"],
    )
    weight_bytes = sum(int(a.size) * a.dtype.itemsize for a in weight_args)

    if batch_tile is None:
        batch_tile = _choose_batch_tile(N, L, E, hidden, num_heads, weight_bytes,
                                        _VMEM_TILE_BUDGET, _min_grid_steps())
    assert N % batch_tile == 0, (N, batch_tile)
    grid = (N // batch_tile,)

    footprint = _footprint_bytes(batch_tile, L, E, hidden, num_heads, weight_bytes)
    vmem_limit = int(min(max(2 * footprint, 32 << 20), 64 << 20))

    out = pl.pallas_call(
        functools.partial(_attention_layer_kernel,
                          num_heads=num_heads, mxu_dtype=wdt),
        out_shape=jax.ShapeDtypeStruct((N, L, E), x.dtype),
        grid_spec=pltpu.PrefetchScalarGridSpec(
            num_scalar_prefetch=0,
            grid=grid,
            in_specs=[pl.BlockSpec((batch_tile, L, E), lambda i: (i, 0, 0))]
                    + [_weight_spec(a.shape, single_buffer_weights) for a in weight_args],
            out_specs=pl.BlockSpec((batch_tile, L, E), lambda i: (i, 0, 0)),
        ),
        compiler_params=pltpu.CompilerParams(
            dimension_semantics=("parallel",),
            vmem_limit_bytes=vmem_limit),
    )(x, *weight_args)

    return jnp.transpose(out, (1, 0, 2))                     # back to (L, N, E)


def _reference_forward(x_lne, params, *, num_heads):
    """Pure-JAX (XLA) f32 reference with identical eval-mode semantics."""
    L, N, E = x_lne.shape
    hd = E // num_heads
    x = jnp.transpose(x_lne, (1, 0, 2)).astype(jnp.float32)          # (N, L, E)
    q = x @ params["wq_t"] + params["bq"][0]
    k = x @ params["wk_t"] + params["bk"][0]
    v = x @ params["wv_t"] + params["bv"][0]

    def heads(t):
        return t.reshape(N, L, num_heads, hd).transpose(0, 2, 1, 3)  # (N,H,L,hd)

    s = jnp.einsum('nhqd,nhkd->nhqk', heads(q), heads(k)) / math.sqrt(hd)
    p = jax.nn.softmax(s, axis=-1)
    ctx = jnp.einsum('nhqk,nhkd->nhqd', p, heads(v))
    attn = ctx.transpose(0, 2, 1, 3).reshape(N, L, E)
    attn = attn @ params["wo_t"] + params["bo"][0]

    def ln(y, g, b):
        mu = y.mean(-1, keepdims=True)
        var = ((y - mu) ** 2).mean(-1, keepdims=True)
        return (y - mu) * jax.lax.rsqrt(var + 1e-6) * g[0] + b[0]

    out1 = ln(x + attn, params["g1"], params["be1"])
    h1 = jnp.maximum(out1 @ params["w1_t"] + params["bf1"][0], 0.0)
    ff = h1 @ params["w2_t"] + params["bf2"][0]
    out2 = ln(out1 + ff, params["g2"], params["be2"])
    return jnp.transpose(out2, (1, 0, 2))


def init_params(key, d_model, num_heads, hidden_dim):
    """Deterministic synthetic parameters with PyTorch-equivalent shapes.

    nn.MultiheadAttention: in_proj_weight (3E, E), in_proj_bias (3E,),
                           out_proj Linear(E, E).
    feed_forward: Linear(E, F), Linear(F, E).  LayerNorms: weight/bias (E,).
    Linear weights are stored pre-transposed (in_dim, out_dim) so the kernel
    computes x @ W_t + b.  Biases/LN params are stored as (1, dim) 2-D arrays.
    """
    ks = jax.random.split(key, 8)
    E, F = d_model, hidden_dim
    s_e = 1.0 / math.sqrt(E)
    s_f = 1.0 / math.sqrt(F)
    f32 = jnp.float32

    in_proj_w = jax.random.uniform(ks[0], (3 * E, E), f32, -s_e, s_e)
    in_proj_b = jax.random.uniform(ks[1], (3 * E,), f32, -s_e, s_e)
    wq, wk, wv = in_proj_w[:E], in_proj_w[E:2 * E], in_proj_w[2 * E:]
    bq, bk, bv = in_proj_b[:E], in_proj_b[E:2 * E], in_proj_b[2 * E:]

    wo = jax.random.uniform(ks[2], (E, E), f32, -s_e, s_e)
    bo = jax.random.uniform(ks[3], (E,), f32, -s_e, s_e)

    w1 = jax.random.uniform(ks[4], (F, E), f32, -s_e, s_e)   # Linear(E, F).weight
    bf1 = jax.random.uniform(ks[5], (F,), f32, -s_e, s_e)
    w2 = jax.random.uniform(ks[6], (E, F), f32, -s_f, s_f)   # Linear(F, E).weight
    bf2 = jax.random.uniform(ks[7], (E,), f32, -s_f, s_f)

    return {
        "wq_t": wq.T, "wk_t": wk.T, "wv_t": wv.T,
        "bq": bq[None, :], "bk": bk[None, :], "bv": bv[None, :],
        "wo_t": wo.T, "bo": bo[None, :],
        "g1": jnp.ones((1, E), f32), "be1": jnp.zeros((1, E), f32),
        "w1_t": w1.T, "bf1": bf1[None, :],
        "w2_t": w2.T, "bf2": bf2[None, :],
        "g2": jnp.ones((1, E), f32), "be2": jnp.zeros((1, E), f32),
    }


if __name__ == "__main__":
    # Small shapes consistent with the module (scaled-down d_model=512/heads=8/hidden=2048),
    # chosen lane-dense: E and hidden are multiples of 128, M = batch_tile*L >= 128.
    d_model, num_heads, hidden_dim = 128, 4, 256
    seq_len, batch = 8, 16

    key = jax.random.PRNGKey(0)
    kx, kp = jax.random.split(key)
    x = jax.random.normal(kx, (seq_len, batch, d_model), jnp.float32)  # (L, N, E)
    params = init_params(kp, d_model, num_heads, hidden_dim)

    ref = _reference_forward(x, params, num_heads=num_heads)

    # f32 MXU path: tight parity with the PyTorch/XLA reference.
    out_f32 = attention_layer_forward(x, params, num_heads=num_heads,
                                      use_bf16_matmul=False)
    out_f32 = jax.block_until_ready(out_f32)
    assert out_f32.shape == (seq_len, batch, d_model)
    assert bool(jnp.all(jnp.isfinite(out_f32)))
    err_f32 = float(jnp.max(jnp.abs(out_f32 - ref)))
    assert jnp.allclose(out_f32, ref, rtol=1e-2, atol=1e-2), err_f32

    # bf16 MXU path (default): bf16 operands, f32 accumulation -> looser tolerance.
    out_bf16 = attention_layer_forward(x, params, num_heads=num_heads)
    out_bf16 = jax.block_until_ready(out_bf16)
    assert bool(jnp.all(jnp.isfinite(out_bf16)))
    err_bf16 = float(jnp.max(jnp.abs(out_bf16 - ref)))
    assert jnp.allclose(out_bf16, ref, rtol=5e-2, atol=5e-2), err_bf16

    print("KERNEL_OK")
</pallas_src>

<mosaic_0001>
module attributes {stable_mosaic.version = 11 : i64} {
  func.func @_attention_layer_kernel(%arg0: i32, %arg1: memref<16x8x128xf32, #tpu.memory_space<vmem>>, %arg2: memref<128x384xf32, #tpu.memory_space<vmem>>, %arg3: memref<1x384xf32, #tpu.memory_space<vmem>>, %arg4: memref<128x128xf32, #tpu.memory_space<vmem>>, %arg5: memref<1x128xf32, #tpu.memory_space<vmem>>, %arg6: memref<1x128xf32, #tpu.memory_space<vmem>>, %arg7: memref<1x128xf32, #tpu.memory_space<vmem>>, %arg8: memref<128x256xf32, #tpu.memory_space<vmem>>, %arg9: memref<1x256xf32, #tpu.memory_space<vmem>>, %arg10: memref<256x128xf32, #tpu.memory_space<vmem>>, %arg11: memref<1x128xf32, #tpu.memory_space<vmem>>, %arg12: memref<1x128xf32, #tpu.memory_space<vmem>>, %arg13: memref<1x128xf32, #tpu.memory_space<vmem>>, %arg14: memref<16x8x128xf32, #tpu.memory_space<vmem>>) attributes {dimension_semantics = [#tpu.dimension_semantics<parallel>], iteration_bounds = array<i64: 1>, scalar_prefetch = 0 : i64, scratch_operands = 0 : i64, tpu.core_type = #tpu.core_type<tc>, window_params = [{transform_indices = @transform_0, window_bounds = array<i64: 16, 8, 128>}, {pipeline_mode = #tpu.pipeline_mode<synchronous>, transform_indices = @transform_1, window_bounds = array<i64: 128, 384>}, {pipeline_mode = #tpu.pipeline_mode<synchronous>, transform_indices = @transform_2, window_bounds = array<i64: 1, 384>}, {pipeline_mode = #tpu.pipeline_mode<synchronous>, transform_indices = @transform_3, window_bounds = array<i64: 128, 128>}, {pipeline_mode = #tpu.pipeline_mode<synchronous>, transform_indices = @transform_4, window_bounds = array<i64: 1, 128>}, {pipeline_mode = #tpu.pipeline_mode<synchronous>, transform_indices = @transform_5, window_bounds = array<i64: 1, 128>}, {pipeline_mode = #tpu.pipeline_mode<synchronous>, transform_indices = @transform_6, window_bounds = array<i64: 1, 128>}, {pipeline_mode = #tpu.pipeline_mode<synchronous>, transform_indices = @transform_7, window_bounds = array<i64: 128, 256>}, {pipeline_mode = #tpu.pipeline_mode<synchronous>, transform_indices = @transform_8, window_bounds = array<i64: 1, 256>}, {pipeline_mode = #tpu.pipeline_mode<synchronous>, transform_indices = @transform_9, window_bounds = array<i64: 256, 128>}, {pipeline_mode = #tpu.pipeline_mode<synchronous>, transform_indices = @transform_10, window_bounds = array<i64: 1, 128>}, {pipeline_mode = #tpu.pipeline_mode<synchronous>, transform_indices = @transform_11, window_bounds = array<i64: 1, 128>}, {pipeline_mode = #tpu.pipeline_mode<synchronous>, transform_indices = @transform_12, window_bounds = array<i64: 1, 128>}, {transform_indices = @transform_13, window_bounds = array<i64: 16, 8, 128>}]} {
    %c0 = arith.constant 0 : index
    %c0_0 = arith.constant 0 : index
    %c0_1 = arith.constant 0 : index
    %0 = vector.load %arg1[%c0, %c0_0, %c0_1] : memref<16x8x128xf32, #tpu.memory_space<vmem>>, vector<16x8x128xf32>
    %1 = vector.shape_cast %0 : vector<16x8x128xf32> to vector<128x128xf32>
    %c0_2 = arith.constant 0 : index
    %c0_3 = arith.constant 0 : index
    %2 = vector.load %arg2[%c0_2, %c0_3] : memref<128x384xf32, #tpu.memory_space<vmem>>, vector<128x384xf32>
    %cst = arith.constant dense<0.000000e+00> : vector<128x384xf32>
    %3 = tpu.matmul %1, %2, %cst {dimension_numbers = #tpu.dot_dimension_numbers<[1], [0], [0], [1], [0, 0, 1, 1], [], []>} : vector<128x128xf32>, vector<128x384xf32>, vector<128x384xf32> -> vector<128x384xf32>
    %c0_4 = arith.constant 0 : index
    %c0_5 = arith.constant 0 : index
    %4 = vector.load %arg3[%c0_4, %c0_5] : memref<1x384xf32, #tpu.memory_space<vmem>>, vector<1x384xf32>
    %5 = vector.shape_cast %4 : vector<1x384xf32> to vector<384xf32>
    %6 = vector.shape_cast %5 : vector<384xf32> to vector<1x384xf32>
    %7 = vector.broadcast %6 : vector<1x384xf32> to vector<128x384xf32>
    %8 = arith.addf %3, %7 : vector<128x384xf32>
    %9 = vector.shape_cast %8 : vector<128x384xf32> to vector<16x8x384xf32>
    %10 = vector.extract_strided_slice %9 {offsets = [0, 0, 0], sizes = [16, 8, 32], strides = [1, 1, 1]} : vector<16x8x384xf32> to vector<16x8x32xf32>
    %11 = vector.extract_strided_slice %9 {offsets = [0, 0, 32], sizes = [16, 8, 32], strides = [1, 1, 1]} : vector<16x8x384xf32> to vector<16x8x32xf32>
    %12 = vector.extract_strided_slice %9 {offsets = [0, 0, 64], sizes = [16, 8, 32], strides = [1, 1, 1]} : vector<16x8x384xf32> to vector<16x8x32xf32>
    %13 = vector.extract_strided_slice %9 {offsets = [0, 0, 96], sizes = [16, 8, 32], strides = [1, 1, 1]} : vector<16x8x384xf32> to vector<16x8x32xf32>
    %14 = vector.extract_strided_slice %9 {offsets = [0, 0, 128], sizes = [16, 8, 32], strides = [1, 1, 1]} : vector<16x8x384xf32> to vector<16x8x32xf32>
    %15 = vector.extract_strided_slice %9 {offsets = [0, 0, 160], sizes = [16, 8, 32], strides = [1, 1, 1]} : vector<16x8x384xf32> to vector<16x8x32xf32>
    %16 = vector.extract_strided_slice %9 {offsets = [0, 0, 192], sizes = [16, 8, 32], strides = [1, 1, 1]} : vector<16x8x384xf32> to vector<16x8x32xf32>
    %17 = vector.extract_strided_slice %9 {offsets = [0, 0, 224], sizes = [16, 8, 32], strides = [1, 1, 1]} : vector<16x8x384xf32> to vector<16x8x32xf32>
    %18 = vector.extract_strided_slice %9 {offsets = [0, 0, 256], sizes = [16, 8, 32], strides = [1, 1, 1]} : vector<16x8x384xf32> to vector<16x8x32xf32>
    %19 = vector.extract_strided_slice %9 {offsets = [0, 0, 288], sizes = [16, 8, 32], strides = [1, 1, 1]} : vector<16x8x384xf32> to vector<16x8x32xf32>
    %20 = vector.extract_strided_slice %9 {offsets = [0, 0, 320], sizes = [16, 8, 32], strides = [1, 1, 1]} : vector<16x8x384xf32> to vector<16x8x32xf32>
    %21 = vector.extract_strided_slice %9 {offsets = [0, 0, 352], sizes = [16, 8, 32], strides = [1, 1, 1]} : vector<16x8x384xf32> to vector<16x8x32xf32>
    %22 = tpu.concatenate %10, %11, %12, %13, %14, %15, %16, %17, %18, %19, %20, %21 in 0 : vector<16x8x32xf32>, vector<16x8x32xf32>, vector<16x8x32xf32>, vector<16x8x32xf32>, vector<16x8x32xf32>, vector<16x8x32xf32>, vector<16x8x32xf32>, vector<16x8x32xf32>, vector<16x8x32xf32>, vector<16x8x32xf32>, vector<16x8x32xf32>, vector<16x8x32xf32> -> vector<192x8x32xf32>
    %23 = vector.extract_strided_slice %22 {offsets = [0, 0, 0], sizes = [64, 8, 32], strides = [1, 1, 1]} : vector<192x8x32xf32> to vector<64x8x32xf32>
    %24 = vector.extract_strided_slice %22 {offsets = [64, 0, 0], sizes = [64, 8, 32], strides = [1, 1, 1]} : vector<192x8x32xf32> to vector<64x8x32xf32>
    %25 = vector.extract_strided_slice %22 {offsets = [128, 0, 0], sizes = [64, 8, 32], strides = [1, 1, 1]} : vector<192x8x32xf32> to vector<64x8x32xf32>
    "tpu.trace_start"() <{level = 10 : i32, message = "bqd,bkd->bqk"}> : () -> ()
    %cst_6 = arith.constant dense<0.000000e+00> : vector<64x8x8xf32>
    %26 = tpu.matmul %23, %24, %cst_6 {dimension_numbers = #tpu.dot_dimension_numbers<[2], [2], [1], [1], [0, 0, 0, 1, 1, 1], [0], [0]>} : vector<64x8x32xf32>, vector<64x8x32xf32>, vector<64x8x8xf32> -> vector<64x8x8xf32>
    "tpu.trace_stop"() : () -> ()
    %cst_7 = arith.constant dense<0xFF800000> : vector<64x8xf32>
    %27 = vector.multi_reduction <maximumf>, %26, %cst_7 [2] : vector<64x8x8xf32> to vector<64x8xf32>
    %28 = vector.shape_cast %27 : vector<64x8xf32> to vector<64x8x1xf32>
    %29 = vector.broadcast %28 : vector<64x8x1xf32> to vector<64x8x8xf32>
    %30 = arith.subf %26, %29 : vector<64x8x8xf32>
    %31 = math.exp %30 : vector<64x8x8xf32>
    %cst_8 = arith.constant dense<0.000000e+00> : vector<64x8xf32>
    %32 = vector.multi_reduction <add>, %31, %cst_8 [2] : vector<64x8x8xf32> to vector<64x8xf32>
    %33 = vector.shape_cast %32 : vector<64x8xf32> to vector<64x8x1xf32>
    %34 = tpu.reciprocal %33 {approx = true} : vector<64x8x1xf32> -> vector<64x8x1xf32>
    %35 = vector.broadcast %34 : vector<64x8x1xf32> to vector<64x8x8xf32>
    %36 = arith.mulf %31, %35 : vector<64x8x8xf32>
    "tpu.trace_start"() <{level = 10 : i32, message = "bqk,bkd->bqd"}> : () -> ()
    %cst_9 = arith.constant dense<0.000000e+00> : vector<64x8x32xf32>
    %37 = tpu.matmul %36, %25, %cst_9 {dimension_numbers = #tpu.dot_dimension_numbers<[2], [1], [1], [2], [0, 0, 0, 1, 1, 2], [0], [0]>} : vector<64x8x8xf32>, vector<64x8x32xf32>, vector<64x8x32xf32> -> vector<64x8x32xf32>
    "tpu.trace_stop"() : () -> ()
    %38 = vector.extract_strided_slice %37 {offsets = [0, 0, 0], sizes = [16, 8, 32], strides = [1, 1, 1]} : vector<64x8x32xf32> to vector<16x8x32xf32>
    %39 = vector.extract_strided_slice %37 {offsets = [16, 0, 0], sizes = [16, 8, 32], strides = [1, 1, 1]} : vector<64x8x32xf32> to vector<16x8x32xf32>
    %40 = vector.extract_strided_slice %37 {offsets = [32, 0, 0], sizes = [16, 8, 32], strides = [1, 1, 1]} : vector<64x8x32xf32> to vector<16x8x32xf32>
    %41 = vector.extract_strided_slice %37 {offsets = [48, 0, 0], sizes = [16, 8, 32], strides = [1, 1, 1]} : vector<64x8x32xf32> to vector<16x8x32xf32>
    %42 = tpu.concatenate %38, %39, %40, %41 in 2 : vector<16x8x32xf32>, vector<16x8x32xf32>, vector<16x8x32xf32>, vector<16x8x32xf32> -> vector<16x8x128xf32>
    %43 = vector.shape_cast %42 : vector<16x8x128xf32> to vector<128x128xf32>
    %c0_10 = arith.constant 0 : index
    %c0_11 = arith.constant 0 : index
    %44 = vector.load %arg4[%c0_10, %c0_11] : memref<128x128xf32, #tpu.memory_space<vmem>>, vector<128x128xf32>
    %cst_12 = arith.constant dense<0.000000e+00> : vector<128x128xf32>
    %45 = tpu.matmul %43, %44, %cst_12 {dimension_numbers = #tpu.dot_dimension_numbers<[1], [0], [0], [1], [0, 0, 1, 1], [], []>} : vector<128x128xf32>, vector<128x128xf32>, vector<128x128xf32> -> vector<128x128xf32>
    %c0_13 = arith.constant 0 : index
    %c0_14 = arith.constant 0 : index
    %46 = vector.load %arg5[%c0_13, %c0_14] : memref<1x128xf32, #tpu.memory_space<vmem>>, vector<1x128xf32>
    %47 = vector.shape_cast %46 : vector<1x128xf32> to vector<128xf32>
    %48 = vector.shape_cast %47 : vector<128xf32> to vector<1x128xf32>
    %49 = vector.broadcast %48 : vector<1x128xf32> to vector<128x128xf32>
    %50 = arith.addf %45, %49 : vector<128x128xf32>
    %51 = arith.addf %1, %50 : vector<128x128xf32>
    %cst_15 = arith.constant dense<0.000000e+00> : vector<128xf32>
    %52 = vector.multi_reduction <add>, %51, %cst_15 [1] : vector<128x128xf32> to vector<128xf32>
    %53 = vector.shape_cast %52 : vector<128xf32> to vector<128x1xf32>
    %cst_16 = arith.constant 1.280000e+02 : f32
    %54 = vector.broadcast %cst_16 : f32 to vector<128x1xf32>
    %55 = arith.divf %53, %54 : vector<128x1xf32>
    %56 = vector.broadcast %55 : vector<128x1xf32> to vector<128x128xf32>
    %57 = arith.subf %51, %56 : vector<128x128xf32>
    %58 = arith.mulf %57, %57 : vector<128x128xf32>
    %cst_17 = arith.constant dense<0.000000e+00> : vector<128xf32>
    %59 = vector.multi_reduction <add>, %58, %cst_17 [1] : vector<128x128xf32> to vector<128xf32>
    %60 = vector.shape_cast %59 : vector<128xf32> to vector<128x1xf32>
    %cst_18 = arith.constant 1.280000e+02 : f32
    %61 = vector.broadcast %cst_18 : f32 to vector<128x1xf32>
    %62 = arith.divf %60, %61 : vector<128x1xf32>
    %63 = vector.broadcast %55 : vector<128x1xf32> to vector<128x128xf32>
    %64 = arith.subf %51, %63 : vector<128x128xf32>
    %cst_19 = arith.constant 9.99999997E-7 : f32
    %65 = vector.broadcast %cst_19 : f32 to vector<128x1xf32>
    %66 = arith.addf %62, %65 : vector<128x1xf32>
    %67 = math.rsqrt %66 : vector<128x1xf32>
    %68 = vector.broadcast %67 : vector<128x1xf32> to vector<128x128xf32>
    %69 = arith.mulf %64, %68 : vector<128x128xf32>
    %c0_20 = arith.constant 0 : index
    %c0_21 = arith.constant 0 : index
    %70 = vector.load %arg6[%c0_20, %c0_21] : memref<1x128xf32, #tpu.memory_space<vmem>>, vector<1x128xf32>
    %71 = vector.shape_cast %70 : vector<1x128xf32> to vector<128xf32>
    %72 = vector.shape_cast %71 : vector<128xf32> to vector<1x128xf32>
    %73 = vector.broadcast %72 : vector<1x128xf32> to vector<128x128xf32>
    %74 = arith.mulf %69, %73 : vector<128x128xf32>
    %c0_22 = arith.constant 0 : index
    %c0_23 = arith.constant 0 : index
    %75 = vector.load %arg7[%c0_22, %c0_23] : memref<1x128xf32, #tpu.memory_space<vmem>>, vector<1x128xf32>
    %76 = vector.shape_cast %75 : vector<1x128xf32> to vector<128xf32>
    %77 = vector.shape_cast %76 : vector<128xf32> to vector<1x128xf32>
    %78 = vector.broadcast %77 : vector<1x128xf32> to vector<128x128xf32>
    %79 = arith.addf %74, %78 : vector<128x128xf32>
    %c0_24 = arith.constant 0 : index
    %c0_25 = arith.constant 0 : index
    %80 = vector.load %arg8[%c0_24, %c0_25] : memref<128x256xf32, #tpu.memory_space<vmem>>, vector<128x256xf32>
    %cst_26 = arith.constant dense<0.000000e+00> : vector<128x256xf32>
    %81 = tpu.matmul %79, %80, %cst_26 {dimension_numbers = #tpu.dot_dimension_numbers<[1], [0], [0], [1], [0, 0, 1, 1], [], []>} : vector<128x128xf32>, vector<128x256xf32>, vector<128x256xf32> -> vector<128x256xf32>
    %c0_27 = arith.constant 0 : index
    %c0_28 = arith.constant 0 : index
    %82 = vector.load %arg9[%c0_27, %c0_28] : memref<1x256xf32, #tpu.memory_space<vmem>>, vector<1x256xf32>
    %83 = vector.shape_cast %82 : vector<1x256xf32> to vector<256xf32>
    %84 = vector.shape_cast %83 : vector<256xf32> to vector<1x256xf32>
    %85 = vector.broadcast %84 : vector<1x256xf32> to vector<128x256xf32>
    %86 = arith.addf %81, %85 : vector<128x256xf32>
    %cst_29 = arith.constant 0.000000e+00 : f32
    %87 = vector.broadcast %cst_29 : f32 to vector<128x256xf32>
    %88 = arith.maximumf %86, %87 : vector<128x256xf32>
    %c0_30 = arith.constant 0 : index
    %c0_31 = arith.constant 0 : index
    %89 = vector.load %arg10[%c0_30, %c0_31] : memref<256x128xf32, #tpu.memory_space<vmem>>, vector<256x128xf32>
    %cst_32 = arith.constant dense<0.000000e+00> : vector<128x128xf32>
    %90 = tpu.matmul %88, %89, %cst_32 {dimension_numbers = #tpu.dot_dimension_numbers<[1], [0], [0], [1], [0, 0, 1, 1], [], []>} : vector<128x256xf32>, vector<256x128xf32>, vector<128x128xf32> -> vector<128x128xf32>
    %c0_33 = arith.constant 0 : index
    %c0_34 = arith.constant 0 : index
    %91 = vector.load %arg11[%c0_33, %c0_34] : memref<1x128xf32, #tpu.memory_space<vmem>>, vector<1x128xf32>
    %92 = vector.shape_cast %91 : vector<1x128xf32> to vector<128xf32>
    %93 = vector.shape_cast %92 : vector<128xf32> to vector<1x128xf32>
    %94 = vector.broadcast %93 : vector<1x128xf32> to vector<128x128xf32>
    %95 = arith.addf %90, %94 : vector<128x128xf32>
    %96 = arith.addf %79, %95 : vector<128x128xf32>
    %cst_35 = arith.constant dense<0.000000e+00> : vector<128xf32>
    %97 = vector.multi_reduction <add>, %96, %cst_35 [1] : vector<128x128xf32> to vector<128xf32>
    %98 = vector.shape_cast %97 : vector<128xf32> to vector<128x1xf32>
    %cst_36 = arith.constant 1.280000e+02 : f32
    %99 = vector.broadcast %cst_36 : f32 to vector<128x1xf32>
    %100 = arith.divf %98, %99 : vector<128x1xf32>
    %101 = vector.broadcast %100 : vector<128x1xf32> to vector<128x128xf32>
    %102 = arith.subf %96, %101 : vector<128x128xf32>
    %103 = arith.mulf %102, %102 : vector<128x128xf32>
    %cst_37 = arith.constant dense<0.000000e+00> : vector<128xf32>
    %104 = vector.multi_reduction <add>, %103, %cst_37 [1] : vector<128x128xf32> to vector<128xf32>
    %105 = vector.shape_cast %104 : vector<128xf32> to vector<128x1xf32>
    %cst_38 = arith.constant 1.280000e+02 : f32
    %106 = vector.broadcast %cst_38 : f32 to vector<128x1xf32>
    %107 = arith.divf %105, %106 : vector<128x1xf32>
    %108 = vector.broadcast %100 : vector<128x1xf32> to vector<128x128xf32>
    %109 = arith.subf %96, %108 : vector<128x128xf32>
    %cst_39 = arith.constant 9.99999997E-7 : f32
    %110 = vector.broadcast %cst_39 : f32 to vector<128x1xf32>
    %111 = arith.addf %107, %110 : vector<128x1xf32>
    %112 = math.rsqrt %111 : vector<128x1xf32>
    %113 = vector.broadcast %112 : vector<128x1xf32> to vector<128x128xf32>
    %114 = arith.mulf %109, %113 : vector<128x128xf32>
    %c0_40 = arith.constant 0 : index
    %c0_41 = arith.constant 0 : index
    %115 = vector.load %arg12[%c0_40, %c0_41] : memref<1x128xf32, #tpu.memory_space<vmem>>, vector<1x128xf32>
    %116 = vector.shape_cast %115 : vector<1x128xf32> to vector<128xf32>
    %117 = vector.shape_cast %116 : vector<128xf32> to vector<1x128xf32>
    %118 = vector.broadcast %117 : vector<1x128xf32> to vector<128x128xf32>
    %119 = arith.mulf %114, %118 : vector<128x128xf32>
    %c0_42 = arith.constant 0 : index
    %c0_43 = arith.constant 0 : index
    %120 = vector.load %arg13[%c0_42, %c0_43] : memref<1x128xf32, #tpu.memory_space<vmem>>, vector<1x128xf32>
    %121 = vector.shape_cast %120 : vector<1x128xf32> to vector<128xf32>
    %122 = vector.shape_cast %121 : vector<128xf32> to vector<1x128xf32>
    %123 = vector.broadcast %122 : vector<1x128xf32> to vector<128x128xf32>
    %124 = arith.addf %119, %123 : vector<128x128xf32>
    %125 = vector.shape_cast %124 : vector<128x128xf32> to vector<16x8x128xf32>
    %c0_44 = arith.constant 0 : index
    %c0_45 = arith.constant 0 : index
    %c0_46 = arith.constant 0 : index
    %126 = vector.load %arg14[%c0_44, %c0_45, %c0_46] : memref<16x8x128xf32, #tpu.memory_space<vmem>>, vector<16x8x128xf32>
    tpu.vector_store %arg14[%c0_44, %c0_45, %c0_46], %125 {strides = array<i32>} : memref<16x8x128xf32, #tpu.memory_space<vmem>>, vector<16x8x128xf32>,
    return
  }
  func.func @transform_0(%arg0: i32) -> (i32, i32, i32) {
    %c0_i32 = arith.constant 0 : i32
    %c0_i32_0 = arith.constant 0 : i32
    %c0_i32_1 = arith.constant 0 : i32
    return %arg0, %c0_i32, %c0_i32_0 : i32, i32, i32
  }
  func.func @transform_1(%arg0: i32) -> (i32, i32) {
    %c0_i32 = arith.constant 0 : i32
    %c0_i32_0 = arith.constant 0 : i32
    %c0_i32_1 = arith.constant 0 : i32
    return %c0_i32, %c0_i32_0 : i32, i32
  }
  func.func @transform_2(%arg0: i32) -> (i32, i32) {
    %c0_i32 = arith.constant 0 : i32
    %c0_i32_0 = arith.constant 0 : i32
    %c0_i32_1 = arith.constant 0 : i32
    return %c0_i32, %c0_i32_0 : i32, i32
  }
  func.func @transform_3(%arg0: i32) -> (i32, i32) {
    %c0_i32 = arith.constant 0 : i32
    %c0_i32_0 = arith.constant 0 : i32
    %c0_i32_1 = arith.constant 0 : i32
    return %c0_i32, %c0_i32_0 : i32, i32
  }
  func.func @transform_4(%arg0: i32) -> (i32, i32) {
    %c0_i32 = arith.constant 0 : i32
    %c0_i32_0 = arith.constant 0 : i32
    %c0_i32_1 = arith.constant 0 : i32
    return %c0_i32, %c0_i32_0 : i32, i32
  }
  func.func @transform_5(%arg0: i32) -> (i32, i32) {
    %c0_i32 = arith.constant 0 : i32
    %c0_i32_0 = arith.constant 0 : i32
    %c0_i32_1 = arith.constant 0 : i32
    return %c0_i32, %c0_i32_0 : i32, i32
  }
  func.func @transform_6(%arg0: i32) -> (i32, i32) {
    %c0_i32 = arith.constant 0 : i32
    %c0_i32_0 = arith.constant 0 : i32
    %c0_i32_1 = arith.constant 0 : i32
    return %c0_i32, %c0_i32_0 : i32, i32
  }
  func.func @transform_7(%arg0: i32) -> (i32, i32) {
    %c0_i32 = arith.constant 0 : i32
    %c0_i32_0 = arith.constant 0 : i32
    %c0_i32_1 = arith.constant 0 : i32
    return %c0_i32, %c0_i32_0 : i32, i32
  }
  func.func @transform_8(%arg0: i32) -> (i32, i32) {
    %c0_i32 = arith.constant 0 : i32
    %c0_i32_0 = arith.constant 0 : i32
    %c0_i32_1 = arith.constant 0 : i32
    return %c0_i32, %c0_i32_0 : i32, i32
  }
  func.func @transform_9(%arg0: i32) -> (i32, i32) {
    %c0_i32 = arith.constant 0 : i32
    %c0_i32_0 = arith.constant 0 : i32
    %c0_i32_1 = arith.constant 0 : i32
    return %c0_i32, %c0_i32_0 : i32, i32
  }
  func.func @transform_10(%arg0: i32) -> (i32, i32) {
    %c0_i32 = arith.constant 0 : i32
    %c0_i32_0 = arith.constant 0 : i32
    %c0_i32_1 = arith.constant 0 : i32
    return %c0_i32, %c0_i32_0 : i32, i32
  }
  func.func @transform_11(%arg0: i32) -> (i32, i32) {
    %c0_i32 = arith.constant 0 : i32
    %c0_i32_0 = arith.constant 0 : i32
    %c0_i32_1 = arith.constant 0 : i32
    return %c0_i32, %c0_i32_0 : i32, i32
  }
  func.func @transform_12(%arg0: i32) -> (i32, i32) {
    %c0_i32 = arith.constant 0 : i32
    %c0_i32_0 = arith.constant 0 : i32
    %c0_i32_1 = arith.constant 0 : i32
    return %c0_i32, %c0_i32_0 : i32, i32
  }
  func.func @transform_13(%arg0: i32) -> (i32, i32, i32) {
    %c0_i32 = arith.constant 0 : i32
    %c0_i32_0 = arith.constant 0 : i32
    %c0_i32_1 = arith.constant 0 : i32
    return %arg0, %c0_i32, %c0_i32_0 : i32, i32, i32
  }
}

</mosaic_0001>

<bundles_post_ra>
// kernel: tpu_custom_call.1
= control target key start
LH: loop header
LB: loop body
LE: loop exit
PB: predicated region body
PF: predicated region fallthrough
CT: control target
= control target key end

     0   :  { %18 = vsyncpa [#allocation3], 0  ;;  %s17563_s0 = inlined_call_operand.hbm [shape: f32[16,8,128], index: 0, kind: input, shape index: {}]   ;;  %s17564_s1 = inlined_call_operand.hbm [shape: f32[128,384], index: 1, kind: input, shape index: {}]   ;;  %s17565_s2 = inlined_call_operand.vmem [shape: f32[1,384], index: 2, kind: input, shape index: {}]   ;;  %s17566_s3 = inlined_call_operand.hbm [shape: f32[128,128], index: 3, kind: input, shape index: {}]   ;;  %s17567_s4 = inlined_call_operand.vmem [shape: f32[1,128], index: 4, kind: input, shape index: {}]   ;;  %s17568_s5 = inlined_call_operand.vmem [shape: f32[1,128], index: 5, kind: input, shape index: {}]   ;;  %s17569_s6 = inlined_call_operand.vmem [shape: f32[1,128], index: 6, kind: input, shape index: {}]   ;;  %s17570_s7 = inlined_call_operand.hbm [shape: f32[128,256], index: 7, kind: input, shape index: {}]   ;;  %s17571_s8 = inlined_call_operand.vmem [shape: f32[1,256], index: 8, kind: input, shape index: {}]   ;;  %s17572_s9 = inlined_call_operand.hbm [shape: f32[256,128], index: 9, kind: input, shape index: {}]   ;;  %s17573_s10 = inlined_call_operand.vmem [shape: f32[1,128], index: 10, kind: input, shape index: {}]   ;;  %s17574_s11 = inlined_call_operand.vmem [shape: f32[1,128], index: 11, kind: input, shape index: {}]   ;;  %s17575_s12 = inlined_call_operand.vmem [shape: f32[1,128], index: 12, kind: input, shape index: {}]   ;;  %s17576_s13 = inlined_call_operand.hbm [shape: f32[16,8,128], index: 13, kind: output, shape index: {}]  }
   0x1   :  { %19 = vsyncpa [#allocation6], 0 }
   0x2   :  { %20 = vsyncpa [#allocation9], 0 }
   0x3   :  { %21 = vsyncpa [#allocation4], 0  ;;  %s14480_s25 = smov [#allocation5]   ;;  %s14340_s29 = scalar_lea.hbm %s17564_s1, 6144 }
   0x4   :  { %s39_s26 = sshll.u32 %s14480_s25, 4  ;;  %p14341_p0 = scmp.ne.s32.totalorder %s17564_s1, %s14340_s29  ;;  %s40_s26 = int_to_ptr.vmem [resolvable:$true] %s39_s26 }
   0x5   :  { %p14344_p1 = scmp.lt.u32.totalorder %s14340_s29, %s17564_s1 }
   0x7   :  { %p14346_p2 = pnand %p14344_p1, %p14341_p0 }
   0x9   :  { %14349 = shalt.err (!%p14346_p2)
}
   0xa   :  { %s14350_s17 = scalar_lea.vmem %s40_s26, 6144  ;;  %p14355_p4 = scmp.lt.s32.totalorder %s40_s26, %s40_s26 }
   0xb   :  { %p14351_p3 = scmp.ne.s32.totalorder %s40_s26, %s14350_s17  ;;  %p14356_p5 = scmp.lt.s32.totalorder %s14350_s17, %s14350_s17 }
   0xd   :  { %p14357_p6 = por %p14356_p5, %p14355_p4 }
   0xf   :  { %p14358_p7 = pnand %p14357_p6, %p14351_p3 }
  0x11   :  { %14361 = shalt.err (!%p14358_p7)
}
  0x12   :  { %s14481_s18 = smov 384   ;;  %s14482_s19 = smov 24  }
  0x13   :  { %45 = dma.hbm_to_vmem [thread:$0]  %s17564_s1, 6144, %s40_s26, [#allocation6], %s14481_s18, %s14481_s18, %s14482_s19  }
  0x14   :  { %s14483_s22 = smov [#allocation8]   ;;  %s14362_s27 = scalar_lea.hbm %s17570_s7, 4096 }
  0x15   :  { %s71_s23 = sshll.u32 %s14483_s22, 4  ;;  %p14363_p8 = scmp.ne.s32.totalorder %s17570_s7, %s14362_s27  ;;  %s72_s23 = int_to_ptr.vmem [resolvable:$true] %s71_s23 }
  0x16   :  { %p14366_p9 = scmp.lt.u32.totalorder %s14362_s27, %s17570_s7 }
  0x18   :  { %p14368_p10 = pnand %p14366_p9, %p14363_p8 }
  0x1a   :  { %14371 = shalt.err (!%p14368_p10)
}
  0x1b   :  { %s14372_s15 = scalar_lea.vmem %s72_s23, 4096  ;;  %p14377_p12 = scmp.lt.s32.totalorder %s72_s23, %s72_s23 }
  0x1c   :  { %p14373_p11 = scmp.ne.s32.totalorder %s72_s23, %s14372_s15  ;;  %p14378_p13 = scmp.lt.s32.totalorder %s14372_s15, %s14372_s15 }
  0x1e   :  { %p14379_p0 = por %p14378_p13, %p14377_p12 }
  0x20   :  { %p14380_p1 = pnand %p14379_p0, %p14373_p11 }
  0x22   :  { %14383 = shalt.err (!%p14380_p1)
}
  0x23   :  { %s14484_s1 = smov 256   ;;  %s14485_s26 = smov 16  }
  0x24   :  { %77 = dma.hbm_to_vmem [thread:$0]  %s17570_s7, 4096, %s72_s23, [#allocation9], %s14484_s1, %s14484_s1, %s14485_s26  }
  0x25   :  { %s14486_s18 = smov [#allocation2]   ;;  %s14384_s22 = scalar_lea.hbm %s17563_s0, 2048 }
  0x26   :  { %s27_s19 = sshll.u32 %s14486_s18, 4  ;;  %p14385_p2 = scmp.ne.s32.totalorder %s17563_s0, %s14384_s22  ;;  %s28_s19 = int_to_ptr.vmem [resolvable:$true] %s27_s19 }
  0x27   :  { %p14388_p3 = scmp.lt.u32.totalorder %s14384_s22, %s17563_s0 }
  0x29   :  { %p14390_p4 = pnand %p14388_p3, %p14385_p2 }
  0x2b   :  { %14393 = shalt.err (!%p14390_p4)
}
  0x2c   :  { %s14394_s29 = scalar_lea.vmem %s28_s19, 2048  ;;  %p14399_p6 = scmp.lt.s32.totalorder %s28_s19, %s28_s19 }
  0x2d   :  { %p14395_p5 = scmp.ne.s32.totalorder %s28_s19, %s14394_s29  ;;  %p14400_p7 = scmp.lt.s32.totalorder %s14394_s29, %s14394_s29 }
  0x2f   :  { %p14401_p8 = por %p14400_p7, %p14399_p6 }
  0x31   :  { %p14402_p9 = pnand %p14401_p8, %p14395_p5 }
  0x33   :  { %14405 = shalt.err (!%p14402_p9)
}
  0x34   :  { %s14487_s7 = smov 128   ;;  %s14488_s23 = smov 8  }
  0x35   :  { %33 = dma.hbm_to_vmem [thread:$0]  %s17563_s0, 2048, %s28_s19, [#allocation3], %s14487_s7, %s14487_s7, %s14488_s23  }
  0x36   :  { %s14489_s15 = smov [#allocation7]   ;;  %s14490_s26 = smov [#allocation10]  }
  0x37   :  { %s53_s1 = sshll.u32 %s14489_s15, 4  ;;  %s85_s16 = sshll.u32 %s14490_s26, 4  ;;  %s54_s1 = int_to_ptr.vmem [resolvable:$true] %s53_s1  ;;  %s86_s16 = int_to_ptr.vmem [resolvable:$true] %s85_s16 }
  0x38   :  { %s14406_s20 = scalar_lea.hbm %s17566_s3, 2048 }
  0x39   :  { %p14407_p10 = scmp.ne.s32.totalorder %s17566_s3, %s14406_s20  ;;  %p14410_p11 = scmp.lt.u32.totalorder %s14406_s20, %s17566_s3 }
  0x3b   :  { %p14412_p12 = pnand %p14410_p11, %p14407_p10 }
  0x3d   :  { %14415 = shalt.err (!%p14412_p12)
}
  0x3e   :  { %s14416_s0 = scalar_lea.vmem %s54_s1, 2048  ;;  %p14421_p0 = scmp.lt.s32.totalorder %s54_s1, %s54_s1 }
  0x3f   :  { %p14417_p13 = scmp.ne.s32.totalorder %s54_s1, %s14416_s0  ;;  %p14422_p1 = scmp.lt.s32.totalorder %s14416_s0, %s14416_s0 }
  0x41   :  { %p14423_p2 = por %p14422_p1, %p14421_p0 }
  0x43   :  { %p14424_p3 = pnand %p14423_p2, %p14417_p13 }
  0x45   :  { %14427 = shalt.err (!%p14424_p3)
}
  0x46   :  { %59 = dma.hbm_to_vmem [thread:$0]  %s17566_s3, 2048, %s54_s1, [#allocation6], %s14487_s7, %s14487_s7, %s14488_s23  }
  0x47   :  { %s14428_s30 = scalar_lea.hbm %s17572_s9, 4096 }
  0x48   :  { %p14429_p4 = scmp.ne.s32.totalorder %s17572_s9, %s14428_s30  ;;  %p14432_p5 = scmp.lt.u32.totalorder %s14428_s30, %s17572_s9 }
  0x4a   :  { %p14434_p6 = pnand %p14432_p5, %p14429_p4 }
  0x4c   :  { %14437 = shalt.err (!%p14434_p6)
}
  0x4d   :  { %s14438_s18 = scalar_lea.vmem %s86_s16, 4096  ;;  %p14443_p8 = scmp.lt.s32.totalorder %s86_s16, %s86_s16 }
  0x4e   :  { %p14439_p7 = scmp.ne.s32.totalorder %s86_s16, %s14438_s18  ;;  %p14444_p9 = scmp.lt.s32.totalorder %s14438_s18, %s14438_s18 }
  0x50   :  { %p14445_p10 = por %p14444_p9, %p14443_p8 }
  0x52   :  { %p14446_p11 = pnand %p14445_p10, %p14439_p7 }
  0x54   :  { %14449 = shalt.err (!%p14446_p11)
}
  0x55   :  { %91 = dma.hbm_to_vmem [thread:$0]  %s17572_s9, 4096, %s86_s16, [#allocation9], %s14487_s7, %s14487_s7, %s14488_s23  }
  0x56   :  { %14472 = dma.done.wait [#allocation3], 2048  }
  0x57   :  { %14473 = vsyncadd [#allocation3], 4294965248 }
  0x58   :  { %14474 = dma.done.wait [#allocation6], 8192  }
  0x59   :  { %14475 = vsyncadd [#allocation6], 4294959104 }
  0x5a   :  { %14476 = dma.done.wait [#allocation9], 8192  }
  0x5b   :  { %14477 = vsyncadd [#allocation9], 4294959104  ;;  %v17579_v0 = vmov 0.0   ;;  %v130_v1 = vld [vmem:[#allocation5 + $0x8] sm:$0xff]  ;;  %v133_v2 = vld [vmem:[#allocation5 + $0x20] sm:$0xff]  ;;  %vm14492_vm0 = vmmov 0  }
  0x5c   :  { %258 = vmatprep.mubr.f32.mxu0 %v17579_v0  ;;  %v129_v3 = vld [vmem:[#allocation5] sm:$0xff]  ;;  %v13691_v4 = vpack.c.bf16 %v133_v2, %v130_v1  ;;  %v132_v5 = vld [vmem:[#allocation5 + $0x18] sm:$0xff]  ;;  %v131_v6 = vld [vmem:[#allocation5 + $0x10] sm:$0xff]  ;;  %vm884_vm1 = vcmask 261120   ;;  %s14494_s20 = smov 96   ;;  %s14495_s21 = smov 32  }
  0x5d   :  { %v134_v7 = vld [vmem:[#allocation5 + $0x28] sm:$0xff]  ;;  %v13693_v8 = vpack.c.bf16 %v132_v5, %v129_v3  ;;  %v136_v10 = vld [vmem:[#allocation5 + $0x38] sm:$0xff]  ;;  %v139_v11 = vld [vmem:[#allocation5 + $0x50] sm:$0xff]  ;;  %vm5621_vm2 = vcmask 64512   ;;  %vm11206_vm3 = vcmask 523264   ;;  %vm11223_vm4 = vcmask 785408  }
  0x5e   :  { %v13723_v9 = vpack.c.bf16 %v134_v7, %v131_v6  ;;  %v135_v12 = vld [vmem:[#allocation5 + $0x30] sm:$0xff]  ;;  %13692 = vmatprep.subr.bf16.mxu0 %v13691_v4  ;;  %v13695_v13 = vpack.c.bf16 %v139_v11, %v136_v10  ;;  %v138_v14 = vld [vmem:[#allocation5 + $0x48] sm:$0xff]  ;;  %v137_v15 = vld [vmem:[#allocation5 + $0x40] sm:$0xff] }
  0x5f   :  { %v140_v16 = vld [vmem:[#allocation5 + $0x58] sm:$0xff]  ;;  %13694 = vmatpush1.bf16.msra.mxu0 %v13693_v8  ;;  %v13697_v17 = vpack.c.bf16 %v138_v14, %v135_v12  ;;  %v142_v19 = vld [vmem:[#allocation5 + $0x68] sm:$0xff]  ;;  %v145_v20 = vld [vmem:[#allocation5 + $0x80] sm:$0xff] }
  0x60   :  { %13724 = vmatprep.subr.bf16.mxu1 %v13723_v9  ;;  %v13727_v18 = vpack.c.bf16 %v140_v16, %v137_v15  ;;  %v141_v21 = vld [vmem:[#allocation5 + $0x60] sm:$0xff]  ;;  %13696 = vmatprep.subr.bf16.mxu0 %v13695_v13  ;;  %v13699_v22 = vpack.c.bf16 %v145_v20, %v142_v19  ;;  %v144_v23 = vld [vmem:[#allocation5 + $0x78] sm:$0xff]  ;;  %v143_v24 = vld [vmem:[#allocation5 + $0x70] sm:$0xff] }
  0x61   :  { %13726 = vmatpush3.bf16.msra.mxu1 %v13723_v9  ;;  %v146_v25 = vld [vmem:[#allocation5 + $0x88] sm:$0xff]  ;;  %v148_v27 = vld [vmem:[#allocation5 + $0x98] sm:$0xff]  ;;  %v151_v28 = vld [vmem:[#allocation5 + $0xb0] sm:$0xff]  ;;  %v13701_v31 = vpack.c.bf16 %v144_v23, %v141_v21 }
  0x62   :  { %13728 = vmatprep.subr.bf16.mxu1 %v13727_v18  ;;  %v13731_v26 = vpack.c.bf16 %v146_v25, %v143_v24  ;;  %v149_v29 = vld [vmem:[#allocation5 + $0xa0] sm:$0xff]  ;;  %v152_v30 = vld [vmem:[#allocation5 + $0xb8] sm:$0xff]  ;;  %v13703_v32 = vpack.c.bf16 %v151_v28, %v148_v27  ;;  %v147_v33 = vld [vmem:[#allocation5 + $0x90] sm:$0xff] }
  0x63   :  { %13698 = vmatpush1.bf16.msra.mxu0 %v13697_v17  ;;  %v150_v34 = vld [vmem:[#allocation5 + $0xa8] sm:$0xff]  ;;  %v13735_v35 = vpack.c.bf16 %v152_v30, %v149_v29  ;;  %v157_v37 = vld [vmem:[#allocation5 + $0xe0] sm:$0xff]  ;;  %v155_v38 = vld [vmem:[#allocation5 + $0xd0] sm:$0xff] }
  0x64   :  { %13700 = vmatprep.subr.bf16.mxu0 %v13699_v22  ;;  %v154_v36 = vld [vmem:[#allocation5 + $0xc8] sm:$0xff]  ;;  %v13705_v40 = vpack.c.bf16 %v150_v34, %v147_v33  ;;  %v153_v42 = vld [vmem:[#allocation5 + $0xc0] sm:$0xff]  ;;  %v156_v43 = vld [vmem:[#allocation5 + $0xd8] sm:$0xff] }
  0x65   :  { %13730 = vmatpush3.bf16.msra.mxu1 %v13727_v18  ;;  %v158_v39 = vld [vmem:[#allocation5 + $0xe8] sm:$0xff]  ;;  %v13707_v41 = vpack.c.bf16 %v157_v37, %v154_v36  ;;  %v160_v45 = vld [vmem:[#allocation5 + $0xf8] sm:$0xff]  ;;  %v163_v46 = vld [vmem:[#allocation5 + $0x110] sm:$0xff]  ;;  %v13709_v49 = vpack.c.bf16 %v156_v43, %v153_v42 }
  0x66   :  { %13732 = vmatprep.subr.bf16.mxu1 %v13731_v26  ;;  %v13739_v44 = vpack.c.bf16 %v158_v39, %v155_v38  ;;  %v161_v47 = vld [vmem:[#allocation5 + $0x100] sm:$0xff]  ;;  %v164_v48 = vld [vmem:[#allocation5 + $0x118] sm:$0xff]  ;;  %v13711_v51 = vpack.c.bf16 %v163_v46, %v160_v45  ;;  %v159_v52 = vld [vmem:[#allocation5 + $0xf0] sm:$0xff] }
  0x67   :  { %13702 = vmatpush1.bf16.msra.mxu0 %v13701_v31  ;;  %v113_v50 = vld [vmem:[#allocation2] sm:$0xff]  ;;  %v162_v53 = vld [vmem:[#allocation5 + $0x108] sm:$0xff]  ;;  %v13743_v54 = vpack.c.bf16 %v164_v48, %v161_v47  ;;  %v167_v57 = vld [vmem:[#allocation5 + $0x130] sm:$0xff] }
  0x68   :  { %13704 = vmatprep.subr.bf16.mxu0 %v13703_v32  ;;  %v166_v55 = vld [vmem:[#allocation5 + $0x128] sm:$0xff]  ;;  %v169_v56 = vld [vmem:[#allocation5 + $0x140] sm:$0xff]  ;;  %12971 = vmatprep.mubr.f32.mxu1 %v113_v50  ;;  %v13713_v59 = vpack.c.bf16 %v162_v53, %v159_v52  ;;  %v168_v62 = vld [vmem:[#allocation5 + $0x138] sm:$0xff] }
  0x69   :  { %13734 = vmatpush3.bf16.msra.mxu1 %v13731_v26  ;;  %v170_v58 = vld [vmem:[#allocation5 + $0x148] sm:$0xff]  ;;  %v13715_v60 = vpack.c.bf16 %v169_v56, %v166_v55  ;;  %v165_v61 = vld [vmem:[#allocation5 + $0x120] sm:$0xff]  ;;  %v172_v1 = vld [vmem:[#allocation5 + $0x158] sm:$0xff]  ;;  %v179_v26 = vlaneseq }
  0x6a   :  { %13736 = vmatprep.subr.bf16.mxu1 %v13735_v35  ;;  %v13747_v63 = vpack.c.bf16 %v170_v58, %v167_v57  ;;  %v175_v2 = vld [vmem:[#allocation5 + $0x170] sm:$0xff]  ;;  %v173_v3 = vld [vmem:[#allocation5 + $0x160] sm:$0xff]  ;;  %v176_v4 = vld [vmem:[#allocation5 + $0x178] sm:$0xff]  ;;  %v13717_v5 = vpack.c.bf16 %v168_v62, %v165_v61 }
  0x6b   :  { %13706 = vmatpush1.bf16.msra.mxu0 %v13705_v40  ;;  %v13719_v6 = vpack.c.bf16 %v175_v2, %v172_v1  ;;  %v171_v7 = vld [vmem:[#allocation5 + $0x150] sm:$0xff]  ;;  %v174_v8 = vld [vmem:[#allocation5 + $0x168] sm:$0xff]  ;;  %v13751_v9 = vpack.c.bf16 %v176_v4, %v173_v3  ;;  %v116_v13 = vld [vmem:[#allocation2 + $0x18] sm:$0xff]  ;;  %v14658_v27 = vshrl.u32 %v179_v26, 7 }
  0x6c   :  { %13708 = vmatprep.subr.bf16.mxu0 %v13707_v41  ;;  %v13721_v10 = vpack.c.bf16 %v174_v8, %v171_v7  ;;  %v114_v11 = vld [vmem:[#allocation2 + $0x8] sm:$0xff]  ;;  %v115_v12 = vld [vmem:[#allocation2 + $0x10] sm:$0xff]  ;;  %v117_v14 = vld [vmem:[#allocation2 + $0x20] sm:$0xff] }
  0x6d   :  { %13738 = vmatpush3.bf16.msra.mxu1 %v13735_v35  ;;  %v118_v15 = vld [vmem:[#allocation2 + $0x28] sm:$0xff]  ;;  %v119_v16 = vld [vmem:[#allocation2 + $0x30] sm:$0xff]  ;;  %v120_v17 = vld [vmem:[#allocation2 + $0x38] sm:$0xff]  ;;  %17657 = vst [vmem:[#allocation16_spill] sm:$0xff] %v14658_v27  ;;  %v17578_v28 = vsub.s32 0, %v14658_v27  ;;  %v17577_v30 = vsub.s32 1, %v14658_v27 }
  0x6e   :  { %13740 = vmatprep.subr.bf16.mxu1 %v13739_v44  ;;  %v121_v18 = vld [vmem:[#allocation2 + $0x40] sm:$0xff]  ;;  %v122_v19 = vld [vmem:[#allocation2 + $0x48] sm:$0xff]  ;;  %v123_v20 = vld [vmem:[#allocation2 + $0x50] sm:$0xff]  ;;  %v189_v31 = vsub.s32 2, %v14658_v27 }
  0x6f   :  { %13710 = vmatpush1.bf16.msra.mxu0 %v13709_v49  ;;  %v124_v21 = vld [vmem:[#allocation2 + $0x58] sm:$0xff]  ;;  %v125_v22 = vld [vmem:[#allocation2 + $0x60] sm:$0xff]  ;;  %v126_v23 = vld [vmem:[#allocation2 + $0x68] sm:$0xff] }
  0x70   :  { %13712 = vmatprep.subr.bf16.mxu0 %v13711_v51  ;;  %v127_v24 = vld [vmem:[#allocation2 + $0x70] sm:$0xff]  ;;  %v128_v25 = vld [vmem:[#allocation2 + $0x78] sm:$0xff]  ;;  %v177_v29 = vld [vmem:[%s17565_s2] sm:$0x7]  ;;  %s14493_s2 = smov 64  }
  0x71   :  { %13742 = vmatpush3.bf16.msra.mxu1 %v13739_v44  ;;  %v14668_v32 = vrot.slane %v177_v29, %v17578_v28  ;;  %v14672_v33 = vrot.slane %v177_v29, %v17577_v30  ;;  %v14674_v34 = vrot.slane %v177_v29, %v189_v31 }
  0x72   :  { %13744 = vmatprep.subr.bf16.mxu1 %v13743_v54 }
  0x73   :  { %13714 = vmatpush1.bf16.msra.mxu0 %v13713_v59 }
  0x74   :  { %13716 = vmatprep.subr.bf16.mxu0 %v13715_v60 }
  0x75   :  { %13746 = vmatpush3.bf16.msra.mxu1 %v13743_v54 }
  0x76   :  { %13748 = vmatprep.subr.bf16.mxu1 %v13747_v63 }
  0x77   :  { %13718 = vmatpush1.bf16.msra.mxu0 %v13717_v5 }
  0x78   :  { %13720 = vmatprep.subr.bf16.mxu0 %v13719_v6 }
  0x79   :  { %13750 = vmatpush3.bf16.msra.mxu1 %v13747_v63 }
  0x7a   :  { %13752 = vmatprep.subr.bf16.mxu1 %v13751_v9 }
  0x7b   :  { %13722 = vmatpush1.bf16.msra.mxu0 %v13721_v10 }
  0x7c   :  { %13035 = vmatprep.subr.mxu0 %v17579_v0 }
  0x7d   :  { %13754 = vmatpush3.bf16.msra.mxu1 %v13751_v9 }
  0x7e   :  { %12995 = vmatprep.subr.mxu1 %v17579_v0  ;;  %259 = vmatmul.mubr.f32.vlgmr.msra.gmra.mrb[0].mxu0 %v113_v50 }
  0x7f   :  { %264 = vmatprep.mubr.f32.mxu0 %v17579_v0 }
  0x80   :  { %12972 = vmatmul.mubr.f32.vlgmr.msra.gmra.mrb[0].mxu1 %v114_v11 }
  0x81   :  { %12974 = vmatprep.mubr.f32.mxu1 %v115_v12 }
  0x82   :  { %265 = vmatmul.mubr.f32.gmra.mrb[2].mxu0 %v114_v11 }
  0x83   :  { %270 = vmatprep.mubr.f32.mxu0 %v17579_v0 }
  0x84   :  { %12975 = vmatmul.mubr.f32.gmra.mrb[2].mxu1 %v116_v13 }
  0x85   :  { %12977 = vmatprep.mubr.f32.mxu1 %v117_v14 }
  0x86   :  { %271 = vmatmul.mubr.f32.gmra.mrb[4].mxu0 %v115_v12 }
  0x87   :  { %276 = vmatprep.mubr.f32.mxu0 %v17579_v0 }
  0x88   :  { %12978 = vmatmul.mubr.f32.gmra.mrb[4].mxu1 %v118_v15 }
  0x89   :  { %12980 = vmatprep.mubr.f32.mxu1 %v119_v16 }
  0x8a   :  { %277 = vmatmul.mubr.f32.gmra.mrb[6].mxu0 %v116_v13 }
  0x8b   :  { %282 = vmatprep.mubr.f32.mxu0 %v17579_v0 }
  0x8c   :  { %12981 = vmatmul.mubr.f32.gmra.mrb[6].mxu1 %v120_v17 }
  0x8d   :  { %12983 = vmatprep.mubr.f32.mxu1 %v121_v18 }
  0x8e   :  { %283 = vmatmul.mubr.f32.gmra.mrb[8].mxu0 %v117_v14 }
  0x8f   :  { %288 = vmatprep.mubr.f32.mxu0 %v17579_v0 }
  0x90   :  { %12984 = vmatmul.mubr.f32.gmra.mrb[8].mxu1 %v122_v19 }
  0x91   :  { %12986 = vmatprep.mubr.f32.mxu1 %v123_v20 }
  0x92   :  { %289 = vmatmul.mubr.f32.gmra.mrb[10].mxu0 %v118_v15 }
  0x93   :  { %294 = vmatprep.mubr.f32.mxu0 %v17579_v0 }
  0x94   :  { %12987 = vmatmul.mubr.f32.gmra.mrb[10].mxu1 %v124_v21 }
  0x95   :  { %12989 = vmatprep.mubr.f32.mxu1 %v125_v22 }
  0x96   :  { %295 = vmatmul.mubr.f32.gmra.mrb[12].mxu0 %v119_v16 }
  0x97   :  { %300 = vmatprep.mubr.f32.mxu0 %v17579_v0 }
  0x98   :  { %12990 = vmatmul.mubr.f32.gmra.mrb[12].mxu1 %v126_v23 }
  0x99   :  { %12992 = vmatprep.mubr.f32.mxu1 %v127_v24 }
  0x9a   :  { %301 = vmatmul.mubr.f32.gmra.mrb[14].mxu0 %v120_v17 }
  0x9b   :  { %306 = vmatprep.mubr.f32.mxu0 %v17579_v0 }
  0x9c   :  { %12993 = vmatmul.mubr.f32.gmra.mrb[14].mxu1 %v128_v25 }
  0x9d   :  { %12997 = vmatprep.mubr.msk.f32.mxu1 %vm14492_vm0, %v17579_v0 }
  0x9e   :  { %307 = vmatmul.mubr.f32.gmra.mrb[16].mxu0 %v121_v18 }
  0x9f   :  { %312 = vmatprep.mubr.f32.mxu0 %v17579_v0 }
  0xa2   :  { %313 = vmatmul.mubr.f32.gmra.mrb[18].mxu0 %v122_v19 }
  0xa3   :  { %318 = vmatprep.mubr.f32.mxu0 %v17579_v0 }
  0xa6   :  { %319 = vmatmul.mubr.f32.gmra.mrb[20].mxu0 %v123_v20 }
  0xa7   :  { %324 = vmatprep.mubr.f32.mxu0 %v17579_v0 }
  0xaa   :  { %325 = vmatmul.mubr.f32.gmra.mrb[22].mxu0 %v124_v21 }
  0xab   :  { %330 = vmatprep.mubr.f32.mxu0 %v17579_v0 }
  0xae   :  { %331 = vmatmul.mubr.f32.gmra.mrb[24].mxu0 %v125_v22 }
  0xaf   :  { %336 = vmatprep.mubr.f32.mxu0 %v17579_v0 }
  0xb2   :  { %337 = vmatmul.mubr.f32.gmra.mrb[26].mxu0 %v126_v23 }
  0xb3   :  { %342 = vmatprep.mubr.f32.mxu0 %v17579_v0 }
  0xb6   :  { %343 = vmatmul.mubr.f32.gmra.mrb[28].mxu0 %v127_v24 }
  0xb7   :  { %348 = vmatprep.mubr.f32.mxu0 %v17579_v0 }
  0xba   :  { %349 = vmatmul.mubr.f32.gmra.mrb[30].mxu0 %v128_v25 }
  0xbb   :  { %13037 = vmatprep.mubr.msk.f32.mxu0 %vm14492_vm0, %v17579_v0 }
 0x151   :  { %v260_v35 = vpop.f32.mrb[0].mxu0 }
 0x152   :  { %v261_v36 = vadd.f32 %v260_v35, %v14668_v32  ;;  %v262_v37 = vpop.f32.mrb[1].mxu0 }
 0x153   :  { %v12973_v38 = vpop.f32.mrb[0].mxu1  ;;  %v14678_v39 = vadd.f32 %v262_v37, %v14672_v33 }
 0x154   :  { %v421_v40 = vpop.f32.mrb[1].mxu1  ;;  %548 = vrot.lane.b32.xlu0 %v261_v36, %s14493_s2  ;;  %516 = vrot.lane.b32.xlu1 %v261_v36, %s14494_s20  ;;  %v14697_v49 = vadd.f32 %v12973_v38, %v14674_v34 }
 0x155   :  { %v14681_v41 = vadd.f32 %v421_v40, %v14674_v34  ;;  %v266_v42 = vpop.f32.mrb[2].mxu0  ;;  %12996 = vmatpush3.xpose.msk.msra.mxu1 %vm884_vm1, %v14678_v39 }
 0x156   :  { %v268_v43 = vpop.f32.mrb[3].mxu0  ;;  %13000 = vmatprep.subr.mxu1 %v17579_v0  ;;  %v267_v47 = vadd.f32 %v266_v42, %v14668_v32  ;;  %17659 = vst [vmem:[#allocation18_spill] sm:$0xff] %v14697_v49 }
 0x157   :  { %17658 = vst [vmem:[#allocation17_spill] sm:$0xff] %v14681_v41  ;;  %v12976_v44 = vpop.f32.mrb[2].mxu1  ;;  %v14689_v45 = vadd.f32 %v268_v43, %v14672_v33 }
 0x158   :  { %v431_v46 = vpop.f32.mrb[3].mxu1  ;;  %580 = vrot.lane.b32.xlu0 %v261_v36, %s14495_s21  ;;  %740 = vrot.lane.b32.xlu1 %v14681_v41, %s14494_s20  ;;  %v14773_v9 = vadd.f32 %v12976_v44, %v14674_v34 }
 0x159   :  { %12998 = vmatmul.mubr.msk.f32.vlgmr.msra.gmra.mrb[16].mxu1 %vm884_vm1, %v261_v36  ;;  %v272_v48 = vpop.f32.mrb[4].mxu0  ;;  %v14789_v14 = vadd.f32 %v431_v46, %v14674_v34 }
 0x15a   :  { %13001 = vmatpush3.xpose.msk.msra.mxu1 %vm884_vm1, %v14689_v45  ;;  %13002 = vmatprep.mubr.msk.f32.mxu1 %vm14492_vm0, %v17579_v0  ;;  %v274_v50 = vpop.f32.mrb[5].mxu0  ;;  %v14714_v54 = vadd.f32 %v272_v48, %v14668_v32  ;;  %17660 = vst [vmem:[#allocation19_spill] sm:$0xff] %v14773_v9 }
 0x15b   :  { %v14703_v51 = vpop.f32.mrb[4].mxu1  ;;  %v14706_v52 = vadd.f32 %v274_v50, %v14672_v33  ;;  %13005 = vmatprep.subr.mxu1 %v17579_v0  ;;  %17661 = vst [vmem:[#allocation20_spill] sm:$0xff] %v14789_v14 }
 0x15c   :  { %v441_v53 = vpop.f32.mrb[5].mxu1  ;;  %742 = vrot.lane.b32.xlu0 %v14697_v49, %s14494_s20  ;;  %518 = vrot.lane.b32.xlu1 %v267_v47, %s14494_s20  ;;  %v14875_v40 = vadd.f32 %v14703_v51, %v14674_v34 }
 0x15d   :  { %13003 = vmatmul.mubr.msk.f32.vlgmr.msra.gmra.mrb[18].mxu1 %vm884_vm1, %v267_v47  ;;  %v278_v55 = vpop.f32.mrb[6].mxu0  ;;  %v14809_v19 = vadd.f32 %v441_v53, %v14674_v34 }
 0x15e   :  { %13006 = vmatpush3.xpose.msk.msra.mxu1 %vm884_vm1, %v14706_v52  ;;  %v280_v56 = vpop.f32.mrb[7].mxu0  ;;  %13007 = vmatprep.mubr.msk.f32.mxu1 %vm14492_vm0, %v17579_v0  ;;  %v14732_v60 = vadd.f32 %v278_v55, %v14668_v32  ;;  %17663 = vst [vmem:[#allocation22_spill] sm:$0xff] %v14875_v40 }
 0x15f   :  { %v14720_v57 = vpop.f32.mrb[6].mxu1  ;;  %v14723_v58 = vadd.f32 %v280_v56, %v14672_v33  ;;  %13010 = vmatprep.subr.mxu1 %v17579_v0  ;;  %17662 = vst [vmem:[#allocation21_spill] sm:$0xff] %v14809_v19 }
 0x160   :  { %v14726_v59 = vpop.f32.mrb[7].mxu1  ;;  %628 = vrot.lane.b32.xlu0 %v14678_v39, %s14494_s20  ;;  %550 = vrot.lane.b32.xlu1 %v267_v47, %s14493_s2 }
 0x161   :  { %13008 = vmatmul.mubr.msk.f32.vlgmr.msra.gmra.mrb[20].mxu1 %vm884_vm1, %v14714_v54  ;;  %v284_v61 = vpop.f32.mrb[8].mxu0 }
 0x162   :  { %13011 = vmatpush3.xpose.msk.msra.mxu1 %vm884_vm1, %v14723_v58  ;;  %13012 = vmatprep.mubr.msk.f32.mxu1 %vm14492_vm0, %v17579_v0  ;;  %v286_v62 = vpop.f32.mrb[9].mxu0  ;;  %v14752_v3 = vadd.f32 %v284_v61, %v14668_v32  ;;  %v14936_v61 = vadd.f32 %v14720_v57, %v14674_v34 }
 0x163   :  { %v14740_v63 = vpop.f32.mrb[8].mxu1  ;;  %v14743_v1 = vadd.f32 %v286_v62, %v14672_v33  ;;  %13015 = vmatprep.subr.mxu1 %v17579_v0  ;;  %v14940_v62 = vadd.f32 %v14726_v59, %v14674_v34 }
 0x164   :  { %v14746_v2 = vpop.f32.mrb[9].mxu1  ;;  %660 = vrot.lane.b32.xlu0 %v14678_v39, %s14493_s2  ;;  %582 = vrot.lane.b32.xlu1 %v267_v47, %s14495_s21  ;;  %17664 = vst [vmem:[#allocation23_spill] sm:$0xff] %v14936_v61 }
 0x165   :  { %13013 = vmatmul.mubr.msk.f32.vlgmr.msra.gmra.mrb[22].mxu1 %vm884_vm1, %v14732_v60  ;;  %v290_v4 = vpop.f32.mrb[10].mxu0  ;;  %17665 = vst [vmem:[#allocation24_spill] sm:$0xff] %v14940_v62 }
 0x166   :  { %13016 = vmatpush3.xpose.msk.msra.mxu1 %vm884_vm1, %v14743_v1  ;;  %v292_v5 = vpop.f32.mrb[11].mxu0  ;;  %13017 = vmatprep.mubr.msk.f32.mxu1 %vm14492_vm0, %v17579_v0  ;;  %v14776_v10 = vadd.f32 %v290_v4, %v14668_v32 }
 0x167   :  { %v14760_v6 = vpop.f32.mrb[10].mxu1  ;;  %v14763_v7 = vadd.f32 %v292_v5, %v14672_v33  ;;  %13020 = vmatprep.subr.mxu1 %v17579_v0 }
 0x168   :  { %v14766_v8 = vpop.f32.mrb[11].mxu1  ;;  %692 = vrot.lane.b32.xlu0 %v14678_v39, %s14495_s21  ;;  %662 = vrot.lane.b32.xlu1 %v14689_v45, %s14493_s2 }
 0x169   :  { %13018 = vmatmul.mubr.msk.f32.vlgmr.msra.gmra.mrb[24].mxu1 %vm884_vm1, %v14752_v3  ;;  %v296_v11 = vpop.f32.mrb[12].mxu0 }
 0x16a   :  { %13021 = vmatpush3.xpose.msk.msra.mxu1 %vm884_vm1, %v14763_v7  ;;  %v298_v12 = vpop.f32.mrb[13].mxu0  ;;  %13022 = vmatprep.mubr.msk.f32.mxu1 %vm14492_vm0, %v17579_v0  ;;  %v14796_v15 = vadd.f32 %v296_v11, %v14668_v32 }
 0x16b   :  { %v14785_v13 = vadd.f32 %v298_v12, %v14672_v33  ;;  %13025 = vmatprep.subr.mxu1 %v17579_v0  ;;  %v14968_v12 = vadd.f32 %v14746_v2, %v14674_v34  ;;  %v15019_v2 = vadd.f32 %v14766_v8, %v14674_v34 }
 0x16c   :  { %746 = vrot.lane.b32.xlu0 %v14773_v9, %s14494_s20  ;;  %694 = vrot.lane.b32.xlu1 %v14689_v45, %s14495_s21 }
 0x16d   :  { %v302_v16 = vpop.f32.mrb[14].mxu0  ;;  %13023 = vmatmul.mubr.msk.f32.vlgmr.msra.gmra.mrb[26].mxu1 %vm884_vm1, %v14776_v10  ;;  %17666 = vst [vmem:[#allocation25_spill] sm:$0xff] %v14968_v12  ;;  %17668 = vst [vmem:[#allocation27_spill] sm:$0xff] %v15019_v2 }
 0x16e   :  { %v304_v17 = vpop.f32.mrb[15].mxu0  ;;  %13026 = vmatpush3.xpose.msk.msra.mxu1 %vm884_vm1, %v14785_v13  ;;  %13027 = vmatprep.mubr.msk.f32.mxu1 %vm14492_vm0, %v17579_v0  ;;  %v14816_v20 = vadd.f32 %v302_v16, %v14668_v32 }
 0x16f   :  { %v14805_v18 = vadd.f32 %v304_v17, %v14672_v33  ;;  %13030 = vmatprep.subr.mxu1 %v17579_v0 }
 0x170   :  { %630 = vrot.lane.b32.xlu0 %v14689_v45, %s14494_s20  ;;  %744 = vrot.lane.b32.xlu1 %v14789_v14, %s14494_s20 }
 0x171   :  { %v308_v21 = vpop.f32.mrb[16].mxu0  ;;  %13028 = vmatmul.mubr.msk.f32.vlgmr.msra.gmra.mrb[28].mxu1 %vm884_vm1, %v14796_v15 }
 0x172   :  { %v310_v22 = vpop.f32.mrb[17].mxu0  ;;  %13031 = vmatpush3.xpose.msk.msra.mxu1 %vm884_vm1, %v14805_v18  ;;  %13032 = vmatprep.mubr.msk.f32.mxu1 %vm14492_vm0, %v17579_v0  ;;  %v14833_v24 = vadd.f32 %v308_v21, %v14668_v32 }
 0x173   :  { %v14825_v23 = vadd.f32 %v310_v22, %v14672_v33  ;;  %13040 = vmatprep.subr.mxu1 %v17579_v0 }
 0x174   :  { %520 = vrot.lane.b32.xlu0 %v14714_v54, %s14494_s20  ;;  %748 = vrot.lane.b32.xlu1 %v14809_v19, %s14494_s20 }
 0x175   :  { %v314_v25 = vpop.f32.mrb[18].mxu0  ;;  %13036 = vmatpush3.xpose.msk.msra.mxu0 %vm884_vm1, %v14825_v23  ;;  %13033 = vmatmul.mubr.msk.f32.vlgmr.msra.gmra.mrb[30].mxu1 %vm884_vm1, %v14816_v20 }
 0x176   :  { %v316_v26 = vpop.f32.mrb[19].mxu0  ;;  %13045 = vmatprep.subr.mxu0 %v17579_v0  ;;  %13042 = vmatprep.mubr.msk.f32.mxu1 %vm14492_vm0, %v17579_v0  ;;  %v14850_v31 = vadd.f32 %v314_v25, %v14668_v32 }
 0x177   :  { %v14843_v29 = vadd.f32 %v316_v26, %v14672_v33 }
 0x178   :  { %552 = vrot.lane.b32.xlu0 %v14714_v54, %s14493_s2  ;;  %522 = vrot.lane.b32.xlu1 %v14732_v60, %s14494_s20 }
 0x179   :  { %v320_v35 = vpop.f32.mrb[20].mxu0  ;;  %13038 = vmatmul.mubr.msk.f32.vlgmr.msra.gmra.mrb[32].mxu0 %vm884_vm1, %v14833_v24  ;;  %13041 = vmatpush3.xpose.msk.msra.mxu1 %vm884_vm1, %v14843_v29 }
 0x17a   :  { %v322_v36 = vpop.f32.mrb[21].mxu0  ;;  %13047 = vmatprep.mubr.msk.f32.mxu0 %vm14492_vm0, %v17579_v0  ;;  %13050 = vmatprep.subr.mxu1 %v17579_v0  ;;  %v14867_v38 = vadd.f32 %v320_v35, %v14668_v32 }
 0x17b   :  { %v14860_v37 = vadd.f32 %v322_v36, %v14672_v33 }
 0x17c   :  { %584 = vrot.lane.b32.xlu0 %v14714_v54, %s14495_s21  ;;  %554 = vrot.lane.b32.xlu1 %v14732_v60, %s14493_s2 }
 0x17d   :  { %v326_v39 = vpop.f32.mrb[22].mxu0  ;;  %13046 = vmatpush3.xpose.msk.msra.mxu0 %vm884_vm1, %v14860_v37  ;;  %13043 = vmatmul.mubr.msk.f32.vlgmr.msra.gmra.mrb[32].mxu1 %vm884_vm1, %v14850_v31 }
 0x17e   :  { %v328_v42 = vpop.f32.mrb[23].mxu0  ;;  %13055 = vmatprep.subr.mxu0 %v17579_v0  ;;  %13052 = vmatprep.mubr.msk.f32.mxu1 %vm14492_vm0, %v17579_v0  ;;  %v14888_v44 = vadd.f32 %v326_v39, %v14668_v32 }
 0x17f   :  { %v14881_v43 = vadd.f32 %v328_v42, %v14672_v33 }
 0x180   :  { %750 = vrot.lane.b32.xlu0 %v14875_v40, %s14494_s20  ;;  %586 = vrot.lane.b32.xlu1 %v14732_v60, %s14495_s21 }
 0x181   :  { %v332_v45 = vpop.f32.mrb[24].mxu0  ;;  %13048 = vmatmul.mubr.msk.f32.vlgmr.msra.gmra.mrb[34].mxu0 %vm884_vm1, %v14867_v38  ;;  %13051 = vmatpush3.xpose.msk.msra.mxu1 %vm884_vm1, %v14881_v43 }
 0x182   :  { %v334_v46 = vpop.f32.mrb[25].mxu0  ;;  %13057 = vmatprep.mubr.msk.f32.mxu0 %vm14492_vm0, %v17579_v0  ;;  %13060 = vmatprep.subr.mxu1 %v17579_v0  ;;  %v14905_v48 = vadd.f32 %v332_v45, %v14668_v32 }
 0x183   :  { %v14898_v47 = vadd.f32 %v334_v46, %v14672_v33 }
 0x184   :  { %632 = vrot.lane.b32.xlu0 %v14706_v52, %s14494_s20  ;;  %634 = vrot.lane.b32.xlu1 %v14723_v58, %s14494_s20 }
 0x185   :  { %v338_v50 = vpop.f32.mrb[26].mxu0  ;;  %13056 = vmatpush3.xpose.msk.msra.mxu0 %vm884_vm1, %v14898_v47  ;;  %13053 = vmatmul.mubr.msk.f32.vlgmr.msra.gmra.mrb[34].mxu1 %vm884_vm1, %v14888_v44 }
 0x186   :  { %v340_v51 = vpop.f32.mrb[27].mxu0  ;;  %13065 = vmatprep.subr.mxu0 %v17579_v0  ;;  %13062 = vmatprep.mubr.msk.f32.mxu1 %vm14492_vm0, %v17579_v0  ;;  %v14922_v54 = vadd.f32 %v338_v50, %v14668_v32 }
 0x187   :  { %v14915_v53 = vadd.f32 %v340_v51, %v14672_v33 }
 0x188   :  { %664 = vrot.lane.b32.xlu0 %v14706_v52, %s14493_s2  ;;  %666 = vrot.lane.b32.xlu1 %v14723_v58, %s14493_s2 }
 0x189   :  { %v344_v55 = vpop.f32.mrb[28].mxu0  ;;  %13058 = vmatmul.mubr.msk.f32.vlgmr.msra.gmra.mrb[36].mxu0 %vm884_vm1, %v14905_v48  ;;  %13061 = vmatpush3.xpose.msk.msra.mxu1 %vm884_vm1, %v14915_v53 }
 0x18a   :  { %v346_v56 = vpop.f32.mrb[29].mxu0  ;;  %13067 = vmatprep.mubr.msk.f32.mxu0 %vm14492_vm0, %v17579_v0  ;;  %13070 = vmatprep.subr.mxu1 %v17579_v0  ;;  %v14947_v4 = vadd.f32 %v344_v55, %v14668_v32 }
 0x18b   :  { %v14932_v60 = vadd.f32 %v346_v56, %v14672_v33 }
 0x18c   :  { %696 = vrot.lane.b32.xlu0 %v14706_v52, %s14495_s21  ;;  %698 = vrot.lane.b32.xlu1 %v14723_v58, %s14495_s21  ;;  %v14959_v52 = vpop.f32.mrb[12].mxu1 }
 0x18d   :  { %v350_v5 = vpop.f32.mrb[30].mxu0  ;;  %13066 = vmatpush3.xpose.msk.msra.mxu0 %vm884_vm1, %v14932_v60  ;;  %13063 = vmatmul.mubr.msk.f32.vlgmr.msra.gmra.mrb[36].mxu1 %vm884_vm1, %v14922_v54  ;;  %v14964_v11 = vpop.f32.mrb[13].mxu1 }
 0x18e   :  { %v14954_v57 = vadd.f32 %v350_v5, %v14668_v32  ;;  %v352_v59 = vpop.f32.mrb[31].mxu0  ;;  %13072 = vmatprep.mubr.msk.f32.mxu1 %vm14492_vm0, %v17579_v0  ;;  %13075 = vmatprep.subr.mxu0 %v17579_v0  ;;  %v14999_v32 = vadd.f32 %v14740_v63, %v14674_v34 }
 0x18f   :  { %v14962_v58 = vadd.f32 %v352_v59, %v14672_v33  ;;  %v15013_v33 = vpop.f32.mrb[14].mxu1 }
 0x190   :  { %754 = vrot.lane.b32.xlu0 %v14936_v61, %s14494_s20  ;;  %752 = vrot.lane.b32.xlu1 %v14940_v62, %s14494_s20  ;;  %17667 = vst [vmem:[#allocation26_spill] sm:$0xff] %v14999_v32  ;;  %v15015_v63 = vpop.f32.mrb[15].mxu1 }
 0x191   :  { %13068 = vmatmul.mubr.msk.f32.vlgmr.msra.gmra.mrb[38].mxu0 %vm884_vm1, %v14947_v4  ;;  %13071 = vmatpush3.xpose.msk.msra.mxu1 %vm884_vm1, %v14962_v58  ;;  %v15273_v30 = vadd.f32 %v15015_v63, %v14674_v34  ;;  %v17687_v63 = vmov 0.0  }
 0x192   :  { %13077 = vmatprep.mubr.msk.f32.mxu0 %vm14492_vm0, %v17579_v0  ;;  %13080 = vmatprep.subr.mxu1 %v17579_v0 }
 0x193   :  { %17684 = vst [vmem:[#allocation43_spill] sm:$0xff] %v15273_v30 }
 0x194   :  { %524 = vrot.lane.b32.xlu0 %v14752_v3, %s14494_s20  ;;  %756 = vrot.lane.b32.xlu1 %v14968_v12, %s14494_s20 }
 0x195   :  { %13073 = vmatmul.mubr.msk.f32.vlgmr.msra.gmra.mrb[38].mxu1 %vm884_vm1, %v14954_v57 }
 0x196   :  { %13082 = vmatprep.mubr.msk.f32.mxu1 %vm14492_vm0, %v17579_v0 }
 0x198   :  { %556 = vrot.lane.b32.xlu0 %v14752_v3, %s14493_s2  ;;  %526 = vrot.lane.b32.xlu1 %v14776_v10, %s14494_s20 }
 0x19c   :  { %588 = vrot.lane.b32.xlu0 %v14752_v3, %s14495_s21  ;;  %558 = vrot.lane.b32.xlu1 %v14776_v10, %s14493_s2 }
 0x1a0   :  { %758 = vrot.lane.b32.xlu0 %v14999_v32, %s14494_s20  ;;  %590 = vrot.lane.b32.xlu1 %v14776_v10, %s14495_s21 }
 0x1a4   :  { %636 = vrot.lane.b32.xlu0 %v14743_v1, %s14494_s20  ;;  %638 = vrot.lane.b32.xlu1 %v14763_v7, %s14494_s20 }
 0x1a8   :  { %668 = vrot.lane.b32.xlu0 %v14743_v1, %s14493_s2  ;;  %670 = vrot.lane.b32.xlu1 %v14763_v7, %s14493_s2 }
 0x1ac   :  { %700 = vrot.lane.b32.xlu0 %v14743_v1, %s14495_s21  ;;  %702 = vrot.lane.b32.xlu1 %v14763_v7, %s14495_s21 }
 0x1b0   :  { %528 = vrot.lane.b32.xlu0 %v14796_v15, %s14494_s20  ;;  %760 = vrot.lane.b32.xlu1 %v15019_v2, %s14494_s20 }
 0x1b4   :  { %560 = vrot.lane.b32.xlu0 %v14796_v15, %s14493_s2  ;;  %530 = vrot.lane.b32.xlu1 %v14816_v20, %s14494_s20 }
 0x1b8   :  { %592 = vrot.lane.b32.xlu0 %v14796_v15, %s14495_s21  ;;  %562 = vrot.lane.b32.xlu1 %v14816_v20, %s14493_s2 }
 0x1bc   :  { %640 = vrot.lane.b32.xlu0 %v14785_v13, %s14494_s20  ;;  %594 = vrot.lane.b32.xlu1 %v14816_v20, %s14495_s21 }
 0x1c0   :  { %672 = vrot.lane.b32.xlu0 %v14785_v13, %s14493_s2  ;;  %642 = vrot.lane.b32.xlu1 %v14805_v18, %s14494_s20 }
 0x1c4   :  { %704 = vrot.lane.b32.xlu0 %v14785_v13, %s14495_s21  ;;  %674 = vrot.lane.b32.xlu1 %v14805_v18, %s14493_s2 }
 0x1c6   :  { %v15049_v1 = vpop.permute.xlu0 %548  ;;  %v517_v3 = vpop.permute.xlu1 %516 }
 0x1c8   :  { %532 = vrot.lane.b32.xlu0 %v14833_v24, %s14494_s20  ;;  %706 = vrot.lane.b32.xlu1 %v14805_v18, %s14495_s21 }
 0x1ca   :  { %v15055_v7 = vpop.permute.xlu0 %580  ;;  %v15057_v8 = vpop.permute.xlu1 %740 }
 0x1cb   :  { %17669 = vst [vmem:[#allocation28_spill] sm:$0xff] %v15057_v8 }
 0x1cc   :  { %564 = vrot.lane.b32.xlu0 %v14833_v24, %s14493_s2  ;;  %534 = vrot.lane.b32.xlu1 %v14850_v31, %s14494_s20 }
 0x1ce   :  { %v15063_v10 = vpop.permute.xlu0 %742  ;;  %v519_v13 = vpop.permute.xlu1 %518 }
 0x1cf   :  { %17670 = vst [vmem:[#allocation29_spill] sm:$0xff] %v15063_v10 }
 0x1d0   :  { %596 = vrot.lane.b32.xlu0 %v14833_v24, %s14495_s21  ;;  %566 = vrot.lane.b32.xlu1 %v14850_v31, %s14493_s2 }
 0x1d2   :  { %v629_v15 = vpop.permute.xlu0 %628  ;;  %v15069_v16 = vpop.permute.xlu1 %550 }
 0x1d3   :  { %13076 = vmatpush3.xpose.msk.msra.mxu0 %vm884_vm1, %v629_v15 }
 0x1d4   :  { %644 = vrot.lane.b32.xlu0 %v14825_v23, %s14494_s20  ;;  %598 = vrot.lane.b32.xlu1 %v14850_v31, %s14495_s21 }
 0x1d5   :  { %13085 = vmatprep.subr.mxu0 %v17579_v0 }
 0x1d6   :  { %v15077_v17 = vpop.permute.xlu0 %660  ;;  %13078 = vmatmul.mubr.msk.f32.vlgmr.msra.gmra.mrb[40].mxu0 %vm884_vm1, %v517_v3  ;;  %v15080_v18 = vpop.permute.xlu1 %582 }
 0x1d7   :  { %13087 = vmatprep.mubr.msk.f32.mxu0 %vm14492_vm0, %v17579_v0 }
 0x1d8   :  { %676 = vrot.lane.b32.xlu0 %v14825_v23, %s14493_s2  ;;  %646 = vrot.lane.b32.xlu1 %v14843_v29, %s14494_s20 }
 0x1da   :  { %v15088_v20 = vpop.permute.xlu0 %692  ;;  %v15090_v21 = vpop.permute.xlu1 %662 }
 0x1dc   :  { %708 = vrot.lane.b32.xlu0 %v14825_v23, %s14495_s21  ;;  %678 = vrot.lane.b32.xlu1 %v14843_v29, %s14493_s2 }
 0x1de   :  { %v15096_v22 = vpop.permute.xlu0 %746  ;;  %v15098_v24 = vpop.permute.xlu1 %694 }
 0x1df   :  { %17671 = vst [vmem:[#allocation30_spill] sm:$0xff] %v15096_v22 }
 0x1e0   :  { %536 = vrot.lane.b32.xlu0 %v14867_v38, %s14494_s20  ;;  %710 = vrot.lane.b32.xlu1 %v14843_v29, %s14495_s21 }
 0x1e2   :  { %v631_v25 = vpop.permute.xlu0 %630  ;;  %v15104_v26 = vpop.permute.xlu1 %744 }
 0x1e3   :  { %17672 = vst [vmem:[#allocation31_spill] sm:$0xff] %v15104_v26  ;;  %13081 = vmatpush3.xpose.msk.msra.mxu1 %vm884_vm1, %v631_v25 }
 0x1e4   :  { %568 = vrot.lane.b32.xlu0 %v14867_v38, %s14493_s2  ;;  %538 = vrot.lane.b32.xlu1 %v14888_v44, %s14494_s20 }
 0x1e5   :  { %13090 = vmatprep.subr.mxu1 %v17579_v0 }
 0x1e6   :  { %v521_v23 = vpop.permute.xlu0 %520  ;;  %v15112_v31 = vpop.permute.xlu1 %748  ;;  %13083 = vmatmul.mubr.msk.f32.vlgmr.msra.gmra.mrb[40].mxu1 %vm884_vm1, %v519_v13  ;;  %v15199_v13 = vadd.f32 %v14964_v11, %v14674_v34 }
 0x1e7   :  { %17673 = vst [vmem:[#allocation32_spill] sm:$0xff] %v15112_v31  ;;  %13092 = vmatprep.mubr.msk.f32.mxu1 %vm14492_vm0, %v17579_v0 }
 0x1e8   :  { %600 = vrot.lane.b32.xlu0 %v14867_v38, %s14495_s21  ;;  %570 = vrot.lane.b32.xlu1 %v14888_v44, %s14493_s2  ;;  %17678 = vst [vmem:[#allocation37_spill] sm:$0xff] %v15199_v13 }
 0x1ea   :  { %v15121_v29 = vpop.permute.xlu0 %552  ;;  %v523_v35 = vpop.permute.xlu1 %522 }
 0x1ec   :  { %648 = vrot.lane.b32.xlu0 %v14860_v37, %s14494_s20  ;;  %602 = vrot.lane.b32.xlu1 %v14888_v44, %s14495_s21 }
 0x1ee   :  { %v15127_v36 = vpop.permute.xlu0 %584  ;;  %v15129_v39 = vpop.permute.xlu1 %554 }
 0x1f0   :  { %680 = vrot.lane.b32.xlu0 %v14860_v37, %s14493_s2  ;;  %650 = vrot.lane.b32.xlu1 %v14881_v43, %s14494_s20 }
 0x1f2   :  { %v15135_v38 = vpop.permute.xlu0 %750  ;;  %v15137_v42 = vpop.permute.xlu1 %586 }
 0x1f3   :  { %17674 = vst [vmem:[#allocation33_spill] sm:$0xff] %v15135_v38 }
 0x1f4   :  { %712 = vrot.lane.b32.xlu0 %v14860_v37, %s14495_s21  ;;  %682 = vrot.lane.b32.xlu1 %v14881_v43, %s14493_s2 }
 0x1f6   :  { %v633_v44 = vpop.permute.xlu0 %632  ;;  %v635_v45 = vpop.permute.xlu1 %634 }
 0x1f7   :  { %13086 = vmatpush3.xpose.msk.msra.mxu0 %vm884_vm1, %v633_v44  ;;  %13091 = vmatpush3.xpose.msk.msra.mxu1 %vm884_vm1, %v635_v45 }
 0x1f8   :  { %540 = vrot.lane.b32.xlu0 %v14905_v48, %s14494_s20  ;;  %714 = vrot.lane.b32.xlu1 %v14881_v43, %s14495_s21 }
 0x1f9   :  { %13095 = vmatprep.subr.mxu0 %v17579_v0  ;;  %13100 = vmatprep.subr.mxu1 %v17579_v0 }
 0x1fa   :  { %v15151_v37 = vpop.permute.xlu0 %664  ;;  %13088 = vmatmul.mubr.msk.f32.vlgmr.msra.gmra.mrb[42].mxu0 %vm884_vm1, %v521_v23  ;;  %v15154_v46 = vpop.permute.xlu1 %666  ;;  %13093 = vmatmul.mubr.msk.f32.vlgmr.msra.gmra.mrb[42].mxu1 %vm884_vm1, %v523_v35 }
 0x1fb   :  { %13097 = vmatprep.mubr.msk.f32.mxu0 %vm14492_vm0, %v17579_v0  ;;  %13102 = vmatprep.mubr.msk.f32.mxu1 %vm14492_vm0, %v17579_v0 }
 0x1fc   :  { %572 = vrot.lane.b32.xlu0 %v14905_v48, %s14493_s2  ;;  %542 = vrot.lane.b32.xlu1 %v14922_v54, %s14494_s20 }
 0x1fe   :  { %v15165_v43 = vpop.permute.xlu0 %696  ;;  %v15167_v50 = vpop.permute.xlu1 %698 }
 0x200   :  { %604 = vrot.lane.b32.xlu0 %v14905_v48, %s14495_s21  ;;  %574 = vrot.lane.b32.xlu1 %v14922_v54, %s14493_s2 }
 0x202   :  { %v15173_v51 = vpop.permute.xlu0 %754  ;;  %v15175_v55 = vpop.permute.xlu1 %752 }
 0x203   :  { %17675 = vst [vmem:[#allocation34_spill] sm:$0xff] %v15173_v51  ;;  %17676 = vst [vmem:[#allocation35_spill] sm:$0xff] %v15175_v55 }
 0x204   :  { %652 = vrot.lane.b32.xlu0 %v14898_v47, %s14494_s20  ;;  %606 = vrot.lane.b32.xlu1 %v14922_v54, %s14495_s21 }
 0x206   :  { %v525_v56 = vpop.permute.xlu0 %524  ;;  %v15181_v5 = vpop.permute.xlu1 %756 }
 0x207   :  { %17677 = vst [vmem:[#allocation36_spill] sm:$0xff] %v15181_v5 }
 0x208   :  { %684 = vrot.lane.b32.xlu0 %v14898_v47, %s14493_s2  ;;  %654 = vrot.lane.b32.xlu1 %v14915_v53, %s14494_s20 }
 0x20a   :  { %v15187_v48 = vpop.permute.xlu0 %556  ;;  %v527_v59 = vpop.permute.xlu1 %526 }
 0x20c   :  { %716 = vrot.lane.b32.xlu0 %v14898_v47, %s14495_s21  ;;  %686 = vrot.lane.b32.xlu1 %v14915_v53, %s14493_s2 }
 0x20e   :  { %v15193_v3 = vpop.permute.xlu0 %588  ;;  %v15195_v54 = vpop.permute.xlu1 %558 }
 0x210   :  { %544 = vrot.lane.b32.xlu0 %v14947_v4, %s14494_s20  ;;  %718 = vrot.lane.b32.xlu1 %v14915_v53, %s14495_s21 }
 0x212   :  { %v15205_v15 = vpop.permute.xlu0 %758  ;;  %v15207_v47 = vpop.permute.xlu1 %590 }
 0x213   :  { %17679 = vst [vmem:[#allocation38_spill] sm:$0xff] %v15205_v15 }
 0x214   :  { %576 = vrot.lane.b32.xlu0 %v14947_v4, %s14493_s2  ;;  %764 = vrot.lane.b32.xlu1 %v15199_v13, %s14494_s20 }
 0x216   :  { %v637_v25 = vpop.permute.xlu0 %636  ;;  %v639_v23 = vpop.permute.xlu1 %638 }
 0x217   :  { %13096 = vmatpush3.xpose.msk.msra.mxu0 %vm884_vm1, %v637_v25  ;;  %13101 = vmatpush3.xpose.msk.msra.mxu1 %vm884_vm1, %v639_v23 }
 0x218   :  { %608 = vrot.lane.b32.xlu0 %v14947_v4, %s14495_s21  ;;  %546 = vrot.lane.b32.xlu1 %v14954_v57, %s14494_s20 }
 0x219   :  { %13105 = vmatprep.subr.mxu0 %v17579_v0  ;;  %13110 = vmatprep.subr.mxu1 %v17579_v0 }
 0x21a   :  { %v15221_v53 = vpop.permute.xlu0 %668  ;;  %13098 = vmatmul.mubr.msk.f32.vlgmr.msra.gmra.mrb[44].mxu0 %vm884_vm1, %v525_v56  ;;  %v15224_v11 = vpop.permute.xlu1 %670  ;;  %13103 = vmatmul.mubr.msk.f32.vlgmr.msra.gmra.mrb[44].mxu1 %vm884_vm1, %v527_v59  ;;  %v15251_v56 = vadd.f32 %v14760_v6, %v14674_v34  ;;  %v15269_v6 = vadd.f32 %v15013_v33, %v14674_v34 }
 0x21b   :  { %13107 = vmatprep.mubr.msk.f32.mxu0 %vm14492_vm0, %v17579_v0  ;;  %13112 = vmatprep.mubr.msk.f32.mxu1 %vm14492_vm0, %v17579_v0 }
 0x21c   :  { %656 = vrot.lane.b32.xlu0 %v14932_v60, %s14494_s20  ;;  %578 = vrot.lane.b32.xlu1 %v14954_v57, %s14493_s2  ;;  %17681 = vst [vmem:[#allocation40_spill] sm:$0xff] %v15251_v56  ;;  %17683 = vst [vmem:[#allocation42_spill] sm:$0xff] %v15269_v6 }
 0x21e   :  { %v15235_v4 = vpop.permute.xlu0 %700  ;;  %v15237_v35 = vpop.permute.xlu1 %702 }
 0x220   :  { %688 = vrot.lane.b32.xlu0 %v14932_v60, %s14493_s2  ;;  %610 = vrot.lane.b32.xlu1 %v14954_v57, %s14495_s21  ;;  %v15261_v57 = vadd.f32 %v14959_v52, %v14674_v34 }
 0x222   :  { %v529_v44 = vpop.permute.xlu0 %528  ;;  %v15243_v45 = vpop.permute.xlu1 %760  ;;  %17682 = vst [vmem:[#allocation41_spill] sm:$0xff] %v15261_v57 }
 0x223   :  { %17680 = vst [vmem:[#allocation39_spill] sm:$0xff] %v15243_v45 }
 0x224   :  { %720 = vrot.lane.b32.xlu0 %v14932_v60, %s14495_s21  ;;  %658 = vrot.lane.b32.xlu1 %v14962_v58, %s14494_s20 }
 0x226   :  { %v15253_v59 = vpop.permute.xlu0 %560  ;;  %v531_v25 = vpop.permute.xlu1 %530 }
 0x228   :  { %762 = vrot.lane.b32.xlu0 %v15251_v56, %s14494_s20  ;;  %690 = vrot.lane.b32.xlu1 %v14962_v58, %s14493_s2 }
 0x22a   :  { %v15263_v60 = vpop.permute.xlu0 %592  ;;  %v15265_v23 = vpop.permute.xlu1 %562 }
 0x22c   :  { %v15275_v28 = vpop.f32.mrb[16].mxu1  ;;  %766 = vrot.lane.b32.xlu0 %v15261_v57, %s14494_s20  ;;  %722 = vrot.lane.b32.xlu1 %v14962_v58, %s14495_s21 }
 0x22d   :  { %17685 = vst [vmem:[#allocation44_spill] sm:$0xff] %v15275_v28  ;;  %v12999_v52 = vpop.f32.mrb[17].mxu1 }
 0x22e   :  { %v641_v0 = vpop.permute.xlu0 %640  ;;  %v15281_v27 = vpop.permute.xlu1 %594 }
 0x22f   :  { %13106 = vmatpush3.xpose.msk.msra.mxu0 %vm884_vm1, %v641_v0 }
 0x230   :  { %v15284_v33 = vpop.f32.mrb[18].mxu1  ;;  %770 = vrot.lane.b32.xlu0 %v15269_v6, %s14494_s20  ;;  %768 = vrot.lane.b32.xlu1 %v15273_v30, %s14494_s20 }
 0x231   :  { %17686 = vst [vmem:[#allocation45_spill] sm:$0xff] %v15284_v33  ;;  %v13004_v34 = vpop.f32.mrb[19].mxu1  ;;  %13115 = vmatprep.subr.mxu0 %v17687_v63 }
 0x232   :  { %v15291_v45 = vpop.permute.xlu0 %672  ;;  %13108 = vmatmul.mubr.msk.f32.vlgmr.msra.gmra.mrb[46].mxu0 %vm884_vm1, %v529_v44  ;;  %v643_v58 = vpop.permute.xlu1 %642 }
 0x233   :  { %13111 = vmatpush3.xpose.msk.msra.mxu1 %vm884_vm1, %v643_v58  ;;  %13117 = vmatprep.mubr.msk.f32.mxu0 %vm14492_vm0, %v17687_v63 }
 0x234   :  { %v15297_v0 = vpop.f32.mrb[20].mxu1  ;;  %13120 = vmatprep.subr.mxu1 %v17687_v63 }
 0x235   :  { %17688 = vst [vmem:[#allocation46_spill] sm:$0xff] %v15297_v0  ;;  %v13009_v52 = vpop.f32.mrb[21].mxu1 }
 0x236   :  { %v15300_v5 = vpop.permute.xlu0 %704  ;;  %v15302_v34 = vpop.permute.xlu1 %674  ;;  %13113 = vmatmul.mubr.msk.f32.vlgmr.msra.gmra.mrb[46].mxu1 %vm884_vm1, %v531_v25 }
 0x237   :  { %13122 = vmatprep.mubr.msk.f32.mxu1 %vm14492_vm0, %v17687_v63 }
 0x238   :  { %v15307_v44 = vpop.f32.mrb[22].mxu1 }
 0x239   :  { %17689 = vst [vmem:[#allocation47_spill] sm:$0xff] %v15307_v44  ;;  %v13014_v58 = vpop.f32.mrb[23].mxu1  ;;  %v5631_v19 = vsel %vm5621_vm2, %v15307_v44, -inf }
 0x23a   :  { %v533_v55 = vpop.permute.xlu0 %532  ;;  %v15309_v31 = vpop.permute.xlu1 %706 }
 0x23c   :  { %v15311_v15 = vpop.f32.mrb[24].mxu1 }
 0x23d   :  { %17690 = vst [vmem:[#allocation48_spill] sm:$0xff] %v15311_v15  ;;  %v13019_v51 = vpop.f32.mrb[25].mxu1 }
 0x23e   :  { %v15313_v38 = vpop.permute.xlu0 %564  ;;  %v535_v52 = vpop.permute.xlu1 %534 }
 0x240   :  { %v15315_v22 = vpop.f32.mrb[26].mxu1 }
 0x241   :  { %17691 = vst [vmem:[#allocation49_spill] sm:$0xff] %v15315_v22  ;;  %v13024_v26 = vpop.f32.mrb[27].mxu1 }
 0x242   :  { %v15317_v8 = vpop.permute.xlu0 %596  ;;  %v15319_v25 = vpop.permute.xlu1 %566 }
 0x244   :  { %v15321_v10 = vpop.f32.mrb[28].mxu1 }
 0x245   :  { %17692 = vst [vmem:[#allocation50_spill] sm:$0xff] %v15321_v10  ;;  %v13029_v6 = vpop.f32.mrb[29].mxu1 }
 0x246   :  { %v645_v58 = vpop.permute.xlu0 %644  ;;  %v15323_v30 = vpop.permute.xlu1 %598 }
 0x247   :  { %13116 = vmatpush3.xpose.msk.msra.mxu0 %vm884_vm1, %v645_v58 }
 0x248   :  { %v15326_v57 = vpop.f32.mrb[30].mxu1  ;;  %13125 = vmatprep.subr.mxu0 %v17687_v63 }
 0x249   :  { %17693 = vst [vmem:[#allocation51_spill] sm:$0xff] %v15326_v57  ;;  %v13034_v51 = vpop.f32.mrb[31].mxu1 }
 0x24a   :  { %v15329_v56 = vpop.permute.xlu0 %676  ;;  %13118 = vmatmul.mubr.msk.f32.vlgmr.msra.gmra.mrb[48].mxu0 %vm884_vm1, %v533_v55  ;;  %v647_v26 = vpop.permute.xlu1 %646  ;;  %v5622_v55 = vsel %vm5621_vm2, %v15275_v28, -inf }
 0x24b   :  { %13121 = vmatpush3.xpose.msk.msra.mxu1 %vm884_vm1, %v647_v26  ;;  %13127 = vmatprep.mubr.msk.f32.mxu0 %vm14492_vm0, %v17687_v63 }
 0x24c   :  { %v15335_v6 = vpop.f32.mrb[32].mxu0  ;;  %13130 = vmatprep.subr.mxu1 %v17687_v63 }
 0x24d   :  { %17694 = vst [vmem:[#allocation52_spill] sm:$0xff] %v15335_v6  ;;  %v13039_v58 = vpop.f32.mrb[33].mxu0 }
 0x24e   :  { %v15338_v13 = vpop.permute.xlu0 %708  ;;  %v15340_v2 = vpop.permute.xlu1 %678  ;;  %13123 = vmatmul.mubr.msk.f32.vlgmr.msra.gmra.mrb[48].mxu1 %vm884_vm1, %v535_v52  ;;  %v5628_v58 = vsel %vm5621_vm2, %v15297_v0, -inf  ;;  %v5625_v52 = vsel %vm5621_vm2, %v15284_v33, -inf }
 0x24f   :  { %5623 = vmax.xlane.f32.xlu0 %v5622_v55  ;;  %13132 = vmatprep.mubr.msk.f32.mxu1 %vm14492_vm0, %v17687_v63  ;;  %v5634_v55 = vsel %vm5621_vm2, %v15311_v15, -inf  ;;  %v5643_v15 = vsel %vm5621_vm2, %v15326_v57, -inf }
 0x250   :  { %v15347_v51 = vpop.f32.mrb[32].mxu1 }
 0x251   :  { %17695 = vst [vmem:[#allocation53_spill] sm:$0xff] %v15347_v51  ;;  %v13044_v26 = vpop.f32.mrb[33].mxu1 }
 0x252   :  { %v537_v32 = vpop.permute.xlu0 %536  ;;  %v15349_v61 = vpop.permute.xlu1 %710 }
 0x253   :  { %5629 = vmax.xlane.f32.xlu0 %v5628_v58  ;;  %v5637_v58 = vsel %vm5621_vm2, %v15315_v22, -inf }
 0x254   :  { %5626 = vmax.xlane.f32.xlu1 %v5625_v52  ;;  %v15355_v12 = vpop.f32.mrb[34].mxu0  ;;  %v5640_v52 = vsel %vm5621_vm2, %v15321_v10, -inf }
 0x255   :  { %17696 = vst [vmem:[#allocation54_spill] sm:$0xff] %v15355_v12  ;;  %v13049_v62 = vpop.f32.mrb[35].mxu0 }
 0x256   :  { %v15359_v40 = vpop.permute.xlu0 %568  ;;  %v539_v26 = vpop.permute.xlu1 %538 }
 0x257   :  { %5632 = vmax.xlane.f32.xlu0 %v5631_v19 }
 0x258   :  { %5635 = vmax.xlane.f32.xlu1 %v5634_v55  ;;  %v15365_v9 = vpop.f32.mrb[34].mxu1  ;;  %v5646_v55 = vsel %vm5621_vm2, %v15335_v6, -inf }
 0x259   :  { %17697 = vst [vmem:[#allocation55_spill] sm:$0xff] %v15365_v9  ;;  %v13054_v14 = vpop.f32.mrb[35].mxu1 }
 0x25a   :  { %v15369_v0 = vpop.permute.xlu0 %600  ;;  %v15371_v62 = vpop.permute.xlu1 %570  ;;  %v5649_v14 = vsel %vm5621_vm2, %v15347_v51, -inf }
 0x25b   :  { %5638 = vmax.xlane.f32.xlu0 %v5637_v58 }
 0x25c   :  { %5641 = vmax.xlane.f32.xlu1 %v5640_v52  ;;  %v15375_v19 = vpop.f32.mrb[36].mxu0  ;;  %v5652_v52 = vsel %vm5621_vm2, %v15355_v12, -inf }
 0x25d   :  { %17698 = vst [vmem:[#allocation56_spill] sm:$0xff] %v15375_v19  ;;  %v13059_v22 = vpop.f32.mrb[37].mxu0 }
 0x25e   :  { %v649_v44 = vpop.permute.xlu0 %648  ;;  %v15379_v33 = vpop.permute.xlu1 %602 }
 0x25f   :  { %13126 = vmatpush3.xpose.msk.msra.mxu0 %vm884_vm1, %v649_v44  ;;  %5644 = vmax.xlane.f32.xlu0 %v5643_v15  ;;  %v5655_v15 = vsel %vm5621_vm2, %v15365_v9, -inf }
 0x260   :  { %5647 = vmax.xlane.f32.xlu1 %v5646_v55  ;;  %v15384_v58 = vpop.f32.mrb[36].mxu1  ;;  %13135 = vmatprep.subr.mxu0 %v17687_v63 }
 0x261   :  { %17699 = vst [vmem:[#allocation57_spill] sm:$0xff] %v15384_v58  ;;  %v13064_v57 = vpop.f32.mrb[37].mxu1 }
 0x262   :  { %v15389_v6 = vpop.permute.xlu0 %680  ;;  %13128 = vmatmul.mubr.msk.f32.vlgmr.msra.gmra.mrb[50].mxu0 %vm884_vm1, %v537_v32  ;;  %v651_v22 = vpop.permute.xlu1 %650  ;;  %v5658_v57 = vsel %vm5621_vm2, %v15375_v19, -inf }
 0x263   :  { %13131 = vmatpush3.xpose.msk.msra.mxu1 %vm884_vm1, %v651_v22  ;;  %5650 = vmax.xlane.f32.xlu0 %v5649_v14  ;;  %v5661_v14 = vsel %vm5621_vm2, %v15384_v58, -inf }
 0x264   :  { %5653 = vmax.xlane.f32.xlu1 %v5652_v52  ;;  %v15395_v44 = vpop.f32.mrb[38].mxu0  ;;  %13137 = vmatprep.mubr.msk.f32.mxu0 %vm14492_vm0, %v17687_v63 }
 0x265   :  { %17700 = vst [vmem:[#allocation58_spill] sm:$0xff] %v15395_v44  ;;  %13140 = vmatprep.subr.mxu1 %v17687_v63  ;;  %v13069_v55 = vpop.f32.mrb[39].mxu0  ;;  %v5664_v22 = vsel %vm5621_vm2, %v15395_v44, -inf }
 0x266   :  { %v15402_v32 = vpop.permute.xlu0 %712  ;;  %v15404_v51 = vpop.permute.xlu1 %682  ;;  %13133 = vmatmul.mubr.msk.f32.vlgmr.msra.gmra.mrb[50].mxu1 %vm884_vm1, %v539_v26 }
 0x267   :  { %5656 = vmax.xlane.f32.xlu0 %v5655_v15  ;;  %13142 = vmatprep.mubr.msk.f32.mxu1 %vm14492_vm0, %v17687_v63 }
 0x268   :  { %5659 = vmax.xlane.f32.xlu1 %v5658_v57  ;;  %v15411_v52 = vpop.f32.mrb[38].mxu1 }
 0x269   :  { %17701 = vst [vmem:[#allocation59_spill] sm:$0xff] %v15411_v52  ;;  %v13074_v55 = vpop.f32.mrb[39].mxu1  ;;  %v5667_v26 = vsel %vm5621_vm2, %v15411_v52, -inf }
 0x26a   :  { %v541_v19 = vpop.permute.xlu0 %540  ;;  %v15415_v9 = vpop.permute.xlu1 %714 }
 0x26b   :  { %5662 = vmax.xlane.f32.xlu0 %v5661_v14 }
 0x26c   :  { %5665 = vmax.xlane.f32.xlu1 %v5664_v22 }
 0x26e   :  { %v15419_v15 = vpop.permute.xlu0 %572  ;;  %v543_v57 = vpop.permute.xlu1 %542 }
 0x26f   :  { %5668 = vmax.xlane.f32.xlu0 %v5667_v26 }
 0x272   :  { %v15421_v12 = vpop.permute.xlu0 %604  ;;  %v15423_v58 = vpop.permute.xlu1 %574 }
 0x276   :  { %v653_v10 = vpop.permute.xlu0 %652  ;;  %v15425_v28 = vpop.permute.xlu1 %606 }
 0x277   :  { %17702 = vst [vmem:[#allocation60_spill] sm:$0xff] %v15425_v28  ;;  %13136 = vmatpush3.xpose.msk.msra.mxu0 %vm884_vm1, %v653_v10 }
 0x278   :  { %13145 = vmatprep.subr.mxu0 %v17687_v63 }
 0x27a   :  { %v15429_v14 = vpop.permute.xlu0 %684  ;;  %13138 = vmatmul.mubr.msk.f32.vlgmr.msra.gmra.mrb[52].mxu0 %vm884_vm1, %v541_v19  ;;  %v655_v22 = vpop.permute.xlu1 %654 }
 0x27b   :  { %13141 = vmatpush3.xpose.msk.msra.mxu1 %vm884_vm1, %v655_v22  ;;  %13147 = vmatprep.mubr.msk.f32.mxu0 %vm14492_vm0, %v17687_v63 }
 0x27c   :  { %13150 = vmatprep.subr.mxu1 %v17687_v63 }
 0x27e   :  { %v15436_v55 = vpop.permute.xlu0 %716  ;;  %v15438_v26 = vpop.permute.xlu1 %686  ;;  %13143 = vmatmul.mubr.msk.f32.vlgmr.msra.gmra.mrb[52].mxu1 %vm884_vm1, %v543_v57 }
 0x27f   :  { %13152 = vmatprep.mubr.msk.f32.mxu1 %vm14492_vm0, %v17687_v63 }
 0x282   :  { %v545_v10 = vpop.permute.xlu0 %544  ;;  %v15443_v52 = vpop.permute.xlu1 %718 }
 0x286   :  { %v15445_v19 = vpop.permute.xlu0 %576  ;;  %v15447_v22 = vpop.permute.xlu1 %764 }
 0x287   :  { %17703 = vst [vmem:[#allocation61_spill] sm:$0xff] %v15447_v22 }
 0x28a   :  { %v15449_v44 = vpop.permute.xlu0 %608  ;;  %v547_v49 = vpop.permute.xlu1 %546 }
 0x28e   :  { %v657_v28 = vpop.permute.xlu0 %656  ;;  %v15451_v41 = vpop.permute.xlu1 %578 }
 0x28f   :  { %13146 = vmatpush3.xpose.msk.msra.mxu0 %vm884_vm1, %v657_v28 }
 0x290   :  { %13155 = vmatprep.subr.mxu0 %v17687_v63 }
 0x292   :  { %13148 = vmatmul.mubr.msk.f32.vlgmr.msra.gmra.mrb[54].mxu0 %vm884_vm1, %v545_v10  ;;  %v15456_v57 = vpop.permute.xlu1 %610 }
 0x293   :  { %13156 = vmatpush3.xpose.msk.msra.mxu0 %vm884_vm1, %v15077_v17  ;;  %13157 = vmatprep.mubr.msk.f32.mxu0 %vm14492_vm0, %v17687_v63 }
 0x294   :  { %13165 = vmatprep.subr.mxu0 %v17687_v63 }
 0x296   :  { %13158 = vmatmul.mubr.msk.f32.vlgmr.msra.gmra.mrb[56].mxu0 %vm884_vm1, %v15049_v1  ;;  %v659_v22 = vpop.permute.xlu1 %658 }
 0x297   :  { %13151 = vmatpush3.xpose.msk.msra.mxu1 %vm884_vm1, %v659_v22  ;;  %13166 = vmatpush3.xpose.msk.msra.mxu0 %vm884_vm1, %v15151_v37 }
 0x298   :  { %13167 = vmatprep.mubr.msk.f32.mxu0 %vm14492_vm0, %v17687_v63  ;;  %13175 = vmatprep.subr.mxu0 %v17687_v63 }
 0x299   :  { %13160 = vmatprep.subr.mxu1 %v17687_v63 }
 0x29a   :  { %13168 = vmatmul.mubr.msk.f32.vlgmr.msra.gmra.mrb[58].mxu0 %vm884_vm1, %v15121_v29  ;;  %13153 = vmatmul.mubr.msk.f32.vlgmr.msra.gmra.mrb[54].mxu1 %vm884_vm1, %v547_v49 }
 0x29b   :  { %13161 = vmatpush3.xpose.msk.msra.mxu1 %vm884_vm1, %v15090_v21  ;;  %13176 = vmatpush3.xpose.msk.msra.mxu0 %vm884_vm1, %v15221_v53  ;;  %v17710_v53 = vld [vmem:[#allocation44_spill] sm:$0xff] }
 0x29c   :  { %13162 = vmatprep.mubr.msk.f32.mxu1 %vm14492_vm0, %v17687_v63  ;;  %13177 = vmatprep.mubr.msk.f32.mxu0 %vm14492_vm0, %v17687_v63 }
 0x29d   :  { %13185 = vmatprep.subr.mxu0 %v17687_v63  ;;  %13170 = vmatprep.subr.mxu1 %v17687_v63 }
 0x29e   :  { %13178 = vmatmul.mubr.msk.f32.vlgmr.msra.gmra.mrb[60].mxu0 %vm884_vm1, %v15187_v48  ;;  %13163 = vmatmul.mubr.msk.f32.vlgmr.msra.gmra.mrb[56].mxu1 %vm884_vm1, %v15069_v16 }
 0x29f   :  { %13171 = vmatpush3.xpose.msk.msra.mxu1 %vm884_vm1, %v15154_v46  ;;  %13186 = vmatpush3.xpose.msk.msra.mxu0 %vm884_vm1, %v15291_v45 }
 0x2a0   :  { %13172 = vmatprep.mubr.msk.f32.mxu1 %vm14492_vm0, %v17687_v63  ;;  %13187 = vmatprep.mubr.msk.f32.mxu0 %vm14492_vm0, %v17687_v63 }
 0x2a1   :  { %13180 = vmatprep.subr.mxu1 %v17687_v63  ;;  %13195 = vmatprep.subr.mxu0 %v17687_v63 }
 0x2a2   :  { %13173 = vmatmul.mubr.msk.f32.vlgmr.msra.gmra.mrb[58].mxu1 %vm884_vm1, %v15129_v39  ;;  %13188 = vmatmul.mubr.msk.f32.vlgmr.msra.gmra.mrb[62].mxu0 %vm884_vm1, %v15253_v59 }
 0x2a3   :  { %13181 = vmatpush3.xpose.msk.msra.mxu1 %vm884_vm1, %v15224_v11  ;;  %13196 = vmatpush3.xpose.msk.msra.mxu0 %vm884_vm1, %v15329_v56 }
 0x2a4   :  { %13182 = vmatprep.mubr.msk.f32.mxu1 %vm14492_vm0, %v17687_v63  ;;  %13197 = vmatprep.mubr.msk.f32.mxu0 %vm14492_vm0, %v17687_v63 }
 0x2a5   :  { %13190 = vmatprep.subr.mxu1 %v17687_v63  ;;  %13205 = vmatprep.subr.mxu0 %v17687_v63 }
 0x2a6   :  { %13183 = vmatmul.mubr.msk.f32.vlgmr.msra.gmra.mrb[60].mxu1 %vm884_vm1, %v15195_v54  ;;  %13198 = vmatmul.mubr.msk.f32.vlgmr.msra.gmra.mrb[64].mxu0 %vm884_vm1, %v15313_v38 }
 0x2a7   :  { %13191 = vmatpush3.xpose.msk.msra.mxu1 %vm884_vm1, %v15302_v34  ;;  %13206 = vmatpush3.xpose.msk.msra.mxu0 %vm884_vm1, %v15389_v6  ;;  %v17712_v6 = vld [vmem:[#allocation45_spill] sm:$0xff] }
 0x2a8   :  { %13192 = vmatprep.mubr.msk.f32.mxu1 %vm14492_vm0, %v17687_v63  ;;  %13207 = vmatprep.mubr.msk.f32.mxu0 %vm14492_vm0, %v17687_v63 }
 0x2a9   :  { %v15525_v28 = vpop.f32.mrb[40].mxu0  ;;  %13200 = vmatprep.subr.mxu1 %v17687_v63  ;;  %13215 = vmatprep.subr.mxu0 %v17687_v63 }
 0x2aa   :  { %v13079_v49 = vpop.f32.mrb[41].mxu0  ;;  %13193 = vmatmul.mubr.msk.f32.vlgmr.msra.gmra.mrb[62].mxu1 %vm884_vm1, %v15265_v23  ;;  %13208 = vmatmul.mubr.msk.f32.vlgmr.msra.gmra.mrb[66].mxu0 %vm884_vm1, %v15359_v40  ;;  %v5670_v1 = vsel %vm5621_vm2, %v15525_v28, -inf  ;;  %v689_v40 = vpop.permute.xlu0 %688 }
 0x2ab   :  { %13201 = vmatpush3.xpose.msk.msra.mxu1 %vm884_vm1, %v15340_v2  ;;  %13216 = vmatpush3.xpose.msk.msra.mxu0 %vm884_vm1, %v15429_v14  ;;  %v691_v2 = vpop.permute.xlu1 %690 }
 0x2ac   :  { %5671 = vmax.xlane.f32.xlu1 %v5670_v1  ;;  %13202 = vmatprep.mubr.msk.f32.mxu1 %vm14492_vm0, %v17687_v63 }
 0x2ad   :  { %13217 = vmatprep.mubr.msk.f32.mxu0 %vm14492_vm0, %v17687_v63  ;;  %13210 = vmatprep.subr.mxu1 %v17687_v63 }
 0x2ae   :  { %13203 = vmatmul.mubr.msk.f32.vlgmr.msra.gmra.mrb[64].mxu1 %vm884_vm1, %v15319_v25  ;;  %13218 = vmatmul.mubr.msk.f32.vlgmr.msra.gmra.mrb[68].mxu0 %vm884_vm1, %v15419_v15  ;;  %v721_v21 = vpop.permute.xlu0 %720 }
 0x2af   :  { %13225 = vmatprep.subr.mxu0 %v17687_v63  ;;  %13211 = vmatpush3.xpose.msk.msra.mxu1 %vm884_vm1, %v15404_v51 }
 0x2b0   :  { %13226 = vmatpush3.xpose.msk.msra.mxu0 %vm884_vm1, %v689_v40  ;;  %13212 = vmatprep.mubr.msk.f32.mxu1 %vm14492_vm0, %v17687_v63  ;;  %v17714_v40 = vld [vmem:[#allocation47_spill] sm:$0xff] }
 0x2b1   :  { %13227 = vmatprep.mubr.msk.f32.mxu0 %vm14492_vm0, %v17687_v63  ;;  %13220 = vmatprep.subr.mxu1 %v17687_v63 }
 0x2b2   :  { %13213 = vmatmul.mubr.msk.f32.vlgmr.msra.gmra.mrb[66].mxu1 %vm884_vm1, %v15371_v62  ;;  %13235 = vmatprep.subr.mxu0 %v17687_v63  ;;  %v15713_v37 = vpop.permute.xlu0 %762 }
 0x2b3   :  { %13228 = vmatmul.mubr.msk.f32.vlgmr.msra.gmra.mrb[70].mxu0 %vm884_vm1, %v15445_v19  ;;  %13221 = vmatpush3.xpose.msk.msra.mxu1 %vm884_vm1, %v15438_v26 }
 0x2b4   :  { %13236 = vmatpush3.xpose.msk.msra.mxu0 %vm884_vm1, %v15088_v20  ;;  %13222 = vmatprep.mubr.msk.f32.mxu1 %vm14492_vm0, %v17687_v63 }
 0x2b5   :  { %13237 = vmatprep.mubr.msk.f32.mxu0 %vm14492_vm0, %v17687_v63  ;;  %13230 = vmatprep.subr.mxu1 %v17687_v63 }
 0x2b6   :  { %13223 = vmatmul.mubr.msk.f32.vlgmr.msra.gmra.mrb[68].mxu1 %vm884_vm1, %v15423_v58  ;;  %13245 = vmatprep.subr.mxu0 %v17687_v63  ;;  %v15715_v46 = vpop.permute.xlu0 %766  ;;  %v17713_v58 = vld [vmem:[#allocation46_spill] sm:$0xff] }
 0x2b7   :  { %13238 = vmatmul.mubr.msk.f32.vlgmr.msra.gmra.mrb[72].mxu0 %vm884_vm1, %v15055_v7  ;;  %13231 = vmatpush3.xpose.msk.msra.mxu1 %vm884_vm1, %v691_v2  ;;  %17708 = vst [vmem:[#allocation62_spill] sm:$0xff] %v15715_v46 }
 0x2b8   :  { %13246 = vmatpush3.xpose.msk.msra.mxu0 %vm884_vm1, %v15165_v43  ;;  %13232 = vmatprep.mubr.msk.f32.mxu1 %vm14492_vm0, %v17687_v63 }
 0x2b9   :  { %v15581_v16 = vpop.f32.mrb[40].mxu1  ;;  %13247 = vmatprep.mubr.msk.f32.mxu0 %vm14492_vm0, %v17687_v63  ;;  %13240 = vmatprep.subr.mxu1 %v17687_v63 }
 0x2ba   :  { %v13084_v17 = vpop.f32.mrb[41].mxu1  ;;  %13233 = vmatmul.mubr.msk.f32.vlgmr.msra.gmra.mrb[70].mxu1 %vm884_vm1, %v15451_v41  ;;  %13255 = vmatprep.subr.mxu0 %v17687_v63  ;;  %v5673_v7 = vsel %vm5621_vm2, %v15581_v16, -inf  ;;  %v15721_v48 = vpop.permute.xlu0 %770 }
 0x2bb   :  { %13248 = vmatmul.mubr.msk.f32.vlgmr.msra.gmra.mrb[74].mxu0 %vm884_vm1, %v15127_v36  ;;  %13241 = vmatpush3.xpose.msk.msra.mxu1 %vm884_vm1, %v15098_v24  ;;  %v17706_v24 = vld [vmem:[#allocation18_spill] sm:$0xff]  ;;  %17709 = vst [vmem:[#allocation63_spill] sm:$0xff] %v15721_v48 }
 0x2bc   :  { %13256 = vmatpush3.xpose.msk.msra.mxu0 %vm884_vm1, %v15235_v4  ;;  %5674 = vmax.xlane.f32.xlu0 %v5673_v7 }
 0x2bd   :  { %13242 = vmatprep.mubr.msk.f32.mxu1 %vm14492_vm0, %v17687_v63  ;;  %13257 = vmatprep.mubr.msk.f32.mxu0 %vm14492_vm0, %v17687_v63 }
 0x2be   :  { %13243 = vmatmul.mubr.msk.f32.vlgmr.msra.gmra.mrb[72].mxu1 %vm884_vm1, %v15080_v18  ;;  %13250 = vmatprep.subr.mxu1 %v17687_v63 }
 0x2bf   :  { %13258 = vmatmul.mubr.msk.f32.vlgmr.msra.gmra.mrb[76].mxu0 %vm884_vm1, %v15193_v3  ;;  %13265 = vmatprep.subr.mxu0 %v17687_v63 }
 0x2c0   :  { %13251 = vmatpush3.xpose.msk.msra.mxu1 %vm884_vm1, %v15167_v50  ;;  %13266 = vmatpush3.xpose.msk.msra.mxu0 %vm884_vm1, %v15300_v5 }
 0x2c1   :  { %13252 = vmatprep.mubr.msk.f32.mxu1 %vm14492_vm0, %v17687_v63  ;;  %13267 = vmatprep.mubr.msk.f32.mxu0 %vm14492_vm0, %v17687_v63 }
 0x2c2   :  { %13260 = vmatprep.subr.mxu1 %v17687_v63  ;;  %13275 = vmatprep.subr.mxu0 %v17687_v63 }
 0x2c3   :  { %13253 = vmatmul.mubr.msk.f32.vlgmr.msra.gmra.mrb[74].mxu1 %vm884_vm1, %v15137_v42  ;;  %13268 = vmatmul.mubr.msk.f32.vlgmr.msra.gmra.mrb[78].mxu0 %vm884_vm1, %v15263_v60 }
 0x2c4   :  { %13261 = vmatpush3.xpose.msk.msra.mxu1 %vm884_vm1, %v15237_v35  ;;  %13276 = vmatpush3.xpose.msk.msra.mxu0 %vm884_vm1, %v15338_v13 }
 0x2c5   :  { %13262 = vmatprep.mubr.msk.f32.mxu1 %vm14492_vm0, %v17687_v63  ;;  %13277 = vmatprep.mubr.msk.f32.mxu0 %vm14492_vm0, %v17687_v63 }
 0x2c6   :  { %13270 = vmatprep.subr.mxu1 %v17687_v63  ;;  %13285 = vmatprep.subr.mxu0 %v17687_v63 }
 0x2c7   :  { %13263 = vmatmul.mubr.msk.f32.vlgmr.msra.gmra.mrb[76].mxu1 %vm884_vm1, %v15207_v47  ;;  %13278 = vmatmul.mubr.msk.f32.vlgmr.msra.gmra.mrb[80].mxu0 %vm884_vm1, %v15317_v8 }
 0x2c8   :  { %13271 = vmatpush3.xpose.msk.msra.mxu1 %vm884_vm1, %v15309_v31  ;;  %13286 = vmatpush3.xpose.msk.msra.mxu0 %vm884_vm1, %v15402_v32 }
 0x2c9   :  { %13272 = vmatprep.mubr.msk.f32.mxu1 %vm14492_vm0, %v17687_v63  ;;  %13287 = vmatprep.mubr.msk.f32.mxu0 %vm14492_vm0, %v17687_v63 }
 0x2ca   :  { %13280 = vmatprep.subr.mxu1 %v17687_v63  ;;  %13295 = vmatprep.subr.mxu0 %v17687_v63 }
 0x2cb   :  { %13273 = vmatmul.mubr.msk.f32.vlgmr.msra.gmra.mrb[78].mxu1 %vm884_vm1, %v15281_v27  ;;  %13288 = vmatmul.mubr.msk.f32.vlgmr.msra.gmra.mrb[82].mxu0 %vm884_vm1, %v15369_v0 }
 0x2cc   :  { %13281 = vmatpush3.xpose.msk.msra.mxu1 %vm884_vm1, %v15349_v61  ;;  %13296 = vmatpush3.xpose.msk.msra.mxu0 %vm884_vm1, %v15436_v55 }
 0x2cd   :  { %v15653_v41 = vpop.f32.mrb[42].mxu0  ;;  %v15655_v8 = vpop.f32.mrb[42].mxu1  ;;  %13282 = vmatprep.mubr.msk.f32.mxu1 %vm14492_vm0, %v17687_v63  ;;  %13297 = vmatprep.mubr.msk.f32.mxu0 %vm14492_vm0, %v17687_v63 }
 0x2ce   :  { %v13089_v27 = vpop.f32.mrb[43].mxu0  ;;  %v13094_v18 = vpop.f32.mrb[43].mxu1  ;;  %13290 = vmatprep.subr.mxu1 %v17687_v63  ;;  %13305 = vmatprep.subr.mxu0 %v17687_v63  ;;  %v5676_v61 = vsel %vm5621_vm2, %v15653_v41, -inf  ;;  %v5679_v20 = vsel %vm5621_vm2, %v15655_v8, -inf }
 0x2cf   :  { %13283 = vmatmul.mubr.msk.f32.vlgmr.msra.gmra.mrb[80].mxu1 %vm884_vm1, %v15323_v30  ;;  %13298 = vmatmul.mubr.msk.f32.vlgmr.msra.gmra.mrb[84].mxu0 %vm884_vm1, %v15421_v12  ;;  %v17704_v30 = vld [vmem:[#allocation17_spill] sm:$0xff]  ;;  %v17705_v12 = vld [vmem:[#allocation60_spill] sm:$0xff] }
 0x2d0   :  { %13291 = vmatpush3.xpose.msk.msra.mxu1 %vm884_vm1, %v15415_v9  ;;  %13306 = vmatpush3.xpose.msk.msra.mxu0 %vm884_vm1, %v721_v21  ;;  %v723_v9 = vpop.permute.xlu1 %722  ;;  %17707 = vst [vmem:[#allocation60_spill] sm:$0xff] %v15713_v37  ;;  %v17715_v18 = vld [vmem:[#allocation48_spill] sm:$0xff] }
 0x2d1   :  { %5677 = vmax.xlane.f32.xlu1 %v5676_v61  ;;  %5680 = vmax.xlane.f32.xlu0 %v5679_v20 }
 0x2d2   :  { %13292 = vmatprep.mubr.msk.f32.mxu1 %vm14492_vm0, %v17687_v63  ;;  %13307 = vmatprep.mubr.msk.f32.mxu0 %vm14492_vm0, %v17687_v63 }
 0x2d3   :  { %13293 = vmatmul.mubr.msk.f32.vlgmr.msra.gmra.mrb[82].mxu1 %vm884_vm1, %v15379_v33  ;;  %13300 = vmatprep.subr.mxu1 %v17687_v63 }
 0x2d4   :  { %13308 = vmatmul.mubr.msk.f32.vlgmr.msra.gmra.mrb[86].mxu0 %vm884_vm1, %v15449_v44  ;;  %13315 = vmatprep.subr.mxu0 %v17687_v63  ;;  %v15732_v59 = vpop.permute.xlu1 %768 }
 0x2d5   :  { %13301 = vmatpush3.xpose.msk.msra.mxu1 %vm884_vm1, %v15443_v52  ;;  %13316 = vmatpush3.msra.mxu0 %v17704_v30  ;;  %17711 = vst [vmem:[#allocation44_spill] sm:$0xff] %v15732_v59 }
 0x2d6   :  { %13302 = vmatprep.mubr.msk.f32.mxu1 %vm14492_vm0, %v17687_v63  ;;  %13310 = vmatprep.subr.mxu1 %v17687_v63 }
 0x2d7   :  { %13317 = vmatprep.mubr.msk.f32.mxu0 %vm14492_vm0, %v17687_v63  ;;  %13325 = vmatprep.subr.mxu0 %v17687_v63 }
 0x2d8   :  { %13303 = vmatmul.mubr.msk.f32.vlgmr.msra.gmra.mrb[84].mxu1 %vm884_vm1, %v17705_v12 }
 0x2d9   :  { %13311 = vmatpush3.xpose.msk.msra.mxu1 %vm884_vm1, %v723_v9  ;;  %13312 = vmatprep.mubr.msk.f32.mxu1 %vm14492_vm0, %v17687_v63 }
 0x2da   :  { %13320 = vmatprep.subr.mxu1 %v17687_v63 }
 0x2dc   :  { %13313 = vmatmul.mubr.msk.f32.vlgmr.msra.gmra.mrb[86].mxu1 %vm884_vm1, %v15456_v57  ;;  %v5624_v47 = vpop.xlane.xlu0 %5623 }
 0x2dd   :  { %13321 = vmatpush3.msra.mxu1 %v17706_v24  ;;  %13322 = vmatprep.mubr.msk.f32.mxu1 %vm14492_vm0, %v17687_v63  ;;  %v5814_v11 = vsub.f32 %v17710_v53, %v5624_v47  ;;  %v17716_v53 = vld [vmem:[#allocation49_spill] sm:$0xff] }
 0x2de   :  { %13330 = vmatprep.subr.mxu1 %v17687_v63 }
 0x2df   :  { %v5878_v4 = vmul.f32 1.442695, %v5814_v11 }
 0x2e0   :  { %v5630_v62 = vpop.xlane.xlu0 %5629 }
 0x2e1   :  { %14004 = vpow2.f32 %v5878_v4  ;;  %v5627_v34 = vpop.xlane.xlu1 %5626  ;;  %v5816_v44 = vsub.f32 %v17713_v58, %v5630_v62  ;;  %v17717_v4 = vld [vmem:[#allocation50_spill] sm:$0xff]  ;;  %v17718_v62 = vld [vmem:[#allocation51_spill] sm:$0xff] }
 0x2e2   :  { %v5815_v51 = vsub.f32 %v17712_v6, %v5627_v34 }
 0x2e3   :  { %v5882_v52 = vmul.f32 1.442695, %v5816_v44 }
 0x2e4   :  { %v5880_v32 = vmul.f32 1.442695, %v5815_v51  ;;  %v5633_v57 = vpop.xlane.xlu0 %5632 }
 0x2e5   :  { %v5817_v2 = vsub.f32 %v17714_v40, %v5633_v57  ;;  %v5636_v17 = vpop.xlane.xlu1 %5635 }
 0x2e6   :  { %14006 = vpow2.f32 %v5880_v32  ;;  %v5818_v61 = vsub.f32 %v17715_v18, %v5636_v17 }
 0x2e7   :  { %14008 = vpow2.f32 %v5882_v52  ;;  %v5884_v27 = vmul.f32 1.442695, %v5817_v2 }
 0x2e8   :  { %v5886_v20 = vmul.f32 1.442695, %v5818_v61  ;;  %v17720_v61 = vld [vmem:[#allocation54_spill] sm:$0xff] }
 0x2e9   :  { %14010 = vpow2.f32 %v5884_v27  ;;  %v17719_v27 = vld [vmem:[#allocation52_spill] sm:$0xff] }
 0x2ea   :  { %14012 = vpow2.f32 %v5886_v20 }
 0x2eb   :  { %v15738_v0 = vpop.eup %14004 }
 0x2ec   :  { %v6006_v25 = vsel %vm5621_vm2, %v15738_v0, 0.0 }
 0x2ed   :  { %v15705_v31 = vpop.f32.mrb[44].mxu0  ;;  %v15707_v29 = vpop.f32.mrb[44].mxu1 }
 0x2ee   :  { %v13099_v36 = vpop.f32.mrb[45].mxu0  ;;  %v5682_v39 = vsel %vm5621_vm2, %v15705_v31, -inf  ;;  %v13104_v38 = vpop.f32.mrb[45].mxu1  ;;  %v5685_v42 = vsel %vm5621_vm2, %v15707_v29, -inf }
 0x2ef   :  { %5683 = vmax.xlane.f32.xlu1 %v5682_v39  ;;  %5686 = vmax.xlane.f32.xlu0 %v5685_v42 }
 0x2f0   :  { %v15752_v22 = vpop.eup %14006 }
 0x2f1   :  { %v6009_v49 = vsel %vm5621_vm2, %v15752_v22, 0.0  ;;  %v15756_v1 = vpop.eup %14008 }
 0x2f2   :  { %v6012_v7 = vsel %vm5621_vm2, %v15756_v1, 0.0 }
 0x2f3   :  { %v15770_v42 = vpop.eup %14010 }
 0x305   :  { %v15717_v43 = vpop.f32.mrb[46].mxu0 }
 0x306   :  { %v13109_v50 = vpop.f32.mrb[47].mxu0  ;;  %v5688_v5 = vsel %vm5621_vm2, %v15717_v43, -inf }
 0x307   :  { %5689 = vmax.xlane.f32.xlu1 %v5688_v5  ;;  %v6015_v50 = vsel %vm5621_vm2, %v15770_v42, 0.0  ;;  %v15774_v5 = vpop.eup %14012 }
 0x308   :  { %v6018_v47 = vsel %vm5621_vm2, %v15774_v5, 0.0 }
 0x309   :  { %v15723_v3 = vpop.f32.mrb[46].mxu1 }
 0x30a   :  { %v13114_v54 = vpop.f32.mrb[47].mxu1  ;;  %v5691_v13 = vsel %vm5621_vm2, %v15723_v3, -inf }
 0x30b   :  { %5692 = vmax.xlane.f32.xlu0 %v5691_v13  ;;  %v5639_v54 = vpop.xlane.xlu0 %5638  ;;  %v5642_v13 = vpop.xlane.xlu1 %5641 }
 0x30c   :  { %v5819_v11 = vsub.f32 %v17716_v53, %v5639_v54 }
 0x31d   :  { %v15728_v35 = vpop.f32.mrb[48].mxu0 }
 0x31e   :  { %v13119_v45 = vpop.f32.mrb[49].mxu0  ;;  %v5694_v56 = vsel %vm5621_vm2, %v15728_v35, -inf }
 0x31f   :  { %5695 = vmax.xlane.f32.xlu1 %v5694_v56  ;;  %v5820_v45 = vsub.f32 %v17717_v4, %v5642_v13  ;;  %v5888_v56 = vmul.f32 1.442695, %v5819_v11 }
 0x321   :  { %v15734_v60 = vpop.f32.mrb[48].mxu1  ;;  %14014 = vpow2.f32 %v5888_v56 }
 0x322   :  { %v13124_v23 = vpop.f32.mrb[49].mxu1  ;;  %v5697_v33 = vsel %vm5621_vm2, %v15734_v60, -inf }
 0x323   :  { %5698 = vmax.xlane.f32.xlu0 %v5697_v33  ;;  %v5890_v23 = vmul.f32 1.442695, %v5820_v45  ;;  %v5645_v33 = vpop.xlane.xlu0 %5644 }
 0x324   :  { %v5821_v58 = vsub.f32 %v17718_v62, %v5645_v33 }
 0x325   :  { %14016 = vpow2.f32 %v5890_v23 }
 0x327   :  { %6007 = vadd.xlane.f32.xlu0 %v6006_v25  ;;  %v5648_v25 = vpop.xlane.xlu1 %5647 }
 0x328   :  { %v5822_v18 = vsub.f32 %v17719_v27, %v5648_v25  ;;  %v17721_v25 = vld [vmem:[#allocation53_spill] sm:$0xff] }
 0x32a   :  { %v5894_v13 = vmul.f32 1.442695, %v5822_v18 }
 0x32b   :  { %v15793_v57 = vpop.eup %14014 }
 0x32c   :  { %v6021_v54 = vsel %vm5621_vm2, %v15793_v57, 0.0 }
 0x335   :  { %v15744_v15 = vpop.f32.mrb[50].mxu0 }
 0x336   :  { %v13129_v14 = vpop.f32.mrb[51].mxu0  ;;  %v5700_v55 = vsel %vm5621_vm2, %v15744_v15, -inf }
 0x337   :  { %5701 = vmax.xlane.f32.xlu1 %v5700_v55  ;;  %v5654_v14 = vpop.xlane.xlu1 %5653  ;;  %v5892_v55 = vmul.f32 1.442695, %v5821_v58 }
 0x338   :  { %v5824_v20 = vsub.f32 %v17720_v61, %v5654_v14 }
 0x339   :  { %v15748_v26 = vpop.f32.mrb[50].mxu1  ;;  %14018 = vpow2.f32 %v5892_v55 }
 0x33a   :  { %v13134_v10 = vpop.f32.mrb[51].mxu1  ;;  %v5703_v19 = vsel %vm5621_vm2, %v15748_v26, -inf  ;;  %v5898_v53 = vmul.f32 1.442695, %v5824_v20  ;;  %14020 = vpow2.f32 %v5894_v13 }
 0x33b   :  { %5704 = vmax.xlane.f32.xlu0 %v5703_v19 }
 0x33c   :  { %14022 = vpow2.f32 %v5898_v53 }
 0x33f   :  { %6010 = vadd.xlane.f32.xlu0 %v6009_v49 }
 0x343   :  { %6013 = vadd.xlane.f32.xlu0 %v6012_v7  ;;  %v15799_v7 = vpop.eup %14016 }
 0x344   :  { %v15828_v55 = vpop.eup %14018 }
 0x345   :  { %v6027_v18 = vsel %vm5621_vm2, %v15828_v55, 0.0 }
 0x34d   :  { %v15762_v21 = vpop.f32.mrb[52].mxu0 }
 0x34e   :  { %v13139_v9 = vpop.f32.mrb[53].mxu0  ;;  %v5706_v12 = vsel %vm5621_vm2, %v15762_v21, -inf }
 0x34f   :  { %5707 = vmax.xlane.f32.xlu1 %v5706_v12 }
 0x351   :  { %v15766_v36 = vpop.f32.mrb[52].mxu1 }
 0x352   :  { %v13144_v39 = vpop.f32.mrb[53].mxu1  ;;  %v5709_v38 = vsel %vm5621_vm2, %v15766_v36, -inf }
 0x353   :  { %5710 = vmax.xlane.f32.xlu0 %v5709_v38 }
 0x357   :  { %6016 = vadd.xlane.f32.xlu0 %v6015_v50  ;;  %v6024_v50 = vsel %vm5621_vm2, %v15799_v7, 0.0 }
 0x35b   :  { %6019 = vadd.xlane.f32.xlu0 %v6018_v47  ;;  %v5651_v47 = vpop.xlane.xlu0 %5650 }
 0x35f   :  { %v5657_v20 = vpop.xlane.xlu0 %5656 }
 0x365   :  { %v15780_v34 = vpop.f32.mrb[54].mxu0 }
 0x366   :  { %v13149_v6 = vpop.f32.mrb[55].mxu0  ;;  %v5712_v51 = vsel %vm5621_vm2, %v15780_v34, -inf }
 0x367   :  { %5713 = vmax.xlane.f32.xlu1 %v5712_v51  ;;  %v5823_v6 = vsub.f32 %v17721_v25, %v5651_v47 }
 0x369   :  { %v15785_v44 = vpop.f32.mrb[56].mxu0 }
 0x36a   :  { %v13159_v32 = vpop.f32.mrb[57].mxu0  ;;  %v5718_v52 = vsel %vm5621_vm2, %v15785_v44, -inf }
 0x36b   :  { %5719 = vmax.xlane.f32.xlu1 %v5718_v52 }
 0x36d   :  { %v15789_v10 = vpop.f32.mrb[54].mxu1  ;;  %v15791_v19 = vpop.f32.mrb[58].mxu0 }
 0x36e   :  { %v13154_v49 = vpop.f32.mrb[55].mxu1  ;;  %v13169_v40 = vpop.f32.mrb[59].mxu0  ;;  %v5724_v2 = vsel %vm5621_vm2, %v15791_v19, -inf  ;;  %v5715_v17 = vsel %vm5621_vm2, %v15789_v10, -inf }
 0x36f   :  { %5725 = vmax.xlane.f32.xlu1 %v5724_v2  ;;  %5716 = vmax.xlane.f32.xlu0 %v5715_v17  ;;  %v5896_v49 = vmul.f32 1.442695, %v5823_v6 }
 0x371   :  { %v15803_v9 = vpop.f32.mrb[56].mxu1  ;;  %v15805_v12 = vpop.f32.mrb[60].mxu0  ;;  %14024 = vpow2.f32 %v5896_v49 }
 0x372   :  { %v13164_v39 = vpop.f32.mrb[57].mxu1  ;;  %v13179_v38 = vpop.f32.mrb[61].mxu0  ;;  %v5730_v23 = vsel %vm5621_vm2, %v15805_v12, -inf  ;;  %v5721_v33 = vsel %vm5621_vm2, %v15803_v9, -inf }
 0x373   :  { %6025 = vadd.xlane.f32.xlu1 %v6024_v50  ;;  %6022 = vadd.xlane.f32.xlu0 %v6021_v54  ;;  %v15842_v50 = vpop.eup %14020 }
 0x375   :  { %v15811_v11 = vpop.f32.mrb[58].mxu1  ;;  %v15813_v4 = vpop.f32.mrb[62].mxu0 }
 0x376   :  { %v13174_v45 = vpop.f32.mrb[59].mxu1  ;;  %v13189_v56 = vpop.f32.mrb[63].mxu0  ;;  %v5736_v52 = vsel %vm5621_vm2, %v15813_v4, -inf  ;;  %v5727_v14 = vsel %vm5621_vm2, %v15811_v11, -inf }
 0x377   :  { %5731 = vmax.xlane.f32.xlu1 %v5730_v23  ;;  %5722 = vmax.xlane.f32.xlu0 %v5721_v33  ;;  %v15848_v45 = vpop.eup %14022  ;;  %v17722_v56 = vld [vmem:[#allocation55_spill] sm:$0xff]  ;;  %v5660_v33 = vpop.xlane.xlu1 %5659 }
 0x378   :  { %v5825_v23 = vsub.f32 %v17722_v56, %v5657_v20 }
 0x379   :  { %v15820_v51 = vpop.f32.mrb[60].mxu1  ;;  %v15822_v62 = vpop.f32.mrb[64].mxu0 }
 0x37a   :  { %v13184_v58 = vpop.f32.mrb[61].mxu1  ;;  %v13199_v32 = vpop.f32.mrb[65].mxu0  ;;  %v5742_v27 = vsel %vm5621_vm2, %v15822_v62, -inf  ;;  %v5733_v53 = vsel %vm5621_vm2, %v15820_v51, -inf }
 0x37b   :  { %5737 = vmax.xlane.f32.xlu1 %v5736_v52  ;;  %5728 = vmax.xlane.f32.xlu0 %v5727_v14  ;;  %v6036_v32 = vsel %vm5621_vm2, %v15848_v45, 0.0  ;;  %v6030_v52 = vsel %vm5621_vm2, %v15842_v50, 0.0  ;;  %v5663_v14 = vpop.xlane.xlu0 %5662 }
 0x37d   :  { %v15830_v40 = vpop.f32.mrb[62].mxu1  ;;  %v15832_v2 = vpop.f32.mrb[66].mxu0 }
 0x37e   :  { %v13194_v17 = vpop.f32.mrb[63].mxu1  ;;  %v13209_v61 = vpop.f32.mrb[67].mxu0  ;;  %v5748_v47 = vsel %vm5621_vm2, %v15832_v2, -inf }
 0x37f   :  { %5743 = vmax.xlane.f32.xlu1 %v5742_v27  ;;  %6028 = vadd.xlane.f32.xlu0 %v6027_v18  ;;  %v5900_v17 = vmul.f32 1.442695, %v5825_v23  ;;  %v17724_v27 = vld [vmem:[#allocation56_spill] sm:$0xff] }
 0x380   :  { %v5826_v18 = vsub.f32 %v17724_v27, %v5660_v33  ;;  %v17727_v33 = vld [vmem:[#allocation57_spill] sm:$0xff] }
 0x381   :  { %v15838_v39 = vpop.f32.mrb[64].mxu1  ;;  %v15840_v38 = vpop.f32.mrb[68].mxu0  ;;  %14026 = vpow2.f32 %v5900_v17 }
 0x382   :  { %v13204_v54 = vpop.f32.mrb[65].mxu1  ;;  %v13219_v13 = vpop.f32.mrb[69].mxu0  ;;  %v5902_v23 = vmul.f32 1.442695, %v5826_v18  ;;  %v5745_v24 = vsel %vm5621_vm2, %v15838_v39, -inf }
 0x383   :  { %5749 = vmax.xlane.f32.xlu1 %v5748_v47  ;;  %5734 = vmax.xlane.f32.xlu0 %v5733_v53  ;;  %v5754_v13 = vsel %vm5621_vm2, %v15840_v38, -inf  ;;  %v5739_v47 = vsel %vm5621_vm2, %v15830_v40, -inf  ;;  %v15868_v53 = vpop.eup %14024 }
 0x384   :  { %17726 = vst [vmem:[#allocation47_spill] sm:$0xff] %v15868_v53  ;;  %v6033_v59 = vsel %vm5621_vm2, %v15868_v53, 0.0  ;;  %14028 = vpow2.f32 %v5902_v23 }
 0x385   :  { %v15851_v25 = vpop.f32.mrb[66].mxu1 }
 0x386   :  { %v15853_v6 = vpop.f32.mrb[70].mxu0  ;;  %v13214_v58 = vpop.f32.mrb[67].mxu1 }
 0x387   :  { %17723 = vst [vmem:[#allocation45_spill] sm:$0xff] %v15853_v6  ;;  %v13229_v49 = vpop.f32.mrb[71].mxu0  ;;  %6037 = vadd.xlane.f32.xlu1 %v6036_v32  ;;  %6031 = vadd.xlane.f32.xlu0 %v6030_v52  ;;  %v5666_v58 = vpop.xlane.xlu1 %5665  ;;  %v5827_v32 = vsub.f32 %v17727_v33, %v5663_v14  ;;  %v17731_v14 = vld [vmem:[#allocation59_spill] sm:$0xff] }
 0x388   :  { %v5669_v52 = vpop.xlane.xlu0 %5668 }
 0x389   :  { %v15860_v61 = vpop.f32.mrb[68].mxu1  ;;  %v5904_v18 = vmul.f32 1.442695, %v5827_v32 }
 0x38a   :  { %v15862_v20 = vpop.f32.mrb[72].mxu0  ;;  %v13224_v54 = vpop.f32.mrb[69].mxu1  ;;  %v5757_v48 = vsel %vm5621_vm2, %v15860_v61, -inf }
 0x38b   :  { %17725 = vst [vmem:[#allocation46_spill] sm:$0xff] %v15862_v20  ;;  %v13239_v56 = vpop.f32.mrb[73].mxu0  ;;  %5755 = vmax.xlane.f32.xlu1 %v5754_v13  ;;  %5740 = vmax.xlane.f32.xlu0 %v5739_v47  ;;  %v17730_v13 = vld [vmem:[#allocation58_spill] sm:$0xff]  ;;  %v5829_v47 = vsub.f32 %v17731_v14, %v5669_v52  ;;  %v5672_v33 = vpop.xlane.xlu1 %5671  ;;  %14030 = vpow2.f32 %v5904_v18  ;;  %v5751_v14 = vsel %vm5621_vm2, %v15851_v25, -inf }
 0x38c   :  { %v5828_v17 = vsub.f32 %v17730_v13, %v5666_v58  ;;  %v5830_v23 = vsub.f32 %v15525_v28, %v5672_v33  ;;  %v5675_v32 = vpop.xlane.xlu0 %5674 }
 0x38d   :  { %v15871_v49 = vpop.f32.mrb[70].mxu1  ;;  %v5908_v58 = vmul.f32 1.442695, %v5829_v47 }
 0x38e   :  { %17728 = vst [vmem:[#allocation48_spill] sm:$0xff] %v15871_v49  ;;  %v15873_v27 = vpop.f32.mrb[74].mxu0  ;;  %v13234_v54 = vpop.f32.mrb[71].mxu1  ;;  %v5910_v28 = vmul.f32 1.442695, %v5830_v23 }
 0x38f   :  { %17729 = vst [vmem:[#allocation49_spill] sm:$0xff] %v15873_v27  ;;  %v13249_v56 = vpop.f32.mrb[75].mxu0  ;;  %6034 = vadd.xlane.f32.xlu0 %v6033_v59  ;;  %5758 = vmax.xlane.f32.xlu1 %v5757_v48  ;;  %v5906_v48 = vmul.f32 1.442695, %v5828_v17  ;;  %v5831_v17 = vsub.f32 %v15581_v16, %v5675_v32  ;;  %v15901_v18 = vpop.xlane.xlu1 %5677 }
 0x390   :  { %v5760_v56 = vsel %vm5621_vm2, %v15853_v6, -inf  ;;  %v15898_v6 = vpop.eup %14026  ;;  %v5681_v47 = vpop.xlane.xlu0 %5680 }
 0x391   :  { %v15881_v46 = vpop.f32.mrb[72].mxu1  ;;  %17734 = vst [vmem:[#allocation52_spill] sm:$0xff] %v15898_v6  ;;  %14032 = vpow2.f32 %v5906_v48  ;;  %v5912_v16 = vmul.f32 1.442695, %v5831_v17  ;;  %v5833_v23 = vsub.f32 %v15655_v8, %v5681_v47 }
 0x392   :  { %17732 = vst [vmem:[#allocation50_spill] sm:$0xff] %v15881_v46  ;;  %v15883_v37 = vpop.f32.mrb[76].mxu0  ;;  %v13244_v54 = vpop.f32.mrb[73].mxu1  ;;  %14034 = vpow2.f32 %v5908_v58 }
 0x393   :  { %17733 = vst [vmem:[#allocation51_spill] sm:$0xff] %v15883_v37  ;;  %v13259_v59 = vpop.f32.mrb[77].mxu0  ;;  %5746 = vmax.xlane.f32.xlu0 %v5745_v24  ;;  %5761 = vmax.xlane.f32.xlu1 %v5760_v56  ;;  %v5763_v54 = vsel %vm5621_vm2, %v15871_v49, -inf  ;;  %v6039_v49 = vsel %vm5621_vm2, %v15898_v6, 0.0  ;;  %14036 = vpow2.f32 %v5910_v28  ;;  %v5684_v32 = vpop.xlane.xlu1 %5683  ;;  %v5916_v28 = vmul.f32 1.442695, %v5833_v23 }
 0x394   :  { %14038 = vpow2.f32 %v5912_v16  ;;  %v5834_v8 = vsub.f32 %v15705_v31, %v5684_v32  ;;  %v5687_v17 = vpop.xlane.xlu0 %5686 }
 0x395   :  { %14040 = vpow2.f32 %v5916_v28  ;;  %v5835_v16 = vsub.f32 %v15707_v29, %v5687_v17 }
 0x396   :  { %v15890_v52 = vpop.f32.mrb[74].mxu1  ;;  %v15892_v13 = vpop.f32.mrb[78].mxu0  ;;  %v5918_v31 = vmul.f32 1.442695, %v5834_v8 }
 0x397   :  { %v13254_v24 = vpop.f32.mrb[75].mxu1  ;;  %v13269_v56 = vpop.f32.mrb[79].mxu0  ;;  %5752 = vmax.xlane.f32.xlu0 %v5751_v14  ;;  %5764 = vmax.xlane.f32.xlu1 %v5763_v54  ;;  %v5920_v29 = vmul.f32 1.442695, %v5835_v16  ;;  %v5778_v16 = vsel %vm5621_vm2, %v15883_v37, -inf }
 0x398   :  { %v5766_v24 = vsel %vm5621_vm2, %v15862_v20, -inf  ;;  %v15911_v14 = vpop.eup %14028  ;;  %v5769_v20 = vsel %vm5621_vm2, %v15881_v46, -inf  ;;  %v5693_v23 = vpop.xlane.xlu0 %5692  ;;  %14042 = vpow2.f32 %v5918_v31 }
 0x399   :  { %17736 = vst [vmem:[#allocation53_spill] sm:$0xff] %v15911_v14  ;;  %v6042_v30 = vsel %vm5621_vm2, %v15911_v14, 0.0  ;;  %v15922_v6 = vpop.eup %14030  ;;  %v5837_v8 = vsub.f32 %v15723_v3, %v5693_v23  ;;  %14044 = vpow2.f32 %v5920_v29 }
 0x39a   :  { %v15903_v33 = vpop.f32.mrb[76].mxu1  ;;  %v15905_v59 = vpop.f32.mrb[80].mxu0  ;;  %17738 = vst [vmem:[#allocation56_spill] sm:$0xff] %v15922_v6  ;;  %v6045_v46 = vsel %vm5621_vm2, %v15922_v6, 0.0 }
 0x39b   :  { %17735 = vst [vmem:[#allocation54_spill] sm:$0xff] %v15905_v59  ;;  %v13264_v48 = vpop.f32.mrb[77].mxu1  ;;  %v13279_v58 = vpop.f32.mrb[81].mxu0  ;;  %6040 = vadd.xlane.f32.xlu0 %v6039_v49  ;;  %5767 = vmax.xlane.f32.xlu1 %v5766_v24 }
 0x39c   :  { %v15925_v47 = vpop.eup %14032 }
 0x39d   :  { %17739 = vst [vmem:[#allocation57_spill] sm:$0xff] %v15925_v47  ;;  %v6048_v6 = vsel %vm5621_vm2, %v15925_v47, 0.0 }
 0x39e   :  { %v15914_v54 = vpop.f32.mrb[78].mxu1  ;;  %v15916_v56 = vpop.f32.mrb[82].mxu0 }
 0x39f   :  { %17737 = vst [vmem:[#allocation55_spill] sm:$0xff] %v15916_v56  ;;  %v13274_v48 = vpop.f32.mrb[79].mxu1  ;;  %v13289_v49 = vpop.f32.mrb[83].mxu0  ;;  %6043 = vadd.xlane.f32.xlu0 %v6042_v30  ;;  %5770 = vmax.xlane.f32.xlu1 %v5769_v20 }
 0x3a0   :  { %v5772_v48 = vsel %vm5621_vm2, %v15873_v27, -inf  ;;  %v15935_v49 = vpop.eup %14034 }
 0x3a1   :  { %v6051_v14 = vsel %vm5621_vm2, %v15935_v49, 0.0  ;;  %v15944_v27 = vpop.eup %14036 }
 0x3a2   :  { %v15927_v24 = vpop.f32.mrb[80].mxu1  ;;  %v15929_v58 = vpop.f32.mrb[84].mxu0  ;;  %v6054_v17 = vsel %vm5621_vm2, %v15944_v27, 0.0 }
 0x3a3   :  { %17740 = vst [vmem:[#allocation58_spill] sm:$0xff] %v15927_v24  ;;  %17741 = vst [vmem:[#allocation59_spill] sm:$0xff] %v15929_v58  ;;  %v13284_v30 = vpop.f32.mrb[81].mxu1  ;;  %v13299_v20 = vpop.f32.mrb[85].mxu0  ;;  %6046 = vadd.xlane.f32.xlu0 %v6045_v46  ;;  %5773 = vmax.xlane.f32.xlu1 %v5772_v48  ;;  %v5775_v48 = vsel %vm5621_vm2, %v15890_v52, -inf }
 0x3a4   :  { %v15948_v46 = vpop.xlane.xlu1 %5689  ;;  %v15955_v20 = vpop.eup %14038 }
 0x3a5   :  { %v6057_v3 = vsel %vm5621_vm2, %v15955_v20, 0.0  ;;  %v15964_v23 = vpop.eup %14040 }
 0x3a6   :  { %v15938_v32 = vpop.f32.mrb[82].mxu1 }
 0x3a7   :  { %17742 = vst [vmem:[#allocation64_spill] sm:$0xff] %v15938_v32  ;;  %v15946_v53 = vpop.f32.mrb[86].mxu0  ;;  %v13294_v30 = vpop.f32.mrb[83].mxu1  ;;  %6052 = vadd.xlane.f32.xlu0 %v6051_v14  ;;  %6049 = vadd.xlane.f32.xlu1 %v6048_v6 }
 0x3a8   :  { %17743 = vst [vmem:[#allocation65_spill] sm:$0xff] %v15946_v53  ;;  %v13309_v28 = vpop.f32.mrb[87].mxu0  ;;  %v5924_v30 = vmul.f32 1.442695, %v5837_v8  ;;  %v5781_v8 = vsel %vm5621_vm2, %v15903_v33, -inf }
 0x3aa   :  { %14046 = vpow2.f32 %v5924_v30 }
 0x3ab   :  { %v15957_v47 = vpop.f32.mrb[84].mxu1  ;;  %6055 = vadd.xlane.f32.xlu0 %v6054_v17  ;;  %5776 = vmax.xlane.f32.xlu1 %v5775_v48 }
 0x3ac   :  { %17744 = vst [vmem:[#allocation66_spill] sm:$0xff] %v15957_v47  ;;  %v13304_v6 = vpop.f32.mrb[85].mxu1  ;;  %v5696_v14 = vpop.xlane.xlu1 %5695 }
 0x3ad   :  { %v5838_v31 = vsub.f32 %v15728_v35, %v5696_v14  ;;  %v6063_v35 = vsel %vm5621_vm2, %v15964_v23, 0.0  ;;  %v15973_v14 = vpop.eup %14042 }
 0x3ae   :  { %v6066_v30 = vsel %vm5621_vm2, %v15973_v14, 0.0 }
 0x3af   :  { %v15966_v28 = vpop.f32.mrb[86].mxu1  ;;  %6058 = vadd.xlane.f32.xlu0 %v6057_v3  ;;  %5779 = vmax.xlane.f32.xlu1 %v5778_v16  ;;  %v5926_v6 = vmul.f32 1.442695, %v5838_v31  ;;  %v15979_v31 = vpop.eup %14044 }
 0x3b0   :  { %17745 = vst [vmem:[#allocation67_spill] sm:$0xff] %v15966_v28  ;;  %v13314_v17 = vpop.f32.mrb[87].mxu1  ;;  %v5699_v48 = vpop.xlane.xlu0 %5698  ;;  %v6069_v16 = vsel %vm5621_vm2, %v15979_v31, 0.0 }
 0x3b1   :  { %v5839_v29 = vsub.f32 %v15734_v60, %v5699_v48  ;;  %14048 = vpow2.f32 %v5926_v6  ;;  %v5784_v60 = vsel %vm5621_vm2, %v15892_v13, -inf  ;;  %v5787_v17 = vsel %vm5621_vm2, %v15914_v54, -inf }
 0x3b2   :  { %v5790_v6 = vsel %vm5621_vm2, %v15905_v59, -inf }
 0x3b3   :  { %6064 = vadd.xlane.f32.xlu0 %v6063_v35  ;;  %5782 = vmax.xlane.f32.xlu1 %v5781_v8  ;;  %v5928_v3 = vmul.f32 1.442695, %v5839_v29 }
 0x3b4   :  { %v6008_v37 = vpop.xlane.xlu0 %6007  ;;  %v15985_v48 = vpop.eup %14046 }
 0x3b5   :  { %14050 = vrcp.f32 %v6008_v37  ;;  %v6075_v37 = vsel %vm5621_vm2, %v15985_v48, 0.0 }
 0x3b6   :  { %14052 = vpow2.f32 %v5928_v3 }
 0x3b7   :  { %6067 = vadd.xlane.f32.xlu0 %v6066_v30  ;;  %5785 = vmax.xlane.f32.xlu1 %v5784_v60  ;;  %v5793_v60 = vsel %vm5621_vm2, %v15927_v24, -inf }
 0x3bb   :  { %6070 = vadd.xlane.f32.xlu0 %v6069_v16  ;;  %5788 = vmax.xlane.f32.xlu1 %v5787_v17  ;;  %v15991_v29 = vpop.eup %14048  ;;  %v17746_v16 = vld [vmem:[#allocation20_spill] sm:$0xff]  ;;  %v5796_v17 = vsel %vm5621_vm2, %v15916_v56, -inf }
 0x3bc   :  { %v6078_v3 = vsel %vm5621_vm2, %v15991_v29, 0.0 }
 0x3bf   :  { %6076 = vadd.xlane.f32.xlu0 %v6075_v37  ;;  %5791 = vmax.xlane.f32.xlu1 %v5790_v6  ;;  %v14051_v35 = vpop.eup %14050 }
 0x3c0   :  { %v6262_v8 = vmul.f32 %v14051_v35, %v15738_v0  ;;  %v15996_v30 = vpop.eup %14052  ;;  %v5832_v35 = vsub.f32 %v15653_v41, %v15901_v18 }
 0x3c1   :  { %v6081_v0 = vsel %vm5621_vm2, %v15996_v30, 0.0 }
 0x3c2   :  { %13318 = vmatmul.mubr.msk.f32.vlgmr.msra.gmra.mrb[88].mxu0 %vm5621_vm2, %v6262_v8  ;;  %v5914_v59 = vmul.f32 1.442695, %v5832_v35 }
 0x3c3   :  { %6079 = vadd.xlane.f32.xlu0 %v6078_v3  ;;  %13326 = vmatpush3.msra.mxu0 %v17746_v16  ;;  %v5799_v3 = vsel %vm5621_vm2, %v15938_v32, -inf  ;;  %v17766_v32 = vld [vmem:[#allocation53_spill] sm:$0xff] }
 0x3c4   :  { %5794 = vmax.xlane.f32.xlu1 %v5793_v60  ;;  %13327 = vmatprep.mubr.msk.f32.mxu0 %vm14492_vm0, %v17687_v63  ;;  %v5702_v56 = vpop.xlane.xlu1 %5701 }
 0x3c5   :  { %13335 = vmatprep.subr.mxu0 %v17687_v63  ;;  %v5840_v18 = vsub.f32 %v15744_v15, %v5702_v56  ;;  %v5811_v56 = vsel %vm5621_vm2, %v15966_v28, -inf }
 0x3c7   :  { %6082 = vadd.xlane.f32.xlu0 %v6081_v0  ;;  %v5836_v0 = vsub.f32 %v15717_v43, %v15948_v46  ;;  %v5808_v43 = vsel %vm5621_vm2, %v15946_v53, -inf  ;;  %v17764_v53 = vld [vmem:[#allocation52_spill] sm:$0xff] }
 0x3c8   :  { %5797 = vmax.xlane.f32.xlu1 %v5796_v17  ;;  %v5705_v37 = vpop.xlane.xlu0 %5704  ;;  %v5802_v17 = vsel %vm5621_vm2, %v15929_v58, -inf }
 0x3c9   :  { %v5841_v6 = vsub.f32 %v15748_v26, %v5705_v37  ;;  %v5922_v41 = vmul.f32 1.442695, %v5836_v0  ;;  %v5805_v37 = vsel %vm5621_vm2, %v15957_v47, -inf }
 0x3cb   :  { %v5932_v8 = vmul.f32 1.442695, %v5841_v6  ;;  %v5930_v6 = vmul.f32 1.442695, %v5840_v18 }
 0x3cc   :  { %5800 = vmax.xlane.f32.xlu1 %v5799_v3  ;;  %v6011_v60 = vpop.xlane.xlu0 %6010 }
 0x3cd   :  { %14054 = vpow2.f32 %v5932_v8 }
 0x3ce   :  { %14056 = vrcp.f32 %v6011_v60  ;;  %v17747_v60 = vld [vmem:[#allocation19_spill] sm:$0xff] }
 0x3d0   :  { %5803 = vmax.xlane.f32.xlu1 %v5802_v17  ;;  %v6014_v26 = vpop.xlane.xlu0 %6013 }
 0x3d1   :  { %14058 = vrcp.f32 %v6014_v26 }
 0x3d2   :  { %14060 = vpow2.f32 %v5914_v59 }
 0x3d3   :  { %14062 = vpow2.f32 %v5922_v41  ;;  %v17748_v41 = vld [vmem:[#allocation21_spill] sm:$0xff] }
 0x3d4   :  { %5806 = vmax.xlane.f32.xlu1 %v5805_v37  ;;  %14064 = vpow2.f32 %v5930_v6 }
 0x3d7   :  { %v16021_v35 = vpop.eup %14054 }
 0x3d8   :  { %v14057_v46 = vpop.eup %14056  ;;  %5809 = vmax.xlane.f32.xlu1 %v5808_v43  ;;  %v6087_v8 = vsel %vm5621_vm2, %v16021_v35, 0.0 }
 0x3d9   :  { %6088 = vadd.xlane.f32.xlu0 %v6087_v8  ;;  %v6263_v59 = vmul.f32 %v14057_v46, %v15752_v22 }
 0x3db   :  { %v14059_v15 = vpop.eup %14058  ;;  %13323 = vmatmul.mubr.msk.f32.vlgmr.msra.gmra.mrb[88].mxu1 %vm5621_vm2, %v6263_v59 }
 0x3dc   :  { %v16031_v3 = vpop.eup %14060  ;;  %13331 = vmatpush3.msra.mxu1 %v17747_v60  ;;  %5812 = vmax.xlane.f32.xlu1 %v5811_v56  ;;  %v5708_v0 = vpop.xlane.xlu1 %5707  ;;  %v6264_v17 = vmul.f32 %v14059_v15, %v15756_v1 }
 0x3dd   :  { %v5842_v26 = vsub.f32 %v15762_v21, %v5708_v0  ;;  %13332 = vmatprep.mubr.msk.f32.mxu1 %vm14492_vm0, %v17687_v63  ;;  %13340 = vmatprep.subr.mxu1 %v17687_v63  ;;  %v6060_v18 = vsel %vm5621_vm2, %v16031_v3, 0.0  ;;  %v16045_v37 = vpop.eup %14062 }
 0x3de   :  { %13328 = vmatmul.mubr.msk.f32.vlgmr.msra.gmra.mrb[90].mxu0 %vm5621_vm2, %v6264_v17  ;;  %v6072_v43 = vsel %vm5621_vm2, %v16045_v37, 0.0  ;;  %v16051_v46 = vpop.eup %14064 }
 0x3df   :  { %v5934_v22 = vmul.f32 1.442695, %v5842_v26  ;;  %13336 = vmatpush3.msra.mxu0 %v17748_v41  ;;  %13337 = vmatprep.mubr.msk.f32.mxu0 %vm14492_vm0, %v17687_v63  ;;  %v6084_v59 = vsel %vm5621_vm2, %v16051_v46, 0.0 }
 0x3e0   :  { %6061 = vadd.xlane.f32.xlu1 %v6060_v18  ;;  %v5711_v1 = vpop.xlane.xlu0 %5710  ;;  %13345 = vmatprep.subr.mxu0 %v17687_v63 }
 0x3e1   :  { %14066 = vpow2.f32 %v5934_v22  ;;  %v5843_v21 = vsub.f32 %v15766_v36, %v5711_v1  ;;  %v17749_v1 = vld [vmem:[#allocation22_spill] sm:$0xff] }
 0x3e3   :  { %v5936_v6 = vmul.f32 1.442695, %v5843_v21 }
 0x3e4   :  { %6073 = vadd.xlane.f32.xlu1 %v6072_v43  ;;  %v6017_v8 = vpop.xlane.xlu0 %6016 }
 0x3e5   :  { %14068 = vpow2.f32 %v5936_v6 }
 0x3e6   :  { %14070 = vrcp.f32 %v6017_v8 }
 0x3e8   :  { %6085 = vadd.xlane.f32.xlu1 %v6084_v59  ;;  %v6020_v15 = vpop.xlane.xlu0 %6019  ;;  %v17750_v59 = vld [vmem:[#allocation24_spill] sm:$0xff] }
 0x3e9   :  { %14072 = vrcp.f32 %v6020_v15 }
 0x3eb   :  { %v16055_v56 = vpop.eup %14066 }
 0x3ec   :  { %v6090_v36 = vsel %vm5621_vm2, %v16055_v56, 0.0 }
 0x3ed   :  { %6091 = vadd.xlane.f32.xlu0 %v6090_v36 }
 0x3ef   :  { %v16059_v0 = vpop.eup %14068 }
 0x3f0   :  { %v14071_v17 = vpop.eup %14070  ;;  %v6093_v26 = vsel %vm5621_vm2, %v16059_v0, 0.0 }
 0x3f1   :  { %6094 = vadd.xlane.f32.xlu0 %v6093_v26  ;;  %v6265_v22 = vmul.f32 %v14071_v17, %v15770_v42 }
 0x3f3   :  { %v14073_v18 = vpop.eup %14072  ;;  %13333 = vmatmul.mubr.msk.f32.vlgmr.msra.gmra.mrb[90].mxu1 %vm5621_vm2, %v6265_v22 }
 0x3f4   :  { %13341 = vmatpush3.msra.mxu1 %v17749_v1  ;;  %v5714_v21 = vpop.xlane.xlu1 %5713  ;;  %v6266_v6 = vmul.f32 %v14073_v18, %v15774_v5  ;;  %13342 = vmatprep.mubr.msk.f32.mxu1 %vm14492_vm0, %v17687_v63 }
 0x3f5   :  { %v5844_v43 = vsub.f32 %v15780_v34, %v5714_v21  ;;  %13350 = vmatprep.subr.mxu1 %v17687_v63 }
 0x3f6   :  { %13338 = vmatmul.mubr.msk.f32.vlgmr.msra.gmra.mrb[92].mxu0 %vm5621_vm2, %v6266_v6 }
 0x3f7   :  { %v5938_v8 = vmul.f32 1.442695, %v5844_v43  ;;  %13346 = vmatpush3.msra.mxu0 %v17750_v59  ;;  %13347 = vmatprep.mubr.msk.f32.mxu0 %vm14492_vm0, %v17687_v63 }
 0x3f8   :  { %v5720_v42 = vpop.xlane.xlu1 %5719  ;;  %13355 = vmatprep.subr.mxu0 %v17687_v63 }
 0x3f9   :  { %14074 = vpow2.f32 %v5938_v8  ;;  %v5846_v5 = vsub.f32 %v15785_v44, %v5720_v42 }
 0x3fb   :  { %v5942_v15 = vmul.f32 1.442695, %v5846_v5 }
 0x3fc   :  { %v5726_v36 = vpop.xlane.xlu1 %5725  ;;  %v5717_v17 = vpop.xlane.xlu0 %5716 }
 0x3fd   :  { %v5848_v34 = vsub.f32 %v15791_v19, %v5726_v36  ;;  %v5845_v26 = vsub.f32 %v15789_v10, %v5717_v17  ;;  %14076 = vpow2.f32 %v5942_v15 }
 0x3ff   :  { %v5946_v22 = vmul.f32 1.442695, %v5848_v34  ;;  %v5940_v18 = vmul.f32 1.442695, %v5845_v26 }
 0x400   :  { %v6026_v21 = vpop.xlane.xlu1 %6025  ;;  %v6023_v6 = vpop.xlane.xlu0 %6022 }
 0x401   :  { %14078 = vpow2.f32 %v5946_v22 }
 0x402   :  { %14080 = vpow2.f32 %v5940_v18 }
 0x403   :  { %v16079_v43 = vpop.eup %14074  ;;  %14082 = vrcp.f32 %v6026_v21 }
 0x404   :  { %14084 = vrcp.f32 %v6023_v6  ;;  %v5732_v8 = vpop.xlane.xlu1 %5731  ;;  %v5723_v44 = vpop.xlane.xlu0 %5722  ;;  %v6096_v42 = vsel %vm5621_vm2, %v16079_v43, 0.0 }
 0x405   :  { %v5850_v19 = vsub.f32 %v15805_v12, %v5732_v8  ;;  %v5847_v10 = vsub.f32 %v15803_v9, %v5723_v44  ;;  %6097 = vadd.xlane.f32.xlu1 %v6096_v42 }
 0x407   :  { %v5950_v5 = vmul.f32 1.442695, %v5850_v19  ;;  %v5944_v15 = vmul.f32 1.442695, %v5847_v10  ;;  %v16087_v22 = vpop.eup %14076 }
 0x408   :  { %v5738_v36 = vpop.xlane.xlu1 %5737  ;;  %v5729_v17 = vpop.xlane.xlu0 %5728 }
 0x409   :  { %14086 = vpow2.f32 %v5950_v5  ;;  %v5852_v34 = vsub.f32 %v15813_v4, %v5738_v36  ;;  %v5849_v26 = vsub.f32 %v15811_v11, %v5729_v17 }
 0x40a   :  { %14088 = vpow2.f32 %v5944_v15 }
 0x40b   :  { %v16089_v18 = vpop.eup %14078  ;;  %v5954_v21 = vmul.f32 1.442695, %v5852_v34  ;;  %v5948_v6 = vmul.f32 1.442695, %v5849_v26 }
 0x40c   :  { %v16091_v12 = vpop.eup %14080  ;;  %v5744_v9 = vpop.xlane.xlu1 %5743  ;;  %v6108_v44 = vsel %vm5621_vm2, %v16089_v18, 0.0 }
 0x40d   :  { %v6029_v8 = vpop.xlane.xlu0 %6028  ;;  %v14083_v42 = vpop.eup %14082  ;;  %14090 = vpow2.f32 %v5954_v21  ;;  %v5854_v4 = vsub.f32 %v15822_v62, %v5744_v9  ;;  %v6099_v11 = vsel %vm5621_vm2, %v16091_v12, 0.0  ;;  %6109 = vadd.xlane.f32.xlu1 %v6108_v44  ;;  %v17751_v62 = vld [vmem:[#allocation25_spill] sm:$0xff]  ;;  %v17752_v21 = vld [vmem:[#allocation23_spill] sm:$0xff] }
 0x40e   :  { %v14085_v19 = vpop.eup %14084  ;;  %14092 = vpow2.f32 %v5948_v6  ;;  %6100 = vadd.xlane.f32.xlu0 %v6099_v11  ;;  %v6268_v10 = vmul.f32 %v14083_v42, %v15799_v7  ;;  %v6102_v7 = vsel %vm5621_vm2, %v16087_v22, 0.0 }
 0x40f   :  { %v5958_v5 = vmul.f32 1.442695, %v5854_v4  ;;  %14094 = vrcp.f32 %v6029_v8  ;;  %v6267_v15 = vmul.f32 %v14085_v19, %v15793_v57 }
 0x410   :  { %13348 = vmatmul.mubr.msk.f32.vlgmr.msra.gmra.mrb[94].mxu0 %vm5621_vm2, %v6268_v10  ;;  %v5750_v36 = vpop.xlane.xlu1 %5749 }
 0x411   :  { %v5735_v17 = vpop.xlane.xlu0 %5734  ;;  %14096 = vpow2.f32 %v5958_v5  ;;  %13343 = vmatmul.mubr.msk.f32.vlgmr.msra.gmra.mrb[92].mxu1 %vm5621_vm2, %v6267_v15  ;;  %13356 = vmatpush3.msra.mxu0 %v17751_v62  ;;  %v5856_v34 = vsub.f32 %v15832_v2, %v5750_v36 }
 0x412   :  { %v5851_v26 = vsub.f32 %v15820_v51, %v5735_v17  ;;  %13351 = vmatpush3.msra.mxu1 %v17752_v21  ;;  %6103 = vadd.xlane.f32.xlu0 %v6102_v7 }
 0x413   :  { %v16108_v57 = vpop.eup %14086  ;;  %v5962_v6 = vmul.f32 1.442695, %v5856_v34  ;;  %13352 = vmatprep.mubr.msk.f32.mxu1 %vm14492_vm0, %v17687_v63  ;;  %13360 = vmatprep.subr.mxu1 %v17687_v63 }
 0x414   :  { %v5952_v9 = vmul.f32 1.442695, %v5851_v26  ;;  %v16113_v8 = vpop.eup %14088  ;;  %v6038_v2 = vpop.xlane.xlu1 %6037  ;;  %v6114_v51 = vsel %vm5621_vm2, %v16108_v57, 0.0  ;;  %13357 = vmatprep.mubr.msk.f32.mxu0 %vm14492_vm0, %v17687_v63  ;;  %13365 = vmatprep.subr.mxu0 %v17687_v63 }
 0x415   :  { %v6032_v44 = vpop.xlane.xlu0 %6031  ;;  %14098 = vpow2.f32 %v5962_v6  ;;  %v6105_v42 = vsel %vm5621_vm2, %v16113_v8, 0.0  ;;  %6115 = vadd.xlane.f32.xlu1 %v6114_v51 }
 0x416   :  { %14100 = vpow2.f32 %v5952_v9  ;;  %6106 = vadd.xlane.f32.xlu0 %v6105_v42 }
 0x417   :  { %v16122_v4 = vpop.eup %14090  ;;  %14102 = vrcp.f32 %v6032_v44 }
 0x418   :  { %v16124_v11 = vpop.eup %14092  ;;  %v5756_v19 = vpop.xlane.xlu1 %5755  ;;  %v6120_v5 = vsel %vm5621_vm2, %v16122_v4, 0.0  ;;  %14104 = vrcp.f32 %v6038_v2 }
 0x419   :  { %v5741_v10 = vpop.xlane.xlu0 %5740  ;;  %v14095_v15 = vpop.eup %14094  ;;  %v5858_v36 = vsub.f32 %v15840_v38, %v5756_v19  ;;  %v6111_v34 = vsel %vm5621_vm2, %v16124_v11, 0.0  ;;  %6121 = vadd.xlane.f32.xlu1 %v6120_v5 }
 0x41a   :  { %v5853_v17 = vsub.f32 %v15830_v40, %v5741_v10  ;;  %6112 = vadd.xlane.f32.xlu0 %v6111_v34  ;;  %v6269_v26 = vmul.f32 %v14095_v15, %v15828_v55  ;;  %v17754_v40 = vld [vmem:[#allocation26_spill] sm:$0xff] }
 0x41b   :  { %v16133_v7 = vpop.eup %14096  ;;  %v5966_v6 = vmul.f32 1.442695, %v5858_v36 }
 0x41c   :  { %17753 = vst [vmem:[#allocation20_spill] sm:$0xff] %v16133_v7  ;;  %v5956_v9 = vmul.f32 1.442695, %v5853_v17  ;;  %13353 = vmatmul.mubr.msk.f32.vlgmr.msra.gmra.mrb[94].mxu1 %vm5621_vm2, %v6269_v26  ;;  %v5759_v51 = vpop.xlane.xlu1 %5758  ;;  %v6126_v38 = vsel %vm5621_vm2, %v16133_v7, 0.0 }
 0x41d   :  { %v6035_v44 = vpop.xlane.xlu0 %6034  ;;  %14106 = vpow2.f32 %v5966_v6  ;;  %13361 = vmatpush3.msra.mxu1 %v17754_v40  ;;  %6127 = vadd.xlane.f32.xlu1 %v6126_v38  ;;  %v5859_v17 = vsub.f32 %v15860_v61, %v5759_v51 }
 0x41e   :  { %14108 = vpow2.f32 %v5956_v9  ;;  %13362 = vmatprep.mubr.msk.f32.mxu1 %vm14492_vm0, %v17687_v63  ;;  %13370 = vmatprep.subr.mxu1 %v17687_v63 }
 0x41f   :  { %v16142_v55 = vpop.eup %14098  ;;  %14110 = vrcp.f32 %v6035_v44  ;;  %v5968_v38 = vmul.f32 1.442695, %v5859_v17 }
 0x420   :  { %17755 = vst [vmem:[#allocation19_spill] sm:$0xff] %v16142_v55  ;;  %v16144_v2 = vpop.eup %14100  ;;  %v16146_v19 = vpop.xlane.xlu1 %5761  ;;  %v6132_v10 = vsel %vm5621_vm2, %v16142_v55, 0.0 }
 0x421   :  { %v5747_v42 = vpop.xlane.xlu0 %5746  ;;  %v6117_v15 = vsel %vm5621_vm2, %v16144_v2, 0.0  ;;  %6133 = vadd.xlane.f32.xlu1 %v6132_v10  ;;  %v14103_v36 = vpop.eup %14102 }
 0x422   :  { %v5855_v5 = vsub.f32 %v15838_v39, %v5747_v42  ;;  %6118 = vadd.xlane.f32.xlu0 %v6117_v15  ;;  %v6270_v26 = vmul.f32 %v14103_v36, %v15842_v50  ;;  %v14105_v6 = vpop.eup %14104  ;;  %v17756_v42 = vld [vmem:[#allocation27_spill] sm:$0xff] }
 0x423   :  { %v6272_v50 = vmul.f32 %v14105_v6, %v15848_v45  ;;  %v17759_v45 = vld [vmem:[#allocation47_spill] sm:$0xff] }
 0x424   :  { %v5960_v34 = vmul.f32 1.442695, %v5855_v5  ;;  %v16155_v44 = vpop.xlane.xlu1 %5764  ;;  %13358 = vmatmul.mubr.msk.f32.vlgmr.msra.gmra.mrb[96].mxu0 %vm5621_vm2, %v6270_v26 }
 0x425   :  { %v5753_v9 = vpop.xlane.xlu0 %5752  ;;  %13366 = vmatpush3.msra.mxu0 %v17756_v42  ;;  %13367 = vmatprep.mubr.msk.f32.mxu0 %vm14492_vm0, %v17687_v63 }
 0x426   :  { %14112 = vpow2.f32 %v5960_v34  ;;  %v5857_v39 = vsub.f32 %v15851_v25, %v5753_v9  ;;  %13375 = vmatprep.subr.mxu0 %v17687_v63  ;;  %v17758_v34 = vld [vmem:[#allocation37_spill] sm:$0xff] }
 0x427   :  { %v16162_v61 = vpop.eup %14106 }
 0x428   :  { %17757 = vst [vmem:[#allocation21_spill] sm:$0xff] %v16162_v61  ;;  %v5964_v51 = vmul.f32 1.442695, %v5857_v39  ;;  %v16166_v10 = vpop.eup %14108  ;;  %v16168_v15 = vpop.xlane.xlu1 %5767  ;;  %v6138_v25 = vsel %vm5621_vm2, %v16162_v61, 0.0  ;;  %13368 = vmatmul.mubr.msk.f32.vlgmr.msra.gmra.mrb[98].mxu0 %vm5621_vm2, %v6272_v50  ;;  %v17760_v39 = vld [vmem:[#allocation40_spill] sm:$0xff]  ;;  %v17765_v61 = vld [vmem:[#allocation41_spill] sm:$0xff] }
 0x429   :  { %v6041_v5 = vpop.xlane.xlu0 %6040  ;;  %v14111_v36 = vpop.eup %14110  ;;  %v6123_v17 = vsel %vm5621_vm2, %v16166_v10, 0.0  ;;  %6139 = vadd.xlane.f32.xlu1 %v6138_v25  ;;  %13376 = vmatpush3.msra.mxu0 %v17758_v34 }
 0x42a   :  { %14114 = vpow2.f32 %v5964_v51  ;;  %6124 = vadd.xlane.f32.xlu0 %v6123_v17  ;;  %v6271_v26 = vmul.f32 %v14111_v36, %v17759_v45  ;;  %13377 = vmatprep.mubr.msk.f32.mxu0 %vm14492_vm0, %v17687_v63 }
 0x42b   :  { %14116 = vpow2.f32 %v5968_v38  ;;  %13385 = vmatprep.subr.mxu0 %v17687_v63 }
 0x42c   :  { %14118 = vrcp.f32 %v6041_v5  ;;  %13363 = vmatmul.mubr.msk.f32.vlgmr.msra.gmra.mrb[96].mxu1 %vm5621_vm2, %v6271_v26  ;;  %v16181_v9 = vpop.xlane.xlu1 %5770 }
 0x42d   :  { %v6044_v6 = vpop.xlane.xlu0 %6043  ;;  %13371 = vmatpush3.msra.mxu1 %v17760_v39  ;;  %13372 = vmatprep.mubr.msk.f32.mxu1 %vm14492_vm0, %v17687_v63 }
 0x42e   :  { %14120 = vrcp.f32 %v6044_v6  ;;  %13380 = vmatprep.subr.mxu1 %v17687_v63 }
 0x430   :  { %v16187_v38 = vpop.eup %14112  ;;  %v16189_v50 = vpop.xlane.xlu1 %5773 }
 0x431   :  { %17761 = vst [vmem:[#allocation22_spill] sm:$0xff] %v16187_v38  ;;  %v6047_v51 = vpop.xlane.xlu0 %6046  ;;  %v6129_v5 = vsel %vm5621_vm2, %v16187_v38, 0.0 }
 0x432   :  { %6130 = vadd.xlane.f32.xlu0 %v6129_v5  ;;  %14122 = vrcp.f32 %v6047_v51 }
 0x434   :  { %v16193_v25 = vpop.eup %14114  ;;  %v6050_v45 = vpop.xlane.xlu1 %6049 }
 0x435   :  { %17762 = vst [vmem:[#allocation25_spill] sm:$0xff] %v16193_v25  ;;  %v16195_v36 = vpop.eup %14116  ;;  %v6053_v17 = vpop.xlane.xlu0 %6052  ;;  %v6135_v26 = vsel %vm5621_vm2, %v16193_v25, 0.0 }
 0x436   :  { %17763 = vst [vmem:[#allocation23_spill] sm:$0xff] %v16195_v36  ;;  %v14119_v6 = vpop.eup %14118  ;;  %6136 = vadd.xlane.f32.xlu0 %v6135_v26  ;;  %14124 = vrcp.f32 %v6053_v17  ;;  %v6141_v47 = vsel %vm5621_vm2, %v16195_v36, 0.0  ;;  %v17767_v17 = vld [vmem:[#allocation17_spill] sm:$0xff] }
 0x437   :  { %v6273_v28 = vmul.f32 %v14119_v6, %v17764_v53  ;;  %14126 = vrcp.f32 %v6050_v45 }
 0x438   :  { %v14121_v58 = vpop.eup %14120  ;;  %v16201_v51 = vpop.xlane.xlu1 %5776 }
 0x439   :  { %13373 = vmatmul.mubr.msk.f32.vlgmr.msra.gmra.mrb[98].mxu1 %vm5621_vm2, %v6273_v28  ;;  %v6056_v5 = vpop.xlane.xlu0 %6055  ;;  %v6274_v55 = vmul.f32 %v14121_v58, %v17766_v32  ;;  %v17768_v28 = vld [vmem:[#allocation43_spill] sm:$0xff] }
 0x43a   :  { %13381 = vmatpush3.msra.mxu1 %v17765_v61  ;;  %14128 = vrcp.f32 %v6056_v5  ;;  %6142 = vadd.xlane.f32.xlu0 %v6141_v47  ;;  %v17769_v47 = vld [vmem:[#allocation56_spill] sm:$0xff] }
 0x43b   :  { %788 = vrot.lane.b32.xlu1 %v17767_v17, %s14493_s2  ;;  %13382 = vmatprep.mubr.msk.f32.mxu1 %vm14492_vm0, %v17687_v63  ;;  %v17773_v17 = vld [vmem:[#allocation28_spill] sm:$0xff] }
 0x43c   :  { %13378 = vmatmul.mubr.msk.f32.vlgmr.msra.gmra.mrb[100].mxu0 %vm5621_vm2, %v6274_v55  ;;  %13390 = vmatprep.subr.mxu1 %v17687_v63  ;;  %v14123_v53 = vpop.eup %14122  ;;  %v16214_v26 = vpop.xlane.xlu1 %5779  ;;  %v17770_v55 = vld [vmem:[#allocation42_spill] sm:$0xff] }
 0x43d   :  { %13386 = vmatpush3.msra.mxu0 %v17768_v28  ;;  %v6059_v45 = vpop.xlane.xlu0 %6058  ;;  %13387 = vmatprep.mubr.msk.f32.mxu0 %vm14492_vm0, %v17687_v63  ;;  %v6275_v58 = vmul.f32 %v14123_v53, %v17769_v47  ;;  %v17771_v53 = vld [vmem:[#allocation57_spill] sm:$0xff] }
 0x43e   :  { %13395 = vmatprep.subr.mxu0 %v17687_v63  ;;  %14130 = vrcp.f32 %v6059_v45 }
 0x43f   :  { %13383 = vmatmul.mubr.msk.f32.vlgmr.msra.gmra.mrb[100].mxu1 %vm5621_vm2, %v6275_v58  ;;  %v17772_v58 = vld [vmem:[#allocation29_spill] sm:$0xff] }
 0x440   :  { %v14125_v32 = vpop.eup %14124  ;;  %13391 = vmatpush3.msra.mxu1 %v17770_v55  ;;  %v16222_v5 = vpop.xlane.xlu1 %5782  ;;  %13392 = vmatprep.mubr.msk.f32.mxu1 %vm14492_vm0, %v17687_v63 }
 0x441   :  { %v6065_v6 = vpop.xlane.xlu0 %6064  ;;  %v14127_v36 = vpop.eup %14126  ;;  %13400 = vmatprep.subr.mxu1 %v17687_v63  ;;  %v6277_v7 = vmul.f32 %v14125_v32, %v15935_v49 }
 0x442   :  { %14132 = vrcp.f32 %v6065_v6  ;;  %v6276_v47 = vmul.f32 %v14127_v36, %v17771_v53 }
 0x443   :  { %13393 = vmatmul.mubr.msk.f32.vlgmr.msra.gmra.mrb[102].mxu1 %vm5621_vm2, %v6277_v7  ;;  %v17774_v7 = vld [vmem:[#allocation45_spill] sm:$0xff] }
 0x444   :  { %v14129_v45 = vpop.eup %14128  ;;  %13388 = vmatmul.mubr.msk.f32.vlgmr.msra.gmra.mrb[102].mxu0 %vm5621_vm2, %v6276_v47  ;;  %13401 = vmatpush3.msra.mxu1 %v17772_v58  ;;  %v16234_v38 = vpop.xlane.xlu1 %5785  ;;  %v5860_v36 = vsub.f32 %v17774_v7, %v16146_v19  ;;  %v17776_v19 = vld [vmem:[#allocation30_spill] sm:$0xff] }
 0x445   :  { %v16232_v25 = vpop.xlane.xlu0 %6067  ;;  %v6278_v24 = vmul.f32 %v14129_v45, %v15944_v27  ;;  %13396 = vmatpush3.msra.mxu0 %v17773_v17  ;;  %13397 = vmatprep.mubr.msk.f32.mxu0 %vm14492_vm0, %v17687_v63  ;;  %v17775_v17 = vld [vmem:[#allocation31_spill] sm:$0xff]  ;;  %v17777_v58 = vld [vmem:[#allocation18_spill] sm:$0xff] }
 0x446   :  { %13405 = vmatprep.subr.mxu0 %v17687_v63  ;;  %13402 = vmatprep.mubr.msk.f32.mxu1 %vm14492_vm0, %v17687_v63  ;;  %v5970_v47 = vmul.f32 1.442695, %v5860_v36 }
 0x447   :  { %13410 = vmatprep.subr.mxu1 %v17687_v63 }
 0x448   :  { %v14131_v49 = vpop.eup %14130  ;;  %13398 = vmatmul.mubr.msk.f32.vlgmr.msra.gmra.mrb[104].mxu0 %vm5621_vm2, %v6278_v24  ;;  %v16247_v27 = vpop.xlane.xlu1 %5788 }
 0x449   :  { %v6071_v32 = vpop.xlane.xlu0 %6070  ;;  %13406 = vmatpush3.msra.mxu0 %v17775_v17  ;;  %v6279_v6 = vmul.f32 %v14131_v49, %v15955_v20  ;;  %13407 = vmatprep.mubr.msk.f32.mxu0 %vm14492_vm0, %v17687_v63  ;;  %v17778_v49 = vld [vmem:[#allocation33_spill] sm:$0xff] }
 0x44a   :  { %14134 = vrcp.f32 %v6071_v32  ;;  %13415 = vmatprep.subr.mxu0 %v17687_v63 }
 0x44b   :  { %13403 = vmatmul.mubr.msk.f32.vlgmr.msra.gmra.mrb[104].mxu1 %vm5621_vm2, %v6279_v6 }
 0x44c   :  { %v14133_v53 = vpop.eup %14132  ;;  %13411 = vmatpush3.msra.mxu1 %v17776_v19  ;;  %v16256_v45 = vpop.xlane.xlu1 %5791  ;;  %13412 = vmatprep.mubr.msk.f32.mxu1 %vm14492_vm0, %v17687_v63 }
 0x44d   :  { %v6077_v24 = vpop.xlane.xlu0 %6076  ;;  %13420 = vmatprep.subr.mxu1 %v17687_v63  ;;  %v6281_v20 = vmul.f32 %v14133_v53, %v15964_v23 }
 0x44e   :  { %14136 = vrcp.f32 %v6077_v24  ;;  %v17780_v24 = vld [vmem:[#allocation34_spill] sm:$0xff] }
 0x44f   :  { %13413 = vmatmul.mubr.msk.f32.vlgmr.msra.gmra.mrb[106].mxu1 %vm5621_vm2, %v6281_v20  ;;  %14138 = vpow2.f32 %v5970_v47  ;;  %v17779_v47 = vld [vmem:[#allocation48_spill] sm:$0xff] }
 0x450   :  { %790 = vrot.lane.b32.xlu0 %v17777_v58, %s14493_s2  ;;  %13421 = vmatpush3.msra.mxu1 %v17778_v49  ;;  %v5861_v19 = vsub.f32 %v17779_v47, %v16155_v44 }
 0x451   :  { %v6080_v7 = vpop.xlane.xlu0 %6079  ;;  %13422 = vmatprep.mubr.msk.f32.mxu1 %vm14492_vm0, %v17687_v63  ;;  %v16268_v36 = vpop.xlane.xlu1 %5794  ;;  %13430 = vmatprep.subr.mxu1 %v17687_v63 }
 0x454   :  { %v14135_v32 = vpop.eup %14134 }
 0x455   :  { %v6083_v17 = vpop.xlane.xlu0 %6082  ;;  %v16271_v23 = vpop.xlane.xlu1 %5797  ;;  %v6283_v6 = vmul.f32 %v14135_v32, %v15979_v31  ;;  %v5972_v31 = vmul.f32 1.442695, %v5861_v19  ;;  %v17781_v32 = vld [vmem:[#allocation38_spill] sm:$0xff]  ;;  %v17782_v19 = vld [vmem:[#allocation60_spill] sm:$0xff] }
 0x456   :  { %14140 = vrcp.f32 %v6083_v17 }
 0x457   :  { %13423 = vmatmul.mubr.msk.f32.vlgmr.msra.gmra.mrb[108].mxu1 %vm5621_vm2, %v6283_v6  ;;  %14142 = vpow2.f32 %v5972_v31 }
 0x458   :  { %v14137_v53 = vpop.eup %14136  ;;  %13431 = vmatpush3.msra.mxu1 %v17780_v24  ;;  %13432 = vmatprep.mubr.msk.f32.mxu1 %vm14492_vm0, %v17687_v63 }
 0x459   :  { %v16280_v20 = vpop.xlane.xlu1 %5800  ;;  %13440 = vmatprep.subr.mxu1 %v17687_v63  ;;  %v6285_v49 = vmul.f32 %v14137_v53, %v15985_v48  ;;  %v16284_v17 = vpop.eup %14138 }
 0x45a   :  { %v6144_v6 = vsel %vm5621_vm2, %v16284_v17, 0.0 }
 0x45b   :  { %13433 = vmatmul.mubr.msk.f32.vlgmr.msra.gmra.mrb[110].mxu1 %vm5621_vm2, %v6285_v49 }
 0x45c   :  { %13441 = vmatpush3.msra.mxu1 %v17781_v32  ;;  %13442 = vmatprep.mubr.msk.f32.mxu1 %vm14492_vm0, %v17687_v63 }
 0x45d   :  { %v16290_v44 = vpop.xlane.xlu1 %5803  ;;  %13450 = vmatprep.subr.mxu1 %v17687_v63 }
 0x45f   :  { %6145 = vadd.xlane.f32.xlu1 %v6144_v6 }
 0x460   :  { %v14141_v47 = vpop.eup %14140 }
 0x461   :  { %v6287_v48 = vmul.f32 %v14141_v47, %v15996_v30  ;;  %v16296_v53 = vpop.xlane.xlu1 %5806  ;;  %v16307_v31 = vpop.eup %14142 }
 0x462   :  { %v6147_v6 = vsel %vm5621_vm2, %v16307_v31, 0.0 }
 0x463   :  { %13443 = vmatmul.mubr.msk.f32.vlgmr.msra.gmra.mrb[112].mxu1 %vm5621_vm2, %v6287_v48 }
 0x464   :  { %13451 = vmatpush3.msra.mxu1 %v17782_v19  ;;  %13452 = vmatprep.mubr.msk.f32.mxu1 %vm14492_vm0, %v17687_v63 }
 0x465   :  { %13460 = vmatprep.subr.mxu1 %v17687_v63  ;;  %v16303_v24 = vpop.xlane.xlu1 %5809 }
 0x466   :  { %17783 = vst [vmem:[#allocation26_spill] sm:$0xff] %v16303_v24  ;;  %v6089_v49 = vpop.xlane.xlu0 %6088 }
 0x467   :  { %14144 = vrcp.f32 %v6089_v49  ;;  %v17785_v49 = vld [vmem:[#allocation62_spill] sm:$0xff] }
 0x469   :  { %v16305_v32 = vpop.xlane.xlu1 %5812 }
 0x46a   :  { %17784 = vst [vmem:[#allocation27_spill] sm:$0xff] %v16305_v32 }
 0x46d   :  { %v6062_v30 = vpop.xlane.xlu1 %6061 }
 0x46e   :  { %14146 = vrcp.f32 %v6062_v30 }
 0x46f   :  { %6148 = vadd.xlane.f32.xlu0 %v6147_v6  ;;  %14148 = vrcp.f32 %v16232_v25 }
 0x470   :  { %792 = vrot.lane.b32.xlu1 %v17746_v16, %s14493_s2 }
 0x471   :  { %v14145_v47 = vpop.eup %14144  ;;  %v6074_v48 = vpop.xlane.xlu1 %6073 }
 0x472   :  { %v6289_v19 = vmul.f32 %v14145_v47, %v16021_v35  ;;  %14150 = vrcp.f32 %v6074_v48  ;;  %v17786_v35 = vld [vmem:[#allocation46_spill] sm:$0xff]  ;;  %v17787_v48 = vld [vmem:[#allocation32_spill] sm:$0xff] }
 0x473   :  { %14152 = vrcp.f32 %v6080_v7  ;;  %v5862_v47 = vsub.f32 %v17786_v35, %v16168_v15 }
 0x474   :  { %13453 = vmatmul.mubr.msk.f32.vlgmr.msra.gmra.mrb[114].mxu1 %vm5621_vm2, %v6289_v19 }
 0x475   :  { %13461 = vmatpush3.msra.mxu1 %v17785_v49  ;;  %13462 = vmatprep.mubr.msk.f32.mxu1 %vm14492_vm0, %v17687_v63  ;;  %v6086_v6 = vpop.xlane.xlu1 %6085 }
 0x476   :  { %13470 = vmatprep.subr.mxu1 %v17687_v63  ;;  %14154 = vrcp.f32 %v6086_v6 }
 0x478   :  { %v14147_v30 = vpop.eup %14146 }
 0x479   :  { %v6280_v32 = vmul.f32 %v14147_v30, %v16031_v3  ;;  %v14149_v25 = vpop.eup %14148  ;;  %v5974_v3 = vmul.f32 1.442695, %v5862_v47 }
 0x47a   :  { %v6092_v24 = vpop.xlane.xlu0 %6091  ;;  %v6282_v7 = vmul.f32 %v14149_v25, %v15973_v14  ;;  %v17789_v14 = vld [vmem:[#allocation36_spill] sm:$0xff]  ;;  %v17790_v25 = vld [vmem:[#allocation39_spill] sm:$0xff] }
 0x47b   :  { %13408 = vmatmul.mubr.msk.f32.vlgmr.msra.gmra.mrb[106].mxu0 %vm5621_vm2, %v6280_v32  ;;  %v17788_v32 = vld [vmem:[#allocation35_spill] sm:$0xff] }
 0x47c   :  { %13416 = vmatpush3.msra.mxu0 %v17787_v48  ;;  %13417 = vmatprep.mubr.msk.f32.mxu0 %vm14492_vm0, %v17687_v63  ;;  %v14151_v49 = vpop.eup %14150 }
 0x47d   :  { %13425 = vmatprep.subr.mxu0 %v17687_v63  ;;  %v6284_v15 = vmul.f32 %v14151_v49, %v16045_v37  ;;  %v14153_v30 = vpop.eup %14152  ;;  %v17793_v49 = vld [vmem:[#allocation63_spill] sm:$0xff] }
 0x47e   :  { %v6095_v19 = vpop.xlane.xlu0 %6094 }
 0x47f   :  { %14156 = vrcp.f32 %v6095_v19  ;;  %13418 = vmatmul.mubr.msk.f32.vlgmr.msra.gmra.mrb[108].mxu0 %vm5621_vm2, %v6282_v7  ;;  %v17792_v7 = vld [vmem:[#allocation61_spill] sm:$0xff] }
 0x480   :  { %14158 = vrcp.f32 %v6092_v24  ;;  %13426 = vmatpush3.msra.mxu0 %v17788_v32  ;;  %13427 = vmatprep.mubr.msk.f32.mxu0 %vm14492_vm0, %v17687_v63  ;;  %v6286_v24 = vmul.f32 %v14153_v30, %v15991_v29  ;;  %v14155_v6 = vpop.eup %14154  ;;  %v17791_v29 = vld [vmem:[#allocation50_spill] sm:$0xff] }
 0x481   :  { %13435 = vmatprep.subr.mxu0 %v17687_v63  ;;  %14160 = vpow2.f32 %v5974_v3  ;;  %v6288_v35 = vmul.f32 %v14155_v6, %v16051_v46  ;;  %v5863_v19 = vsub.f32 %v17791_v29, %v16181_v9  ;;  %v17794_v3 = vld [vmem:[#allocation44_spill] sm:$0xff] }
 0x483   :  { %13428 = vmatmul.mubr.msk.f32.vlgmr.msra.gmra.mrb[110].mxu0 %vm5621_vm2, %v6284_v15  ;;  %v5976_v9 = vmul.f32 1.442695, %v5863_v19 }
 0x484   :  { %13436 = vmatpush3.msra.mxu0 %v17789_v14  ;;  %13437 = vmatprep.mubr.msk.f32.mxu0 %vm14492_vm0, %v17687_v63 }
 0x485   :  { %794 = vrot.lane.b32.xlu0 %v17747_v60, %s14493_s2  ;;  %13445 = vmatprep.subr.mxu0 %v17687_v63 }
 0x487   :  { %13438 = vmatmul.mubr.msk.f32.vlgmr.msra.gmra.mrb[112].mxu0 %vm5621_vm2, %v6286_v24 }
 0x488   :  { %13446 = vmatpush3.msra.mxu0 %v17790_v25  ;;  %13447 = vmatprep.mubr.msk.f32.mxu0 %vm14492_vm0, %v17687_v63 }
 0x489   :  { %v14157_v37 = vpop.eup %14156  ;;  %13455 = vmatprep.subr.mxu0 %v17687_v63 }
 0x48a   :  { %v6291_v47 = vmul.f32 %v14157_v37, %v16059_v0  ;;  %v14159_v48 = vpop.eup %14158 }
 0x48b   :  { %13448 = vmatmul.mubr.msk.f32.vlgmr.msra.gmra.mrb[114].mxu0 %vm5621_vm2, %v6288_v35  ;;  %v6290_v46 = vmul.f32 %v14159_v48, %v16055_v56  ;;  %v16360_v0 = vpop.eup %14160 }
 0x48c   :  { %13463 = vmatmul.mubr.msk.f32.vlgmr.msra.gmra.mrb[116].mxu1 %vm5621_vm2, %v6291_v47  ;;  %13456 = vmatpush3.msra.mxu0 %v17792_v7  ;;  %v6150_v15 = vsel %vm5621_vm2, %v16360_v0, 0.0 }
 0x48d   :  { %13471 = vmatpush3.msra.mxu1 %v17793_v49  ;;  %13457 = vmatprep.mubr.msk.f32.mxu0 %vm14492_vm0, %v17687_v63 }
 0x48e   :  { %13465 = vmatprep.subr.mxu0 %v17687_v63  ;;  %13472 = vmatprep.mubr.msk.f32.mxu1 %vm14492_vm0, %v17687_v63 }
 0x48f   :  { %13480 = vmatprep.subr.mxu1 %v17687_v63  ;;  %13458 = vmatmul.mubr.msk.f32.vlgmr.msra.gmra.mrb[116].mxu0 %vm5621_vm2, %v6290_v46 }
 0x490   :  { %13466 = vmatpush3.msra.mxu0 %v17794_v3  ;;  %13467 = vmatprep.mubr.msk.f32.mxu0 %vm14492_vm0, %v17687_v63 }
 0x491   :  { %13475 = vmatprep.subr.mxu0 %v17687_v63 }
 0x492   :  { %v6098_v32 = vpop.xlane.xlu1 %6097 }
 0x493   :  { %14162 = vrcp.f32 %v6098_v32 }
 0x494   :  { %6151 = vadd.xlane.f32.xlu1 %v6150_v15  ;;  %14164 = vpow2.f32 %v5976_v9 }
 0x495   :  { %v16372_v56 = vpop.f32.mrb[88].mxu0 }
 0x496   :  { %17795 = vst [vmem:[#allocation37_spill] sm:$0xff] %v16372_v56  ;;  %v13319_v30 = vpop.f32.mrb[89].mxu0 }
 0x49a   :  { %v16374_v6 = vpop.xlane.xlu1 %6109 }
 0x49b   :  { %v6101_v14 = vpop.xlane.xlu0 %6100 }
 0x49c   :  { %14166 = vrcp.f32 %v6101_v14 }
 0x49d   :  { %v14163_v24 = vpop.eup %14162 }
 0x49e   :  { %v6292_v37 = vmul.f32 %v14163_v24, %v16079_v43  ;;  %v16377_v25 = vpop.eup %14164 }
 0x49f   :  { %v6153_v47 = vsel %vm5621_vm2, %v16377_v25, 0.0  ;;  %v6104_v48 = vpop.xlane.xlu0 %6103 }
 0x4a0   :  { %13468 = vmatmul.mubr.msk.f32.vlgmr.msra.gmra.mrb[118].mxu0 %vm5621_vm2, %v6292_v37  ;;  %14168 = vrcp.f32 %v6104_v48  ;;  %v5865_v37 = vsub.f32 %v15890_v52, %v16201_v51 }
 0x4a1   :  { %13477 = vmatprep.mubr.msk.f32.mxu0 %vm14492_vm0, %v17687_v63 }
 0x4a2   :  { %v16382_v35 = vpop.xlane.xlu1 %6115 }
 0x4a3   :  { %v6107_v7 = vpop.xlane.xlu0 %6106 }
 0x4a4   :  { %6154 = vadd.xlane.f32.xlu0 %v6153_v47  ;;  %14170 = vrcp.f32 %v6107_v7 }
 0x4a5   :  { %796 = vrot.lane.b32.xlu1 %v17748_v41, %s14493_s2 }
 0x4a6   :  { %v14167_v29 = vpop.eup %14166  ;;  %v16388_v19 = vpop.xlane.xlu1 %6121 }
 0x4a7   :  { %v6293_v43 = vmul.f32 %v14167_v29, %v16091_v12  ;;  %v6113_v3 = vpop.xlane.xlu0 %6112 }
 0x4a9   :  { %800 = vrot.lane.b32.xlu1 %v17750_v59, %s14493_s2  ;;  %13473 = vmatmul.mubr.msk.f32.vlgmr.msra.gmra.mrb[118].mxu1 %vm5621_vm2, %v6293_v43  ;;  %v5980_v43 = vmul.f32 1.442695, %v5865_v37 }
 0x4aa   :  { %13482 = vmatprep.mubr.msk.f32.mxu1 %vm14492_vm0, %v17687_v63  ;;  %v16396_v49 = vpop.xlane.xlu1 %6127  ;;  %v14169_v24 = vpop.eup %14168 }
 0x4ab   :  { %v6294_v29 = vmul.f32 %v14169_v24, %v16087_v22  ;;  %14172 = vpow2.f32 %v5980_v43 }
 0x4ad   :  { %802 = vrot.lane.b32.xlu1 %v17752_v21, %s14493_s2 }
 0x4ae   :  { %v16400_v46 = vpop.f32.mrb[88].mxu1  ;;  %v16404_v32 = vpop.xlane.xlu1 %6133 }
 0x4af   :  { %17796 = vst [vmem:[#allocation47_spill] sm:$0xff] %v16400_v46  ;;  %v13324_v9 = vpop.f32.mrb[89].mxu1  ;;  %v16406_v30 = vpop.xlane.xlu0 %6118 }
 0x4b1   :  { %v16402_v12 = vpop.f32.mrb[90].mxu0 }
 0x4b2   :  { %17797 = vst [vmem:[#allocation40_spill] sm:$0xff] %v16402_v12  ;;  %v13329_v15 = vpop.f32.mrb[91].mxu0 }
 0x4b3   :  { %v17798_v15 = vld [vmem:[#allocation49_spill] sm:$0xff] }
 0x4b4   :  { %v5864_v52 = vsub.f32 %v17798_v15, %v16189_v50 }
 0x4b6   :  { %v16408_v14 = vpop.xlane.xlu1 %6139  ;;  %v5978_v12 = vmul.f32 1.442695, %v5864_v52 }
 0x4b7   :  { %v16414_v47 = vpop.xlane.xlu0 %6124 }
 0x4b8   :  { %14174 = vpow2.f32 %v5978_v12 }
 0x4b9   :  { %14176 = vrcp.f32 %v16374_v6 }
 0x4ba   :  { %798 = vrot.lane.b32.xlu0 %v17749_v1, %s14493_s2  ;;  %v789_v48 = vpop.permute.xlu1 %788  ;;  %14178 = vrcp.f32 %v6113_v3 }
 0x4bb   :  { %13476 = vmatpush3.msra.mxu0 %v789_v48  ;;  %v14171_v48 = vpop.eup %14170 }
 0x4bc   :  { %13478 = vmatmul.mubr.msk.f32.vlgmr.msra.gmra.mrb[120].mxu0 %vm5621_vm2, %v6294_v29  ;;  %13485 = vmatprep.subr.mxu0 %v17687_v63  ;;  %v6295_v46 = vmul.f32 %v14171_v48, %v16113_v8  ;;  %v16434_v59 = vpop.eup %14172 }
 0x4bd   :  { %13487 = vmatprep.mubr.msk.f32.mxu0 %vm14492_vm0, %v17687_v63  ;;  %v6159_v50 = vsel %vm5621_vm2, %v16434_v59, 0.0 }
 0x4bf   :  { %v16421_v9 = vpop.xlane.xlu0 %6130 }
 0x4c2   :  { %v16442_v43 = vpop.eup %14174 }
 0x4c3   :  { %v16425_v51 = vpop.xlane.xlu0 %6136  ;;  %v14177_v48 = vpop.eup %14176 }
 0x4c4   :  { %v6296_v6 = vmul.f32 %v14177_v48, %v16089_v18  ;;  %v17804_v48 = vld [vmem:[#allocation51_spill] sm:$0xff]  ;;  %v14179_v3 = vpop.eup %14178 }
 0x4c6   :  { %v16427_v22 = vpop.f32.mrb[90].mxu1 }
 0x4c7   :  { %v16429_v24 = vpop.xlane.xlu0 %6142  ;;  %v13334_v29 = vpop.f32.mrb[91].mxu1 }
 0x4c9   :  { %v16431_v7 = vpop.f32.mrb[92].mxu0 }
 0x4ca   :  { %17799 = vst [vmem:[#allocation52_spill] sm:$0xff] %v16431_v7  ;;  %v13339_v56 = vpop.f32.mrb[93].mxu0 }
 0x4cb   :  { %v791_v37 = vpop.permute.xlu0 %790  ;;  %v6156_v56 = vsel %vm5621_vm2, %v16442_v43, 0.0 }
 0x4cc   :  { %13481 = vmatpush3.msra.mxu1 %v791_v37 }
 0x4cd   :  { %13483 = vmatmul.mubr.msk.f32.vlgmr.msra.gmra.mrb[120].mxu1 %vm5621_vm2, %v6295_v46  ;;  %13490 = vmatprep.subr.mxu1 %v17687_v63 }
 0x4ce   :  { %13492 = vmatprep.mubr.msk.f32.mxu1 %vm14492_vm0, %v17687_v63 }
 0x4d1   :  { %6160 = vadd.xlane.f32.xlu1 %v6159_v50 }
 0x4d9   :  { %6157 = vadd.xlane.f32.xlu0 %v6156_v56  ;;  %v5867_v56 = vsub.f32 %v15903_v33, %v16222_v5  ;;  %v6297_v33 = vmul.f32 %v14179_v3, %v16124_v11 }
 0x4e2   :  { %806 = vrot.lane.b32.xlu1 %v17754_v40, %s14493_s2 }
 0x4e3   :  { %v16449_v8 = vpop.f32.mrb[94].mxu0 }
 0x4e4   :  { %17800 = vst [vmem:[#allocation41_spill] sm:$0xff] %v16449_v8  ;;  %v16451_v46 = vpop.f32.mrb[92].mxu1  ;;  %v13349_v12 = vpop.f32.mrb[95].mxu0 }
 0x4e5   :  { %17801 = vst [vmem:[#allocation53_spill] sm:$0xff] %v16451_v46  ;;  %v13344_v15 = vpop.f32.mrb[93].mxu1  ;;  %v5984_v12 = vmul.f32 1.442695, %v5867_v56 }
 0x4e6   :  { %810 = vrot.lane.b32.xlu1 %v17760_v39, %s14493_s2 }
 0x4e7   :  { %14180 = vpow2.f32 %v5984_v12 }
 0x4ec   :  { %v16455_v52 = vpop.xlane.xlu1 %6145 }
 0x4ef   :  { %804 = vrot.lane.b32.xlu0 %v17751_v62, %s14493_s2  ;;  %v16459_v29 = vpop.f32.mrb[94].mxu1 }
 0x4f0   :  { %17802 = vst [vmem:[#allocation43_spill] sm:$0xff] %v16459_v29  ;;  %v793_v37 = vpop.permute.xlu1 %792  ;;  %v13354_v50 = vpop.f32.mrb[95].mxu1 }
 0x4f1   :  { %13486 = vmatpush3.msra.mxu0 %v793_v37  ;;  %v5866_v37 = vsub.f32 %v17804_v48, %v16214_v26  ;;  %v16485_v26 = vpop.eup %14180 }
 0x4f2   :  { %13488 = vmatmul.mubr.msk.f32.vlgmr.msra.gmra.mrb[122].mxu0 %vm5621_vm2, %v6296_v6  ;;  %13495 = vmatprep.subr.mxu0 %v17687_v63 }
 0x4f3   :  { %808 = vrot.lane.b32.xlu0 %v17756_v42, %s14493_s2  ;;  %13497 = vmatprep.mubr.msk.f32.mxu0 %vm14492_vm0, %v17687_v63  ;;  %v5982_v8 = vmul.f32 1.442695, %v5866_v37 }
 0x4f5   :  { %14182 = vpow2.f32 %v5982_v8 }
 0x4f6   :  { %14184 = vrcp.f32 %v16382_v35 }
 0x4f7   :  { %v16470_v15 = vpop.f32.mrb[96].mxu0  ;;  %14186 = vrcp.f32 %v16388_v19 }
 0x4f8   :  { %17803 = vst [vmem:[#allocation56_spill] sm:$0xff] %v16470_v15  ;;  %v13359_v18 = vpop.f32.mrb[97].mxu0  ;;  %14188 = vrcp.f32 %v16406_v30  ;;  %v5869_v30 = vsub.f32 %v15914_v54, %v16247_v27 }
 0x4f9   :  { %14190 = vrcp.f32 %v16414_v47  ;;  %v5868_v47 = vsub.f32 %v15892_v13, %v16234_v38 }
 0x4fb   :  { %v16476_v50 = vpop.f32.mrb[98].mxu0  ;;  %v5986_v27 = vmul.f32 1.442695, %v5868_v47 }
 0x4fc   :  { %v16474_v6 = vpop.xlane.xlu0 %6148  ;;  %17805 = vst [vmem:[#allocation42_spill] sm:$0xff] %v16476_v50  ;;  %v13369_v29 = vpop.f32.mrb[99].mxu0 }
 0x4fd   :  { %v6165_v29 = vsel %vm5621_vm2, %v16485_v26, 0.0 }
 0x4ff   :  { %v16478_v46 = vpop.f32.mrb[96].mxu1  ;;  %v16491_v11 = vpop.eup %14182 }
 0x500   :  { %17806 = vst [vmem:[#allocation57_spill] sm:$0xff] %v16478_v46  ;;  %v795_v7 = vpop.permute.xlu0 %794  ;;  %v13364_v5 = vpop.f32.mrb[97].mxu1  ;;  %v6162_v48 = vsel %vm5621_vm2, %v16491_v11, 0.0 }
 0x501   :  { %13491 = vmatpush3.msra.mxu1 %v795_v7 }
 0x502   :  { %13493 = vmatmul.mubr.msk.f32.vlgmr.msra.gmra.mrb[122].mxu1 %vm5621_vm2, %v6297_v33  ;;  %13500 = vmatprep.subr.mxu1 %v17687_v63 }
 0x503   :  { %13502 = vmatprep.mubr.msk.f32.mxu1 %vm14492_vm0, %v17687_v63 }
 0x50a   :  { %6166 = vadd.xlane.f32.xlu1 %v6165_v29 }
 0x50c   :  { %v16489_v56 = vpop.f32.mrb[98].mxu1 }
 0x50d   :  { %17807 = vst [vmem:[#allocation29_spill] sm:$0xff] %v16489_v56  ;;  %v13374_v12 = vpop.f32.mrb[99].mxu1 }
 0x50f   :  { %v16493_v7 = vpop.f32.mrb[100].mxu0 }
 0x510   :  { %17808 = vst [vmem:[#allocation28_spill] sm:$0xff] %v16493_v7  ;;  %v13379_v18 = vpop.f32.mrb[101].mxu0 }
 0x512   :  { %6163 = vadd.xlane.f32.xlu0 %v6162_v48  ;;  %v16497_v37 = vpop.f32.mrb[100].mxu1 }
 0x513   :  { %17809 = vst [vmem:[#allocation45_spill] sm:$0xff] %v16497_v37  ;;  %v13384_v8 = vpop.f32.mrb[101].mxu1 }
 0x516   :  { %v16499_v3 = vpop.f32.mrb[102].mxu1 }
 0x517   :  { %17810 = vst [vmem:[#allocation31_spill] sm:$0xff] %v16499_v3  ;;  %v16502_v33 = vpop.f32.mrb[102].mxu0  ;;  %v13394_v5 = vpop.f32.mrb[103].mxu1 }
 0x518   :  { %17811 = vst [vmem:[#allocation30_spill] sm:$0xff] %v16502_v33  ;;  %v13389_v29 = vpop.f32.mrb[103].mxu0  ;;  %v14185_v5 = vpop.eup %14184 }
 0x519   :  { %v6298_v19 = vmul.f32 %v14185_v5, %v16108_v57  ;;  %v14187_v7 = vpop.eup %14186 }
 0x51b   :  { %814 = vrot.lane.b32.xlu1 %v17765_v61, %s14493_s2  ;;  %v16507_v12 = vpop.f32.mrb[104].mxu0 }
 0x51c   :  { %v13399_v18 = vpop.f32.mrb[105].mxu0 }
 0x51e   :  { %v16509_v48 = vpop.f32.mrb[104].mxu1 }
 0x51f   :  { %818 = vrot.lane.b32.xlu1 %v17770_v55, %s14493_s2  ;;  %v13404_v8 = vpop.f32.mrb[105].mxu1 }
 0x521   :  { %v16515_v3 = vpop.xlane.xlu1 %6151 }
 0x522   :  { %v16517_v29 = vpop.f32.mrb[106].mxu1 }
 0x523   :  { %v13414_v33 = vpop.f32.mrb[107].mxu1 }
 0x524   :  { %v6300_v33 = vmul.f32 %v14187_v7, %v16122_v4 }
 0x525   :  { %v797_v37 = vpop.permute.xlu1 %796 }
 0x526   :  { %13496 = vmatpush3.msra.mxu0 %v797_v37  ;;  %v5988_v37 = vmul.f32 1.442695, %v5869_v30 }
 0x527   :  { %13498 = vmatmul.mubr.msk.f32.vlgmr.msra.gmra.mrb[124].mxu0 %vm5621_vm2, %v6298_v19  ;;  %13505 = vmatprep.subr.mxu0 %v17687_v63  ;;  %v14189_v19 = vpop.eup %14188 }
 0x528   :  { %812 = vrot.lane.b32.xlu0 %v17758_v34, %s14493_s2  ;;  %13507 = vmatprep.mubr.msk.f32.mxu0 %vm14492_vm0, %v17687_v63  ;;  %14192 = vpow2.f32 %v5988_v37 }
 0x529   :  { %v801_v18 = vpop.permute.xlu1 %800  ;;  %14194 = vpow2.f32 %v5986_v27  ;;  %v17812_v27 = vld [vmem:[#allocation17_spill] sm:$0xff] }
 0x52a   :  { %13506 = vmatpush3.msra.mxu0 %v801_v18  ;;  %v16528_v8 = vpop.f32.mrb[108].mxu1  ;;  %14196 = vrcp.f32 %v16421_v9 }
 0x52b   :  { %13508 = vmatmul.mubr.msk.f32.vlgmr.msra.gmra.mrb[126].mxu0 %vm5621_vm2, %v6300_v33  ;;  %13515 = vmatprep.subr.mxu0 %v17687_v63  ;;  %v13424_v57 = vpop.f32.mrb[109].mxu1  ;;  %v6299_v33 = vmul.f32 %v14189_v19, %v16144_v2  ;;  %14198 = vrcp.f32 %v16425_v51  ;;  %v17814_v19 = vld [vmem:[#allocation22_spill] sm:$0xff] }
 0x52c   :  { %816 = vrot.lane.b32.xlu0 %v17768_v28, %s14493_s2  ;;  %13517 = vmatprep.mubr.msk.f32.mxu0 %vm14492_vm0, %v17687_v63  ;;  %v14191_v57 = vpop.eup %14190  ;;  %14200 = vrcp.f32 %v16396_v49 }
 0x52d   :  { %v803_v56 = vpop.permute.xlu1 %802  ;;  %v6301_v13 = vmul.f32 %v14191_v57, %v16166_v10  ;;  %14202 = vrcp.f32 %v16404_v32 }
 0x52e   :  { %v16539_v4 = vpop.f32.mrb[110].mxu1 }
 0x52f   :  { %v13434_v7 = vpop.f32.mrb[111].mxu1 }
 0x531   :  { %v16541_v5 = vpop.xlane.xlu0 %6154 }
 0x532   :  { %v16557_v2 = vpop.eup %14192 }
 0x533   :  { %v6171_v38 = vsel %vm5621_vm2, %v16557_v2, 0.0 }
 0x535   :  { %v799_v18 = vpop.permute.xlu0 %798 }
 0x536   :  { %v16546_v35 = vpop.f32.mrb[112].mxu1  ;;  %13501 = vmatpush3.msra.mxu1 %v799_v18 }
 0x537   :  { %v13444_v54 = vpop.f32.mrb[113].mxu1  ;;  %13503 = vmatmul.mubr.msk.f32.vlgmr.msra.gmra.mrb[124].mxu1 %vm5621_vm2, %v6299_v33  ;;  %13510 = vmatprep.subr.mxu1 %v17687_v63 }
 0x538   :  { %13511 = vmatpush3.msra.mxu1 %v803_v56  ;;  %13512 = vmatprep.mubr.msk.f32.mxu1 %vm14492_vm0, %v17687_v63  ;;  %v16561_v56 = vpop.eup %14194 }
 0x539   :  { %13520 = vmatprep.subr.mxu1 %v17687_v63  ;;  %v6168_v10 = vsel %vm5621_vm2, %v16561_v56, 0.0 }
 0x53b   :  { %13513 = vmatmul.mubr.msk.f32.vlgmr.msra.gmra.mrb[126].mxu1 %vm5621_vm2, %v6301_v13 }
 0x53c   :  { %13522 = vmatprep.mubr.msk.f32.mxu1 %vm14492_vm0, %v17687_v63 }
 0x543   :  { %6172 = vadd.xlane.f32.xlu1 %v6171_v38 }
 0x547   :  { %v16563_v30 = vpop.f32.mrb[114].mxu1 }
 0x548   :  { %v13454_v7 = vpop.f32.mrb[115].mxu1 }
 0x54b   :  { %6169 = vadd.xlane.f32.xlu0 %v6168_v10  ;;  %v14197_v10 = vpop.eup %14196 }
 0x54c   :  { %v6303_v50 = vmul.f32 %v14197_v10, %v17814_v19  ;;  %v14199_v46 = vpop.eup %14198  ;;  %v17815_v19 = vld [vmem:[#allocation25_spill] sm:$0xff] }
 0x54d   :  { %v6305_v10 = vmul.f32 %v14199_v46, %v17815_v19  ;;  %v17818_v19 = vld [vmem:[#allocation19_spill] sm:$0xff] }
 0x54e   :  { %v16567_v37 = vpop.f32.mrb[106].mxu0 }
 0x54f   :  { %v13409_v47 = vpop.f32.mrb[107].mxu0 }
 0x552   :  { %v16571_v18 = vpop.f32.mrb[108].mxu0 }
 0x553   :  { %v13419_v57 = vpop.f32.mrb[109].mxu0 }
 0x554   :  { %838 = vrot.lane.b32.xlu1 %v17777_v58, %s14495_s21  ;;  %v17813_v58 = vld [vmem:[#allocation58_spill] sm:$0xff] }
 0x556   :  { %v16578_v54 = vpop.f32.mrb[110].mxu0 }
 0x557   :  { %v13429_v13 = vpop.f32.mrb[111].mxu0 }
 0x55a   :  { %v16583_v38 = vpop.f32.mrb[112].mxu0 }
 0x55b   :  { %v13439_v9 = vpop.f32.mrb[113].mxu0 }
 0x55c   :  { %v5871_v9 = vsub.f32 %v17813_v58, %v16268_v36 }
 0x55e   :  { %v16588_v7 = vpop.xlane.xlu1 %6160  ;;  %v16590_v47 = vpop.f32.mrb[114].mxu0 }
 0x55f   :  { %v16592_v57 = vpop.f32.mrb[116].mxu1  ;;  %v13449_v13 = vpop.f32.mrb[115].mxu0 }
 0x560   :  { %v13464_v49 = vpop.f32.mrb[117].mxu1 }
 0x561   :  { %836 = vrot.lane.b32.xlu0 %v17812_v27, %s14495_s21  ;;  %v5992_v27 = vmul.f32 1.442695, %v5871_v9  ;;  %v17817_v9 = vld [vmem:[#allocation20_spill] sm:$0xff] }
 0x562   :  { %v807_v33 = vpop.permute.xlu1 %806  ;;  %v16602_v15 = vpop.f32.mrb[116].mxu0 }
 0x563   :  { %13521 = vmatpush3.msra.mxu1 %v807_v33  ;;  %v13459_v13 = vpop.f32.mrb[117].mxu0  ;;  %v14201_v33 = vpop.eup %14200  ;;  %14204 = vpow2.f32 %v5992_v27 }
 0x564   :  { %13523 = vmatmul.mubr.msk.f32.vlgmr.msra.gmra.mrb[128].mxu1 %vm5621_vm2, %v6303_v50  ;;  %13530 = vmatprep.subr.mxu1 %v17687_v63  ;;  %v17816_v50 = vld [vmem:[#allocation54_spill] sm:$0xff]  ;;  %v6302_v32 = vmul.f32 %v14201_v33, %v17817_v9  ;;  %v14203_v51 = vpop.eup %14202 }
 0x565   :  { %13532 = vmatprep.mubr.msk.f32.mxu1 %vm14492_vm0, %v17687_v63  ;;  %v5870_v49 = vsub.f32 %v17816_v50, %v16256_v45 }
 0x566   :  { %v16610_v36 = vpop.xlane.xlu0 %6157  ;;  %v811_v58 = vpop.permute.xlu1 %810 }
 0x567   :  { %13531 = vmatpush3.msra.mxu1 %v811_v58  ;;  %v5990_v46 = vmul.f32 1.442695, %v5870_v49 }
 0x568   :  { %13533 = vmatmul.mubr.msk.f32.vlgmr.msra.gmra.mrb[130].mxu1 %vm5621_vm2, %v6305_v10  ;;  %13540 = vmatprep.subr.mxu1 %v17687_v63  ;;  %v6304_v10 = vmul.f32 %v14203_v51, %v17818_v19  ;;  %v17819_v19 = vld [vmem:[#allocation64_spill] sm:$0xff] }
 0x569   :  { %13542 = vmatprep.mubr.msk.f32.mxu1 %vm14492_vm0, %v17687_v63  ;;  %14206 = vpow2.f32 %v5990_v46 }
 0x56a   :  { %v805_v13 = vpop.permute.xlu0 %804  ;;  %14208 = vrcp.f32 %v16429_v24 }
 0x56b   :  { %13516 = vmatpush3.msra.mxu0 %v805_v13  ;;  %14210 = vrcp.f32 %v16474_v6 }
 0x56c   :  { %13518 = vmatmul.mubr.msk.f32.vlgmr.msra.gmra.mrb[128].mxu0 %vm5621_vm2, %v6302_v32  ;;  %13525 = vmatprep.subr.mxu0 %v17687_v63  ;;  %14212 = vrcp.f32 %v16408_v14 }
 0x56d   :  { %13527 = vmatprep.mubr.msk.f32.mxu0 %vm14492_vm0, %v17687_v63  ;;  %v16629_v45 = vpop.eup %14204  ;;  %14214 = vrcp.f32 %v16455_v52 }
 0x56e   :  { %v809_v58 = vpop.permute.xlu0 %808  ;;  %v6177_v33 = vsel %vm5621_vm2, %v16629_v45, 0.0 }
 0x56f   :  { %13526 = vmatpush3.msra.mxu0 %v809_v58 }
 0x570   :  { %13528 = vmatmul.mubr.msk.f32.vlgmr.msra.gmra.mrb[130].mxu0 %vm5621_vm2, %v6304_v10  ;;  %13535 = vmatprep.subr.mxu0 %v17687_v63  ;;  %v5873_v10 = vsub.f32 %v17819_v19, %v16280_v20 }
 0x571   :  { %13537 = vmatprep.mubr.msk.f32.mxu0 %vm14492_vm0, %v17687_v63 }
 0x573   :  { %v16631_v32 = vpop.f32.mrb[118].mxu0  ;;  %v16635_v50 = vpop.eup %14206 }
 0x574   :  { %v13469_v27 = vpop.f32.mrb[119].mxu0  ;;  %v6174_v9 = vsel %vm5621_vm2, %v16635_v50, 0.0 }
 0x578   :  { %6178 = vadd.xlane.f32.xlu1 %v6177_v33  ;;  %v14209_v33 = vpop.eup %14208 }
 0x57c   :  { %v16637_v51 = vpop.f32.mrb[118].mxu1 }
 0x57d   :  { %v13474_v13 = vpop.f32.mrb[119].mxu1 }
 0x57e   :  { %v17820_v13 = vld [vmem:[#allocation23_spill] sm:$0xff] }
 0x580   :  { %6175 = vadd.xlane.f32.xlu0 %v6174_v9  ;;  %v6307_v9 = vmul.f32 %v14209_v33, %v17820_v13  ;;  %v17822_v13 = vld [vmem:[#allocation21_spill] sm:$0xff] }
 0x589   :  { %842 = vrot.lane.b32.xlu1 %v17747_v60, %s14495_s21  ;;  %v5996_v60 = vmul.f32 1.442695, %v5873_v10 }
 0x58b   :  { %14216 = vpow2.f32 %v5996_v60 }
 0x58f   :  { %v16646_v46 = vpop.f32.mrb[120].mxu0 }
 0x590   :  { %v13479_v58 = vpop.f32.mrb[121].mxu0 }
 0x591   :  { %v14211_v58 = vpop.eup %14210 }
 0x592   :  { %v6309_v6 = vmul.f32 %v14211_v58, %v16307_v31  ;;  %v14213_v19 = vpop.eup %14212 }
 0x593   :  { %v14215_v31 = vpop.eup %14214 }
 0x596   :  { %840 = vrot.lane.b32.xlu0 %v17746_v16, %s14495_s21  ;;  %v17821_v16 = vld [vmem:[#allocation55_spill] sm:$0xff] }
 0x597   :  { %v16654_v27 = vpop.xlane.xlu1 %6166  ;;  %v5872_v20 = vsub.f32 %v17821_v16, %v16271_v23  ;;  %v6308_v16 = vmul.f32 %v14215_v31, %v16284_v17 }
 0x599   :  { %v5994_v23 = vmul.f32 1.442695, %v5872_v20 }
 0x59b   :  { %v815_v24 = vpop.permute.xlu1 %814  ;;  %14218 = vpow2.f32 %v5994_v23  ;;  %v17823_v23 = vld [vmem:[#allocation66_spill] sm:$0xff] }
 0x59c   :  { %13541 = vmatpush3.msra.mxu1 %v815_v24  ;;  %14220 = vrcp.f32 %v16541_v5 }
 0x59d   :  { %13543 = vmatmul.mubr.msk.f32.vlgmr.msra.gmra.mrb[132].mxu1 %vm5621_vm2, %v6307_v9  ;;  %13550 = vmatprep.subr.mxu1 %v17687_v63  ;;  %v6306_v9 = vmul.f32 %v14213_v19, %v17822_v13  ;;  %14222 = vrcp.f32 %v16515_v3 }
 0x59e   :  { %13552 = vmatprep.mubr.msk.f32.mxu1 %vm14492_vm0, %v17687_v63 }
 0x59f   :  { %v16664_v14 = vpop.xlane.xlu0 %6163  ;;  %v819_v52 = vpop.permute.xlu1 %818 }
 0x5a0   :  { %v16667_v10 = vpop.f32.mrb[120].mxu1  ;;  %13551 = vmatpush3.msra.mxu1 %v819_v52  ;;  %v16681_v52 = vpop.eup %14216 }
 0x5a1   :  { %v13889_v33 = vpack.i.bf16 %v16667_v10, %v16646_v46  ;;  %v13484_v24 = vpop.f32.mrb[121].mxu1  ;;  %13553 = vmatmul.mubr.msk.f32.vlgmr.msra.gmra.mrb[134].mxu1 %vm5621_vm2, %v6309_v6  ;;  %13560 = vmatprep.subr.mxu1 %v17687_v63  ;;  %v6183_v20 = vsel %vm5621_vm2, %v16681_v52, 0.0 }
 0x5a2   :  { %13562 = vmatprep.mubr.msk.f32.mxu1 %vm14492_vm0, %v17687_v63 }
 0x5a3   :  { %v813_v60 = vpop.permute.xlu0 %812 }
 0x5a4   :  { %13536 = vmatpush3.msra.mxu0 %v813_v60  ;;  %v5875_v60 = vsub.f32 %v17823_v23, %v16296_v53 }
 0x5a5   :  { %13538 = vmatmul.mubr.msk.f32.vlgmr.msra.gmra.mrb[132].mxu0 %vm5621_vm2, %v6306_v9  ;;  %13545 = vmatprep.subr.mxu0 %v17687_v63  ;;  %v16689_v6 = vpop.eup %14218 }
 0x5a6   :  { %13547 = vmatprep.mubr.msk.f32.mxu0 %vm14492_vm0, %v17687_v63  ;;  %v6180_v19 = vsel %vm5621_vm2, %v16689_v6, 0.0  ;;  %v6000_v13 = vmul.f32 1.442695, %v5875_v60  ;;  %v14221_v31 = vpop.eup %14220 }
 0x5a7   :  { %v817_v58 = vpop.permute.xlu0 %816 }
 0x5a8   :  { %13546 = vmatpush3.msra.mxu0 %v817_v58  ;;  %v17824_v58 = vld [vmem:[#allocation59_spill] sm:$0xff]  ;;  %14224 = vpow2.f32 %v6000_v13 }
 0x5a9   :  { %13548 = vmatmul.mubr.msk.f32.vlgmr.msra.gmra.mrb[134].mxu0 %vm5621_vm2, %v6308_v16  ;;  %13555 = vmatprep.subr.mxu0 %v17687_v63 }
 0x5aa   :  { %13557 = vmatprep.mubr.msk.f32.mxu0 %vm14492_vm0, %v17687_v63 }
 0x5ad   :  { %6184 = vadd.xlane.f32.xlu1 %v6183_v20  ;;  %v6311_v20 = vmul.f32 %v14221_v31, %v16377_v25 }
 0x5b5   :  { %6181 = vadd.xlane.f32.xlu0 %v6180_v19  ;;  %v14223_v19 = vpop.eup %14222 }
 0x5b6   :  { %v16719_v23 = vpop.eup %14224 }
 0x5b7   :  { %v6189_v60 = vsel %vm5621_vm2, %v16719_v23, 0.0 }
 0x5be   :  { %846 = vrot.lane.b32.xlu1 %v17749_v1, %s14495_s21  ;;  %v5874_v1 = vsub.f32 %v17824_v58, %v16290_v44 }
 0x5c0   :  { %v5998_v3 = vmul.f32 1.442695, %v5874_v1 }
 0x5c2   :  { %14226 = vpow2.f32 %v5998_v3  ;;  %v17827_v3 = vld [vmem:[#allocation67_spill] sm:$0xff] }
 0x5c3   :  { %14228 = vrcp.f32 %v16588_v7 }
 0x5c4   :  { %14230 = vrcp.f32 %v16610_v36 }
 0x5c5   :  { %v16695_v17 = vpop.f32.mrb[122].mxu0 }
 0x5c6   :  { %v13489_v24 = vpop.f32.mrb[123].mxu0 }
 0x5c7   :  { %v6310_v24 = vmul.f32 %v14223_v19, %v16360_v0 }
 0x5cb   :  { %844 = vrot.lane.b32.xlu0 %v17748_v41, %s14495_s21 }
 0x5cc   :  { %v16727_v13 = vpop.eup %14226 }
 0x5cd   :  { %v6186_v31 = vsel %vm5621_vm2, %v16727_v13, 0.0 }
 0x5d0   :  { %v16703_v9 = vpop.xlane.xlu1 %6172 }
 0x5d4   :  { %v839_v16 = vpop.permute.xlu1 %838 }
 0x5d5   :  { %v16708_v5 = vpop.f32.mrb[122].mxu1  ;;  %13561 = vmatpush3.msra.mxu1 %v839_v16 }
 0x5d6   :  { %v13904_v41 = vpack.i.bf16 %v16708_v5, %v16695_v17  ;;  %v13494_v53 = vpop.f32.mrb[123].mxu1  ;;  %13563 = vmatmul.mubr.msk.f32.vlgmr.msra.gmra.mrb[136].mxu1 %vm5621_vm2, %v6311_v20  ;;  %13570 = vmatprep.subr.mxu1 %v17687_v63  ;;  %v17825_v20 = vld [vmem:[#allocation24_spill] sm:$0xff]  ;;  %v17832_v5 = vpack.i.bf16 %v16528_v8, %v16571_v18  ;;  %v11249_v8 = vld [vmem:[#allocation7 + $0x48] sm:$0xff] }
 0x5d7   :  { %13572 = vmatprep.mubr.msk.f32.mxu1 %vm14492_vm0, %v17687_v63  ;;  %v17826_v53 = vld [vmem:[#allocation27_spill] sm:$0xff] }
 0x5d8   :  { %v16716_v44 = vpop.xlane.xlu0 %6169  ;;  %v5877_v19 = vsub.f32 %v17827_v3, %v17826_v53 }
 0x5dc   :  { %v837_v25 = vpop.permute.xlu0 %836 }
 0x5dd   :  { %13556 = vmatpush3.msra.mxu0 %v837_v25  ;;  %v6004_v25 = vmul.f32 1.442695, %v5877_v19 }
 0x5de   :  { %13558 = vmatmul.mubr.msk.f32.vlgmr.msra.gmra.mrb[136].mxu0 %vm5621_vm2, %v6310_v24  ;;  %13565 = vmatprep.subr.mxu0 %v17687_v63 }
 0x5df   :  { %13567 = vmatprep.mubr.msk.f32.mxu0 %vm14492_vm0, %v17687_v63  ;;  %14232 = vpow2.f32 %v6004_v25 }
 0x5e2   :  { %6190 = vadd.xlane.f32.xlu1 %v6189_v60  ;;  %v17828_v60 = vld [vmem:[#allocation26_spill] sm:$0xff] }
 0x5ea   :  { %6187 = vadd.xlane.f32.xlu0 %v6186_v31  ;;  %v17829_v31 = vld [vmem:[#allocation65_spill] sm:$0xff] }
 0x5f3   :  { %850 = vrot.lane.b32.xlu1 %v17752_v21, %s14495_s21  ;;  %v14229_v21 = vpop.eup %14228 }
 0x5f4   :  { %v6313_v49 = vmul.f32 %v14229_v21, %v16434_v59  ;;  %v14231_v19 = vpop.eup %14230 }
 0x5fa   :  { %v16733_v0 = vpop.f32.mrb[124].mxu0 }
 0x5fb   :  { %v13499_v58 = vpop.f32.mrb[125].mxu0 }
 0x5fc   :  { %v5876_v58 = vsub.f32 %v17829_v31, %v17828_v60  ;;  %v6312_v31 = vmul.f32 %v14231_v19, %v16442_v43  ;;  %v17831_v19 = vpack.i.bf16 %v16509_v48, %v16507_v12 }
 0x5fe   :  { %v16736_v1 = vpop.f32.mrb[126].mxu0  ;;  %v6002_v36 = vmul.f32 1.442695, %v5876_v58 }
 0x5ff   :  { %v13509_v16 = vpop.f32.mrb[127].mxu0 }
 0x600   :  { %848 = vrot.lane.b32.xlu0 %v17825_v20, %s14495_s21  ;;  %14234 = vpow2.f32 %v6002_v36 }
 0x601   :  { %14236 = vrcp.f32 %v16654_v27 }
 0x602   :  { %14238 = vrcp.f32 %v16664_v14 }
 0x603   :  { %14240 = vrcp.f32 %v16703_v9 }
 0x604   :  { %14242 = vrcp.f32 %v16716_v44 }
 0x605   :  { %v16743_v24 = vpop.xlane.xlu1 %6178 }
 0x606   :  { %14244 = vrcp.f32 %v16743_v24 }
 0x609   :  { %v843_v7 = vpop.permute.xlu1 %842 }
 0x60a   :  { %v16748_v16 = vpop.f32.mrb[124].mxu1  ;;  %13571 = vmatpush3.msra.mxu1 %v843_v7 }
 0x60b   :  { %v13919_v20 = vpack.i.bf16 %v16748_v16, %v16733_v0  ;;  %v13504_v53 = vpop.f32.mrb[125].mxu1  ;;  %13573 = vmatmul.mubr.msk.f32.vlgmr.msra.gmra.mrb[138].mxu1 %vm5621_vm2, %v6313_v49  ;;  %13580 = vmatprep.subr.mxu1 %v17687_v63  ;;  %v16763_v49 = vpop.eup %14232  ;;  %v17834_v16 = vld [vmem:[#allocation47_spill] sm:$0xff] }
 0x60c   :  { %13582 = vmatprep.mubr.msk.f32.mxu1 %vm14492_vm0, %v17687_v63  ;;  %v6195_v58 = vsel %vm5621_vm2, %v16763_v49, 0.0  ;;  %v16771_v7 = vpop.eup %14234 }
 0x60d   :  { %v16756_v3 = vpop.xlane.xlu0 %6175  ;;  %v6192_v53 = vsel %vm5621_vm2, %v16771_v7, 0.0 }
 0x60e   :  { %v16758_v25 = vpop.f32.mrb[126].mxu1 }
 0x60f   :  { %v13934_v59 = vpack.i.bf16 %v16758_v25, %v16736_v1  ;;  %v13514_v21 = vpop.f32.mrb[127].mxu1 }
 0x611   :  { %v841_v60 = vpop.permute.xlu0 %840 }
 0x612   :  { %13566 = vmatpush3.msra.mxu0 %v841_v60 }
 0x613   :  { %13568 = vmatmul.mubr.msk.f32.vlgmr.msra.gmra.mrb[138].mxu0 %vm5621_vm2, %v6312_v31  ;;  %13575 = vmatprep.subr.mxu0 %v17687_v63 }
 0x614   :  { %13577 = vmatprep.mubr.msk.f32.mxu0 %vm14492_vm0, %v17687_v63 }
 0x617   :  { %6196 = vadd.xlane.f32.xlu1 %v6195_v58 }
 0x61f   :  { %6193 = vadd.xlane.f32.xlu0 %v6192_v53 }
 0x628   :  { %854 = vrot.lane.b32.xlu1 %v17754_v40, %s14495_s21 }
 0x62c   :  { %858 = vrot.lane.b32.xlu1 %v17760_v39, %s14495_s21  ;;  %v14237_v39 = vpop.eup %14236 }
 0x62d   :  { %v6315_v10 = vmul.f32 %v14237_v39, %v16485_v26 }
 0x630   :  { %862 = vrot.lane.b32.xlu1 %v17765_v61, %s14495_s21 }
 0x634   :  { %866 = vrot.lane.b32.xlu1 %v17770_v55, %s14495_s21 }
 0x635   :  { %852 = vrot.lane.b32.xlu0 %v17751_v62, %s14495_s21  ;;  %v17830_v62 = vpack.i.bf16 %v16517_v29, %v16567_v37  ;;  %v14239_v29 = vpop.eup %14238 }
 0x636   :  { %v6314_v60 = vmul.f32 %v14239_v29, %v16491_v11  ;;  %v14241_v31 = vpop.eup %14240 }
 0x637   :  { %v16786_v43 = vpop.f32.mrb[128].mxu1  ;;  %v6317_v11 = vmul.f32 %v14241_v31, %v16557_v2  ;;  %v14243_v44 = vpop.eup %14242 }
 0x638   :  { %13890 = vrot.lane.b32.xlu1 %v13889_v33, %s14493_s2  ;;  %v13524_v40 = vpop.f32.mrb[129].mxu1 }
 0x639   :  { %856 = vrot.lane.b32.xlu0 %v17756_v42, %s14495_s21 }
 0x63a   :  { %v6185_v61 = vpop.xlane.xlu1 %6184 }
 0x63b   :  { %v16795_v27 = vpop.f32.mrb[130].mxu1  ;;  %14246 = vrcp.f32 %v6185_v61 }
 0x63c   :  { %13900 = vrot.lane.b32.xlu1 %v17830_v62, %s14495_s21  ;;  %v13534_v55 = vpop.f32.mrb[131].mxu1  ;;  %14248 = vrcp.f32 %v16756_v3 }
 0x63d   :  { %860 = vrot.lane.b32.xlu0 %v17758_v34, %s14495_s21 }
 0x63e   :  { %v847_v46 = vpop.permute.xlu1 %846 }
 0x63f   :  { %v16804_v14 = vpop.f32.mrb[128].mxu0  ;;  %13581 = vmatpush3.msra.mxu1 %v847_v46  ;;  %v6316_v46 = vmul.f32 %v14243_v44, %v16561_v56 }
 0x640   :  { %v13949_v42 = vpack.i.bf16 %v16786_v43, %v16804_v14  ;;  %v13519_v33 = vpop.f32.mrb[129].mxu0  ;;  %13583 = vmatmul.mubr.msk.f32.vlgmr.msra.gmra.mrb[140].mxu1 %vm5621_vm2, %v6315_v10  ;;  %13590 = vmatprep.subr.mxu1 %v17687_v63 }
 0x641   :  { %864 = vrot.lane.b32.xlu0 %v17768_v28, %s14495_s21  ;;  %13592 = vmatprep.mubr.msk.f32.mxu1 %vm14492_vm0, %v17687_v63 }
 0x642   :  { %v6182_v34 = vpop.xlane.xlu0 %6181 }
 0x643   :  { %v16814_v26 = vpop.f32.mrb[130].mxu0 }
 0x644   :  { %v13964_v37 = vpack.i.bf16 %v16795_v27, %v16814_v26  ;;  %v13529_v36 = vpop.f32.mrb[131].mxu0 }
 0x645   :  { %13885 = vrot.lane.b32.xlu0 %v17831_v19, %s14495_s21  ;;  %v14245_v36 = vpop.eup %14244 }
 0x646   :  { %v845_v21 = vpop.permute.xlu0 %844 }
 0x647   :  { %13576 = vmatpush3.msra.mxu0 %v845_v21  ;;  %v6319_v21 = vmul.f32 %v14245_v36, %v16629_v45  ;;  %v11240_v36 = vld [vmem:[#allocation7] sm:$0xff] }
 0x648   :  { %13578 = vmatmul.mubr.msk.f32.vlgmr.msra.gmra.mrb[140].mxu0 %vm5621_vm2, %v6314_v60  ;;  %13585 = vmatprep.subr.mxu0 %v17687_v63  ;;  %v14247_v60 = vpop.eup %14246 }
 0x649   :  { %13587 = vmatprep.mubr.msk.f32.mxu0 %vm14492_vm0, %v17687_v63  ;;  %v14249_v24 = vpop.eup %14248 }
 0x66f   :  { %v6191_v28 = vpop.xlane.xlu1 %6190 }
 0x670   :  { %v16829_v58 = vpop.f32.mrb[132].mxu1  ;;  %14250 = vrcp.f32 %v6191_v28 }
 0x671   :  { %v13544_v12 = vpop.f32.mrb[133].mxu1  ;;  %14252 = vrcp.f32 %v6182_v34  ;;  %v6321_v34 = vmul.f32 %v14247_v60, %v16681_v52  ;;  %v11242_v60 = vld [vmem:[#allocation7 + $0x10] sm:$0xff] }
 0x673   :  { %v851_v48 = vpop.permute.xlu1 %850 }
 0x674   :  { %v16832_v53 = vpop.f32.mrb[134].mxu1  ;;  %13591 = vmatpush3.msra.mxu1 %v851_v48 }
 0x675   :  { %v13554_v40 = vpop.f32.mrb[135].mxu1  ;;  %13593 = vmatmul.mubr.msk.f32.vlgmr.msra.gmra.mrb[142].mxu1 %vm5621_vm2, %v6317_v11  ;;  %13600 = vmatprep.subr.mxu1 %v17687_v63  ;;  %v6318_v11 = vmul.f32 %v14249_v24, %v16635_v50  ;;  %v11244_v24 = vld [vmem:[#allocation7 + $0x20] sm:$0xff] }
 0x676   :  { %13602 = vmatprep.mubr.msk.f32.mxu1 %vm14492_vm0, %v17687_v63 }
 0x677   :  { %v6188_v9 = vpop.xlane.xlu0 %6187 }
 0x678   :  { %v16838_v39 = vpop.f32.mrb[132].mxu0 }
 0x679   :  { %v13979_v62 = vpack.i.bf16 %v16829_v58, %v16838_v39  ;;  %v13539_v55 = vpop.f32.mrb[133].mxu0  ;;  %v17842_v39 = vpack.i.bf16 %v16637_v51, %v16631_v32  ;;  %v17843_v51 = vld [vmem:[#allocation41_spill] sm:$0xff] }
 0x67a   :  { %v14251_v28 = vpop.eup %14250 }
 0x67b   :  { %v849_v2 = vpop.permute.xlu0 %848  ;;  %v6323_v40 = vmul.f32 %v14251_v28, %v16719_v23  ;;  %v11247_v28 = vld [vmem:[#allocation7 + $0x38] sm:$0xff] }
 0x67c   :  { %v16843_v10 = vpop.f32.mrb[134].mxu0  ;;  %13586 = vmatpush3.msra.mxu0 %v849_v2 }
 0x67d   :  { %v13994_v33 = vpack.i.bf16 %v16832_v53, %v16843_v10  ;;  %v13549_v29 = vpop.f32.mrb[135].mxu0  ;;  %13588 = vmatmul.mubr.msk.f32.vlgmr.msra.gmra.mrb[142].mxu0 %vm5621_vm2, %v6316_v46  ;;  %13595 = vmatprep.subr.mxu0 %v17687_v63 }
 0x67e   :  { %13597 = vmatprep.mubr.msk.f32.mxu0 %vm14492_vm0, %v17687_v63 }
 0x6a4   :  { %v6197_v56 = vpop.xlane.xlu1 %6196 }
 0x6a5   :  { %14254 = vrcp.f32 %v6197_v56 }
 0x6a6   :  { %14256 = vrcp.f32 %v6188_v9  ;;  %v14253_v9 = vpop.eup %14252 }
 0x6a7   :  { %v6320_v50 = vmul.f32 %v14253_v9, %v16689_v6  ;;  %v11252_v9 = vld [vmem:[#allocation7 + $0x60] sm:$0xff] }
 0x6a8   :  { %v855_v19 = vpop.permute.xlu1 %854 }
 0x6a9   :  { %v9972_v31 = vpop.f32.mrb[136].mxu1  ;;  %13601 = vmatpush3.msra.mxu1 %v855_v19  ;;  %v11241_v19 = vld [vmem:[#allocation7 + $0x8] sm:$0xff] }
 0x6aa   :  { %v13564_v12 = vpop.f32.mrb[137].mxu1  ;;  %13603 = vmatmul.mubr.msk.f32.vlgmr.msra.gmra.mrb[144].mxu1 %vm5621_vm2, %v6319_v21  ;;  %13610 = vmatprep.subr.mxu1 %v17687_v63 }
 0x6ab   :  { %13612 = vmatprep.mubr.msk.f32.mxu1 %vm14492_vm0, %v17687_v63  ;;  %v13755_v12 = vpack.c.bf16 %v11241_v19, %v11240_v36  ;;  %v17833_v19 = vpack.i.bf16 %v16539_v4, %v16578_v54  ;;  %v17835_v54 = vld [vmem:[#allocation37_spill] sm:$0xff] }
 0x6ac   :  { %v6194_v3 = vpop.xlane.xlu0 %6193  ;;  %v859_v61 = vpop.permute.xlu1 %858 }
 0x6ad   :  { %13611 = vmatpush3.msra.mxu1 %v859_v61  ;;  %14258 = vrcp.f32 %v6194_v3  ;;  %v11245_v3 = vld [vmem:[#allocation7 + $0x28] sm:$0xff] }
 0x6ae   :  { %13613 = vmatmul.mubr.msk.f32.vlgmr.msra.gmra.mrb[146].mxu1 %vm5621_vm2, %v6321_v34  ;;  %13620 = vmatprep.subr.mxu1 %v17687_v63  ;;  %v13763_v61 = vpack.c.bf16 %v11245_v3, %v11244_v24  ;;  %v11246_v34 = vld [vmem:[#allocation7 + $0x30] sm:$0xff]  ;;  %v17836_v3 = vpack.i.bf16 %v16546_v35, %v16583_v38 }
 0x6af   :  { %13622 = vmatprep.mubr.msk.f32.mxu1 %vm14492_vm0, %v17687_v63  ;;  %v14255_v52 = vpop.eup %14254 }
 0x6b0   :  { %v853_v45 = vpop.permute.xlu0 %852  ;;  %v863_v48 = vpop.permute.xlu1 %862  ;;  %v6325_v56 = vmul.f32 %v14255_v52, %v16763_v49 }
 0x6b1   :  { %v9899_v44 = vpop.f32.mrb[136].mxu0  ;;  %13596 = vmatpush3.msra.mxu0 %v853_v45  ;;  %13621 = vmatpush3.msra.mxu1 %v863_v48  ;;  %v14257_v23 = vpop.eup %14256  ;;  %v13767_v45 = vpack.c.bf16 %v11247_v28, %v11246_v34  ;;  %v11248_v48 = vld [vmem:[#allocation7 + $0x40] sm:$0xff] }
 0x6b2   :  { %v13894_v55 = vpack.i.bf16 %v9972_v31, %v9899_v44  ;;  %v13559_v2 = vpop.f32.mrb[137].mxu0  ;;  %13598 = vmatmul.mubr.msk.f32.vlgmr.msra.gmra.mrb[144].mxu0 %vm5621_vm2, %v6318_v11  ;;  %13623 = vmatmul.mubr.msk.f32.vlgmr.msra.gmra.mrb[148].mxu1 %vm5621_vm2, %v6323_v40  ;;  %v6322_v6 = vmul.f32 %v14257_v23, %v16727_v13  ;;  %v11243_v31 = vld [vmem:[#allocation7 + $0x18] sm:$0xff]  ;;  %v13771_v18 = vpack.c.bf16 %v11249_v8, %v11248_v48  ;;  %v11253_v44 = vld [vmem:[#allocation7 + $0x68] sm:$0xff] }
 0x6b3   :  { %13605 = vmatprep.subr.mxu0 %v17687_v63  ;;  %13630 = vmatprep.subr.mxu1 %v17687_v63  ;;  %v13759_v13 = vpack.c.bf16 %v11243_v31, %v11242_v60  ;;  %v11251_v11 = vld [vmem:[#allocation7 + $0x58] sm:$0xff]  ;;  %v13779_v52 = vpack.c.bf16 %v11253_v44, %v11252_v9 }
 0x6b4   :  { %v857_v46 = vpop.permute.xlu0 %856  ;;  %v867_v29 = vpop.permute.xlu1 %866  ;;  %13895 = vrot.lane.b32.xlu0 %v13894_v55, %s14494_s20  ;;  %13607 = vmatprep.mubr.msk.f32.mxu0 %vm14492_vm0, %v17687_v63  ;;  %v11254_v55 = vld [vmem:[#allocation7 + $0x70] sm:$0xff]  ;;  %v11255_v2 = vld [vmem:[#allocation7 + $0x78] sm:$0xff] }
 0x6b5   :  { %13606 = vmatpush3.msra.mxu0 %v857_v46  ;;  %13631 = vmatpush3.msra.mxu1 %v867_v29  ;;  %v13783_v46 = vpack.c.bf16 %v11255_v2, %v11254_v55  ;;  %v17837_v55 = vpack.i.bf16 %v16563_v30, %v16590_v47 }
 0x6b6   :  { %13632 = vmatprep.mubr.msk.f32.mxu1 %vm14492_vm0, %v17687_v63  ;;  %13608 = vmatmul.mubr.msk.f32.vlgmr.msra.gmra.mrb[146].mxu0 %vm5621_vm2, %v6320_v50 }
 0x6b7   :  { %13633 = vmatmul.mubr.msk.f32.vlgmr.msra.gmra.mrb[150].mxu1 %vm5621_vm2, %v6325_v56  ;;  %13615 = vmatprep.subr.mxu0 %v17687_v63  ;;  %v14259_v49 = vpop.eup %14258 }
 0x6b8   :  { %v861_v21 = vpop.permute.xlu0 %860  ;;  %13905 = vrot.lane.b32.xlu0 %v13904_v41, %s14493_s2  ;;  %13617 = vmatprep.mubr.msk.f32.mxu0 %vm14492_vm0, %v17687_v63  ;;  %v6324_v41 = vmul.f32 %v14259_v49, %v16771_v7  ;;  %v11250_v7 = vld [vmem:[#allocation7 + $0x50] sm:$0xff]  ;;  %v13891_v0 = vpop.permute.xlu1 %13890 }
 0x6b9   :  { %13616 = vmatpush3.msra.mxu0 %v861_v21  ;;  %11755 = vmatprep.mubr.f32.mxu1 %v17687_v63  ;;  %v13775_v40 = vpack.c.bf16 %v11251_v11, %v11250_v7 }
 0x6ba   :  { %13618 = vmatmul.mubr.msk.f32.vlgmr.msra.gmra.mrb[148].mxu0 %vm5621_vm2, %v6322_v6  ;;  %13625 = vmatprep.subr.mxu0 %v17687_v63 }
 0x6bb   :  { %13627 = vmatprep.mubr.msk.f32.mxu0 %vm14492_vm0, %v17687_v63 }
 0x6bc   :  { %v865_v17 = vpop.permute.xlu0 %864  ;;  %13915 = vrot.lane.b32.xlu0 %v17832_v5, %s14495_s21  ;;  %v13901_v35 = vpop.permute.xlu1 %13900 }
 0x6bd   :  { %13626 = vmatpush3.msra.mxu0 %v865_v17  ;;  %v13903_v11 = vunpack.i.h.bf16 %v13901_v35 }
 0x6be   :  { %13628 = vmatmul.mubr.msk.f32.vlgmr.msra.gmra.mrb[150].mxu0 %vm5621_vm2, %v6324_v41  ;;  %13756 = vmatprep.subr.bf16.mxu0 %v13755_v12  ;;  %v13893_v41 = vunpack.i.h.bf16 %v13891_v0 }
 0x6bf   :  { %13758 = vmatpush3.bf16.msra.mxu0 %v13755_v12 }
 0x6c0   :  { %13760 = vmatprep.subr.bf16.mxu0 %v13759_v13  ;;  %v13886_v12 = vpop.permute.xlu0 %13885 }
 0x6c1   :  { %v13888_v17 = vunpack.i.h.bf16 %v13886_v12  ;;  %v13887_v5 = vunpack.i.l.bf16 %v13886_v12 }
 0x6c3   :  { %13762 = vmatpush3.bf16.msra.mxu0 %v13759_v13  ;;  %v11191_v4 = vsel %vm884_vm1, %v17834_v16, %v13888_v17  ;;  %v13892_v13 = vunpack.i.l.bf16 %v13891_v0 }
 0x6c4   :  { %13764 = vmatprep.subr.bf16.mxu0 %v13763_v61 }
 0x6c7   :  { %13766 = vmatpush3.bf16.msra.mxu0 %v13763_v61 }
 0x6c8   :  { %13768 = vmatprep.subr.bf16.mxu0 %v13767_v45 }
 0x6cb   :  { %13770 = vmatpush3.bf16.msra.mxu0 %v13767_v45 }
 0x6cc   :  { %13772 = vmatprep.subr.bf16.mxu0 %v13771_v18 }
 0x6cf   :  { %13774 = vmatpush3.bf16.msra.mxu0 %v13771_v18 }
 0x6d0   :  { %13776 = vmatprep.subr.bf16.mxu0 %v13775_v40 }
 0x6d3   :  { %13778 = vmatpush3.bf16.msra.mxu0 %v13775_v40  ;;  %v13902_v40 = vunpack.i.l.bf16 %v13901_v35 }
 0x6d4   :  { %13780 = vmatprep.subr.bf16.mxu0 %v13779_v52 }
 0x6d7   :  { %13782 = vmatpush3.bf16.msra.mxu0 %v13779_v52 }
 0x6d8   :  { %13784 = vmatprep.subr.bf16.mxu0 %v13783_v46 }
 0x6db   :  { %13786 = vmatpush3.bf16.msra.mxu0 %v13783_v46 }
 0x6de   :  { %v10118_v29 = vpop.f32.mrb[138].mxu1 }
 0x6df   :  { %v13574_v50 = vpop.f32.mrb[139].mxu1 }
 0x6e6   :  { %v10045_v23 = vpop.f32.mrb[138].mxu0 }
 0x6e7   :  { %v13909_v56 = vpack.i.bf16 %v10118_v29, %v10045_v23  ;;  %v13569_v36 = vpop.f32.mrb[139].mxu0  ;;  %v17838_v29 = vld [vmem:[#allocation40_spill] sm:$0xff]  ;;  %v11193_v23 = vsel %vm884_vm1, %v16427_v22, %v13903_v11 }
 0x6e8   :  { %v11192_v50 = vsel %vm884_vm1, %v17838_v29, %v13902_v40 }
 0x6e9   :  { %13910 = vrot.lane.b32.xlu1 %v13909_v56, %s14494_s20 }
 0x6ed   :  { %13920 = vrot.lane.b32.xlu1 %v13919_v20, %s14493_s2  ;;  %v11190_v20 = vsel %vm884_vm1, %v17835_v54, %v13887_v5 }
 0x6ee   :  { %v11207_v25 = vsel %vm11206_vm3, %v11190_v20, %v13892_v13 }
 0x6f1   :  { %13930 = vrot.lane.b32.xlu1 %v17833_v19, %s14495_s21 }
 0x713   :  { %v10264_v21 = vpop.f32.mrb[140].mxu1 }
 0x714   :  { %v13584_v6 = vpop.f32.mrb[141].mxu1 }
 0x71b   :  { %v10191_v49 = vpop.f32.mrb[140].mxu0 }
 0x71c   :  { %v13924_v60 = vpack.i.bf16 %v10264_v21, %v10191_v49  ;;  %v13579_v31 = vpop.f32.mrb[141].mxu0 }
 0x71e   :  { %13925 = vrot.lane.b32.xlu0 %v13924_v60, %s14494_s20 }
 0x722   :  { %13935 = vrot.lane.b32.xlu0 %v13934_v59, %s14493_s2  ;;  %v11208_v59 = vsel %vm11206_vm3, %v11191_v4, %v13893_v41 }
 0x726   :  { %v13896_v24 = vpop.permute.xlu0 %13895  ;;  %13945 = vrot.lane.b32.xlu0 %v17836_v3, %s14495_s21 }
 0x727   :  { %v13898_v61 = vunpack.i.h.bf16 %v13896_v24  ;;  %v13897_v1 = vunpack.i.l.bf16 %v13896_v24 }
 0x729   :  { %v11224_v34 = vsel %vm11223_vm4, %v11207_v25, %v13897_v1  ;;  %v11225_v28 = vsel %vm11223_vm4, %v11208_v59, %v13898_v61  ;;  %v17839_v25 = vpack.i.bf16 %v16592_v57, %v16602_v15  ;;  %v17840_v59 = vld [vmem:[#allocation52_spill] sm:$0xff] }
 0x72a   :  { %13667 = vmatprep.mubr.f32.mxu0 %v11224_v34  ;;  %v13906_v38 = vpop.permute.xlu0 %13905 }
 0x72b   :  { %13668 = vmatmul.mubr.f32.vlgmr.msra.gmra.mrb[152].mxu0 %v11225_v28  ;;  %v13908_v9 = vunpack.i.h.bf16 %v13906_v38  ;;  %v13907_v44 = vunpack.i.l.bf16 %v13906_v38  ;;  %v17841_v28 = vld [vmem:[#allocation53_spill] sm:$0xff] }
 0x72d   :  { %v11209_v43 = vsel %vm11206_vm3, %v11192_v50, %v13907_v44  ;;  %v11210_v14 = vsel %vm11206_vm3, %v11193_v23, %v13908_v9 }
 0x72e   :  { %v13916_v22 = vpop.permute.xlu0 %13915 }
 0x72f   :  { %v13918_v54 = vunpack.i.h.bf16 %v13916_v22  ;;  %v13917_v20 = vunpack.i.l.bf16 %v13916_v22  ;;  %v16987_v22 = vld [vmem:[%s17567_s4] ss:$0 sm:$0xff] }
 0x731   :  { %v11194_v34 = vsel %vm884_vm1, %v17840_v59, %v13917_v20  ;;  %v14324_v59 = vld [vmem:[#allocation2 + $0x8] sm:$0xff] }
 0x748   :  { %v10410_v45 = vpop.f32.mrb[142].mxu1 }
 0x749   :  { %v13594_v48 = vpop.f32.mrb[143].mxu1 }
 0x750   :  { %v10337_v8 = vpop.f32.mrb[142].mxu0 }
 0x751   :  { %v13939_v18 = vpack.i.bf16 %v10410_v45, %v10337_v8  ;;  %v13589_v7 = vpop.f32.mrb[143].mxu0  ;;  %v11195_v45 = vsel %vm884_vm1, %v17841_v28, %v13918_v54 }
 0x753   :  { %13940 = vrot.lane.b32.xlu1 %v13939_v18, %s14494_s20 }
 0x757   :  { %13950 = vrot.lane.b32.xlu1 %v13949_v42, %s14493_s2 }
 0x75b   :  { %v13911_v52 = vpop.permute.xlu1 %13910  ;;  %13960 = vrot.lane.b32.xlu1 %v17837_v55, %s14495_s21  ;;  %v17844_v55 = vld [vmem:[#allocation43_spill] sm:$0xff] }
 0x75c   :  { %v13913_v2 = vunpack.i.h.bf16 %v13911_v52  ;;  %v13912_v46 = vunpack.i.l.bf16 %v13911_v52 }
 0x75e   :  { %v11226_v42 = vsel %vm11223_vm4, %v11209_v43, %v13912_v46  ;;  %v11227_v56 = vsel %vm11223_vm4, %v11210_v14, %v13913_v2 }
 0x75f   :  { %13670 = vmatprep.mubr.f32.mxu0 %v11226_v42  ;;  %v13921_v16 = vpop.permute.xlu1 %13920 }
 0x760   :  { %13671 = vmatmul.mubr.f32.gmra.mrb[154].mxu0 %v11227_v56  ;;  %v13923_v13 = vunpack.i.h.bf16 %v13921_v16  ;;  %v13922_v24 = vunpack.i.l.bf16 %v13921_v16 }
 0x762   :  { %v11211_v18 = vsel %vm11206_vm3, %v11194_v34, %v13922_v24  ;;  %v11212_v15 = vsel %vm11206_vm3, %v11195_v45, %v13923_v13 }
 0x77d   :  { %v10556_v30 = vpop.f32.mrb[144].mxu1 }
 0x77e   :  { %v13604_v47 = vpop.f32.mrb[145].mxu1 }
 0x77f   :  { %v17845_v47 = vld [vmem:[#allocation56_spill] sm:$0xff] }
 0x781   :  { %v10702_v36 = vpop.f32.mrb[146].mxu1 }
 0x782   :  { %v13614_v19 = vpop.f32.mrb[147].mxu1 }
 0x785   :  { %v10483_v21 = vpop.f32.mrb[144].mxu0  ;;  %v10848_v6 = vpop.f32.mrb[148].mxu1 }
 0x786   :  { %v13954_v49 = vpack.i.bf16 %v10556_v30, %v10483_v21  ;;  %v13599_v60 = vpop.f32.mrb[145].mxu0  ;;  %v13624_v31 = vpop.f32.mrb[149].mxu1 }
 0x788   :  { %13955 = vrot.lane.b32.xlu0 %v13954_v49, %s14494_s20  ;;  %v17846_v49 = vld [vmem:[#allocation57_spill] sm:$0xff] }
 0x789   :  { %v10629_v12 = vpop.f32.mrb[146].mxu0 }
 0x78a   :  { %v13969_v17 = vpack.i.bf16 %v10702_v36, %v10629_v12  ;;  %v10994_v5 = vpop.f32.mrb[150].mxu1  ;;  %v13609_v0 = vpop.f32.mrb[147].mxu0 }
 0x78b   :  { %v13634_v4 = vpop.f32.mrb[151].mxu1 }
 0x78c   :  { %13965 = vrot.lane.b32.xlu0 %v13964_v37, %s14493_s2  ;;  %13970 = vrot.lane.b32.xlu1 %v13969_v17, %s14494_s20 }
 0x78d   :  { %v10775_v41 = vpop.f32.mrb[148].mxu0 }
 0x78e   :  { %v13984_v3 = vpack.i.bf16 %v10848_v6, %v10775_v41  ;;  %v13619_v61 = vpop.f32.mrb[149].mxu0 }
 0x790   :  { %v13926_v1 = vpop.permute.xlu0 %13925  ;;  %13975 = vrot.lane.b32.xlu0 %v17839_v25, %s14495_s21  ;;  %13980 = vrot.lane.b32.xlu1 %v13979_v62, %s14493_s2  ;;  %v13931_v62 = vpop.permute.xlu1 %13930 }
 0x791   :  { %v13928_v27 = vunpack.i.h.bf16 %v13926_v1  ;;  %v13927_v26 = vunpack.i.l.bf16 %v13926_v1  ;;  %v10921_v37 = vpop.f32.mrb[150].mxu0  ;;  %v13933_v35 = vunpack.i.h.bf16 %v13931_v62  ;;  %v13932_v38 = vunpack.i.l.bf16 %v13931_v62 }
 0x792   :  { %v13999_v48 = vpack.i.bf16 %v10994_v5, %v10921_v37  ;;  %v13629_v8 = vpop.f32.mrb[151].mxu0 }
 0x793   :  { %v11228_v57 = vsel %vm11223_vm4, %v11211_v18, %v13927_v26  ;;  %v11229_v58 = vsel %vm11223_vm4, %v11212_v15, %v13928_v27  ;;  %v11196_v52 = vsel %vm884_vm1, %v17843_v51, %v13932_v38  ;;  %v11197_v2 = vsel %vm884_vm1, %v17844_v55, %v13933_v35  ;;  %v17848_v26 = vld [vmem:[#allocation29_spill] sm:$0xff]  ;;  %v17849_v38 = vld [vmem:[#allocation28_spill] sm:$0xff] }
 0x794   :  { %13673 = vmatprep.mubr.f32.mxu0 %v11228_v57  ;;  %13990 = vrot.lane.b32.xlu1 %v17842_v39, %s14495_s21  ;;  %v13936_v7 = vpop.permute.xlu0 %13935 }
 0x795   :  { %13985 = vrot.lane.b32.xlu0 %v13984_v3, %s14494_s20  ;;  %13674 = vmatmul.mubr.f32.gmra.mrb[156].mxu0 %v11229_v58  ;;  %v13938_v11 = vunpack.i.h.bf16 %v13936_v7  ;;  %v13937_v40 = vunpack.i.l.bf16 %v13936_v7  ;;  %v17847_v3 = vld [vmem:[#allocation42_spill] sm:$0xff] }
 0x797   :  { %v11213_v46 = vsel %vm11206_vm3, %v11196_v52, %v13937_v40  ;;  %v11214_v53 = vsel %vm11206_vm3, %v11197_v2, %v13938_v11  ;;  %v17850_v40 = vld [vmem:[#allocation45_spill] sm:$0xff] }
 0x798   :  { %14000 = vrot.lane.b32.xlu1 %v13999_v48, %s14494_s20  ;;  %v13946_v50 = vpop.permute.xlu0 %13945  ;;  %v14325_v48 = vld [vmem:[#allocation2] sm:$0xff] }
 0x799   :  { %13995 = vrot.lane.b32.xlu0 %v13994_v33, %s14493_s2  ;;  %v13947_v23 = vunpack.i.l.bf16 %v13946_v50  ;;  %v13948_v43 = vunpack.i.h.bf16 %v13946_v50 }
 0x79b   :  { %v11198_v36 = vsel %vm884_vm1, %v17845_v47, %v13947_v23  ;;  %v11199_v60 = vsel %vm884_vm1, %v17846_v49, %v13948_v43  ;;  %v17852_v47 = vld [vmem:[#allocation31_spill] sm:$0xff] }
 0x7c5   :  { %v13941_v9 = vpop.permute.xlu1 %13940 }
 0x7c6   :  { %v13943_v44 = vunpack.i.h.bf16 %v13941_v9  ;;  %v13942_v32 = vunpack.i.l.bf16 %v13941_v9 }
 0x7c8   :  { %v11230_v10 = vsel %vm11223_vm4, %v11213_v46, %v13942_v32  ;;  %v11231_v33 = vsel %vm11223_vm4, %v11214_v53, %v13943_v44 }
 0x7c9   :  { %13676 = vmatprep.mubr.f32.mxu0 %v11230_v10  ;;  %v13951_v29 = vpop.permute.xlu1 %13950 }
 0x7ca   :  { %13677 = vmatmul.mubr.f32.gmra.mrb[158].mxu0 %v11231_v33  ;;  %v13953_v14 = vunpack.i.h.bf16 %v13951_v29  ;;  %v13952_v42 = vunpack.i.l.bf16 %v13951_v29 }
 0x7cc   :  { %v11215_v12 = vsel %vm11206_vm3, %v11198_v36, %v13952_v42  ;;  %v11216_v17 = vsel %vm11206_vm3, %v11199_v60, %v13953_v14 }
 0x7cd   :  { %v13961_v56 = vpop.permute.xlu1 %13960 }
 0x7ce   :  { %v13962_v19 = vunpack.i.l.bf16 %v13961_v56  ;;  %v13963_v31 = vunpack.i.h.bf16 %v13961_v56  ;;  %v17851_v56 = vld [vmem:[#allocation30_spill] sm:$0xff] }
 0x7d0   :  { %v11200_v61 = vsel %vm884_vm1, %v17847_v3, %v13962_v19  ;;  %v11201_v37 = vsel %vm884_vm1, %v17848_v26, %v13963_v31 }
 0x7fa   :  { %v13956_v30 = vpop.permute.xlu0 %13955 }
 0x7fb   :  { %v13958_v21 = vunpack.i.h.bf16 %v13956_v30  ;;  %v13957_v6 = vunpack.i.l.bf16 %v13956_v30 }
 0x7fd   :  { %v11232_v5 = vsel %vm11223_vm4, %v11215_v12, %v13957_v6  ;;  %v11233_v0 = vsel %vm11223_vm4, %v11216_v17, %v13958_v21 }
 0x7fe   :  { %v13669_v16 = vpop.f32.mrb[152].mxu0  ;;  %v13966_v4 = vpop.permute.xlu0 %13965  ;;  %13679 = vmatprep.mubr.f32.mxu0 %v11232_v5  ;;  %v14326_v5 = vld [vmem:[#allocation2 + $0x10] sm:$0xff] }
 0x7ff   :  { %v11335_v54 = vadd.f32 %v13669_v16, %v16987_v22  ;;  %v13968_v20 = vunpack.i.h.bf16 %v13966_v4  ;;  %v13967_v41 = vunpack.i.l.bf16 %v13966_v4  ;;  %v13971_v13 = vpop.permute.xlu1 %13970  ;;  %v11329_v24 = vpop.f32.mrb[153].mxu0  ;;  %13680 = vmatmul.mubr.f32.gmra.mrb[160].mxu0 %v11233_v0  ;;  %v14327_v16 = vld [vmem:[#allocation2 + $0x18] sm:$0xff] }
 0x800   :  { %v13973_v1 = vunpack.i.h.bf16 %v13971_v13  ;;  %v13972_v25 = vunpack.i.l.bf16 %v13971_v13  ;;  %v11330_v27 = vadd.f32 %v16987_v22, %v11329_v24  ;;  %v14328_v24 = vld [vmem:[#allocation2 + $0x28] sm:$0xff] }
 0x801   :  { %v16999_v34 = vadd.f32 %v14324_v59, %v11335_v54  ;;  %v11217_v28 = vsel %vm11206_vm3, %v11200_v61, %v13967_v41  ;;  %v11218_v45 = vsel %vm11206_vm3, %v11201_v37, %v13968_v20  ;;  %v14329_v61 = vld [vmem:[#allocation2 + $0x20] sm:$0xff]  ;;  %v14330_v59 = vld [vmem:[#allocation2 + $0x38] sm:$0xff] }
 0x802   :  { %v17003_v8 = vadd.f32 %v14325_v48, %v11330_v27  ;;  %v13976_v18 = vpop.permute.xlu0 %13975  ;;  %v11234_v15 = vsel %vm11223_vm4, %v11217_v28, %v13972_v25  ;;  %v11235_v57 = vsel %vm11223_vm4, %v11218_v45, %v13973_v1  ;;  %v14331_v45 = vld [vmem:[#allocation2 + $0x30] sm:$0xff] }
 0x803   :  { %v13978_v58 = vunpack.i.h.bf16 %v13976_v18  ;;  %v13977_v39 = vunpack.i.l.bf16 %v13976_v18  ;;  %v13981_v62 = vpop.permute.xlu1 %13980  ;;  %13682 = vmatprep.mubr.f32.mxu0 %v11234_v15  ;;  %11426 = vadd.xlane.f32.xlu1 %v16999_v34 }
 0x804   :  { %13683 = vmatmul.mubr.f32.gmra.mrb[162].mxu0 %v11235_v57  ;;  %11424 = vadd.xlane.f32.xlu0 %v17003_v8  ;;  %v13983_v7 = vunpack.i.h.bf16 %v13981_v62  ;;  %v13982_v35 = vunpack.i.l.bf16 %v13981_v62 }
 0x805   :  { %v11202_v11 = vsel %vm884_vm1, %v17849_v38, %v13977_v39  ;;  %v11203_v9 = vsel %vm884_vm1, %v17850_v40, %v13978_v58  ;;  %v14332_v39 = vld [vmem:[#allocation2 + $0x48] sm:$0xff] }
 0x806   :  { %v11219_v46 = vsel %vm11206_vm3, %v11202_v11, %v13982_v35  ;;  %v11220_v53 = vsel %vm11206_vm3, %v11203_v9, %v13983_v7  ;;  %v14333_v7 = vld [vmem:[#allocation2 + $0x40] sm:$0xff] }
 0x807   :  { %v13991_v44 = vpop.permute.xlu1 %13990  ;;  %v13986_v32 = vpop.permute.xlu0 %13985 }
 0x808   :  { %v13988_v51 = vunpack.i.h.bf16 %v13986_v32  ;;  %v13987_v52 = vunpack.i.l.bf16 %v13986_v32  ;;  %v13993_v55 = vunpack.i.h.bf16 %v13991_v44  ;;  %v13992_v2 = vunpack.i.l.bf16 %v13991_v44  ;;  %v14334_v32 = vld [vmem:[#allocation2 + $0x58] sm:$0xff] }
 0x80a   :  { %v11236_v10 = vsel %vm11223_vm4, %v11219_v46, %v13987_v52  ;;  %v11237_v33 = vsel %vm11223_vm4, %v11220_v53, %v13988_v51  ;;  %v11204_v30 = vsel %vm884_vm1, %v17851_v56, %v13992_v2  ;;  %v11205_v36 = vsel %vm884_vm1, %v17852_v47, %v13993_v55  ;;  %v14335_v52 = vld [vmem:[#allocation2 + $0x50] sm:$0xff] }
 0x80b   :  { %v13996_v29 = vpop.permute.xlu0 %13995  ;;  %13685 = vmatprep.mubr.f32.mxu0 %v11236_v10  ;;  %v14001_v50 = vpop.permute.xlu1 %14000 }
 0x80c   :  { %v13998_v23 = vunpack.i.h.bf16 %v13996_v29  ;;  %v13997_v43 = vunpack.i.l.bf16 %v13996_v29  ;;  %v14003_v14 = vunpack.i.h.bf16 %v14001_v50  ;;  %v14002_v42 = vunpack.i.l.bf16 %v14001_v50  ;;  %13686 = vmatmul.mubr.f32.gmra.mrb[164].mxu0 %v11237_v33  ;;  %v14336_v50 = vld [vmem:[#allocation2 + $0x68] sm:$0xff] }
 0x80e   :  { %v11221_v19 = vsel %vm11206_vm3, %v11204_v30, %v13997_v43  ;;  %v11222_v21 = vsel %vm11206_vm3, %v11205_v36, %v13998_v23 }
 0x80f   :  { %v11238_v6 = vsel %vm11223_vm4, %v11221_v19, %v14002_v42  ;;  %v11239_v49 = vsel %vm11223_vm4, %v11222_v21, %v14003_v14  ;;  %v14337_v14 = vld [vmem:[#allocation2 + $0x60] sm:$0xff] }
 0x810   :  { %13688 = vmatprep.mubr.f32.mxu0 %v11238_v6 }
 0x811   :  { %13689 = vmatmul.mubr.f32.gmra.mrb[166].mxu0 %v11239_v49 }
 0x833   :  { %v13672_v60 = vpop.f32.mrb[154].mxu0 }
 0x834   :  { %v11339_v31 = vpop.f32.mrb[155].mxu0  ;;  %v11345_v17 = vadd.f32 %v13672_v60, %v16987_v22  ;;  %v14338_v60 = vld [vmem:[#allocation2 + $0x78] sm:$0xff] }
 0x835   :  { %v11340_v12 = vadd.f32 %v16987_v22, %v11339_v31 }
 0x836   :  { %v17030_v4 = vadd.f32 %v14327_v16, %v11345_v17 }
 0x837   :  { %v17027_v0 = vadd.f32 %v14326_v5, %v11340_v12  ;;  %v14339_v5 = vld [vmem:[#allocation2 + $0x70] sm:$0xff] }
 0x839   :  { %11428 = vadd.xlane.f32.xlu0 %v17027_v0 }
 0x83d   :  { %11430 = vadd.xlane.f32.xlu0 %v17030_v4 }
 0x868   :  { %v13675_v54 = vpop.f32.mrb[156].mxu0 }
 0x869   :  { %v11355_v20 = vadd.f32 %v13675_v54, %v16987_v22  ;;  %v11349_v41 = vpop.f32.mrb[157].mxu0 }
 0x86a   :  { %v11350_v13 = vadd.f32 %v16987_v22, %v11349_v41  ;;  %v11650_v41 = vld [vmem:[#allocation8 + $0x18] sm:$0xff] }
 0x86b   :  { %v17035_v3 = vadd.f32 %v14328_v24, %v11355_v20  ;;  %v11648_v20 = vld [vmem:[#allocation8 + $0x8] sm:$0xff] }
 0x86c   :  { %v17037_v1 = vadd.f32 %v14329_v61, %v11350_v13  ;;  %v13787_v13 = vpack.c.bf16 %v11650_v41, %v11648_v20  ;;  %v11647_v61 = vld [vmem:[#allocation8] sm:$0xff]  ;;  %v11673_v41 = vld [vmem:[#allocation8 + $0xd0] sm:$0xff] }
 0x86d   :  { %11434 = vadd.xlane.f32.xlu0 %v17035_v3  ;;  %v11671_v20 = vld [vmem:[#allocation8 + $0xc0] sm:$0xff] }
 0x86e   :  { %11432 = vadd.xlane.f32.xlu1 %v17037_v1  ;;  %13788 = vmatprep.subr.bf16.mxu1 %v13787_v13  ;;  %v11676_v13 = vld [vmem:[#allocation8 + $0xe8] sm:$0xff] }
 0x890   :  { %v11427_v53 = vpop.xlane.xlu1 %11426 }
 0x891   :  { %v11425_v44 = vpop.xlane.xlu0 %11424  ;;  %v11458_v43 = vmul.f32 0.0078125, %v11427_v53 }
 0x892   :  { %v11457_v56 = vmul.f32 0.0078125, %v11425_v44 }
 0x893   :  { %v17076_v6 = vsub.f32 %v16999_v34, %v11458_v43 }
 0x894   :  { %v17081_v12 = vsub.f32 %v17003_v8, %v11457_v56 }
 0x895   :  { %v11490_v34 = vmul.f32 %v17076_v6, %v17076_v6 }
 0x896   :  { %v11489_v8 = vmul.f32 %v17081_v12, %v17081_v12 }
 0x89d   :  { %v13678_v25 = vpop.f32.mrb[158].mxu0 }
 0x89e   :  { %v11365_v27 = vadd.f32 %v13678_v25, %v16987_v22  ;;  %v11359_v26 = vpop.f32.mrb[159].mxu0 }
 0x89f   :  { %v11360_v37 = vadd.f32 %v16987_v22, %v11359_v26  ;;  %v11654_v26 = vld [vmem:[#allocation8 + $0x38] sm:$0xff] }
 0x8a0   :  { %v17043_v28 = vadd.f32 %v14330_v59, %v11365_v27  ;;  %v11652_v27 = vld [vmem:[#allocation8 + $0x28] sm:$0xff] }
 0x8a1   :  { %v17045_v48 = vadd.f32 %v14331_v45, %v11360_v37  ;;  %v11651_v37 = vld [vmem:[#allocation8 + $0x20] sm:$0xff]  ;;  %v13791_v59 = vpack.c.bf16 %v11654_v26, %v11652_v27  ;;  %v11653_v45 = vld [vmem:[#allocation8 + $0x30] sm:$0xff] }
 0x8a2   :  { %11438 = vadd.xlane.f32.xlu0 %v17043_v28 }
 0x8a3   :  { %11436 = vadd.xlane.f32.xlu1 %v17045_v48 }
 0x8c6   :  { %v11429_v2 = vpop.xlane.xlu0 %11428 }
 0x8c7   :  { %v11459_v17 = vmul.f32 0.0078125, %v11429_v2  ;;  %v11662_v2 = vld [vmem:[#allocation8 + $0x78] sm:$0xff] }
 0x8c9   :  { %v17093_v54 = vsub.f32 %v17027_v0, %v11459_v17  ;;  %v11649_v0 = vld [vmem:[#allocation8 + $0x10] sm:$0xff]  ;;  %v11672_v17 = vld [vmem:[#allocation8 + $0xc8] sm:$0xff] }
 0x8ca   :  { %v11431_v30 = vpop.xlane.xlu0 %11430  ;;  %v13789_v25 = vpack.c.bf16 %v11649_v0, %v11647_v61  ;;  %v11675_v0 = vld [vmem:[#allocation8 + $0xe0] sm:$0xff] }
 0x8cb   :  { %v11460_v49 = vmul.f32 0.0078125, %v11431_v30  ;;  %v11663_v30 = vld [vmem:[#allocation8 + $0x80] sm:$0xff] }
 0x8cc   :  { %13790 = vmatpush1.bf16.msra.mxu1 %v13789_v25  ;;  %v11677_v25 = vld [vmem:[#allocation8 + $0xf0] sm:$0xff] }
 0x8cd   :  { %13792 = vmatprep.subr.bf16.mxu1 %v13791_v59  ;;  %v13817_v27 = vpack.c.bf16 %v11677_v25, %v11675_v0  ;;  %v17164_v0 = vld [vmem:[%s17568_s5] ss:$0 sm:$0xff] }
 0x8d2   :  { %v13681_v18 = vpop.f32.mrb[160].mxu0 }
 0x8d3   :  { %v11375_v15 = vadd.f32 %v13681_v18, %v16987_v22  ;;  %v11369_v57 = vpop.f32.mrb[161].mxu0  ;;  %v13793_v18 = vpack.c.bf16 %v11653_v45, %v11651_v37 }
 0x8d4   :  { %v11370_v58 = vadd.f32 %v16987_v22, %v11369_v57  ;;  %v11658_v57 = vld [vmem:[#allocation8 + $0x58] sm:$0xff] }
 0x8d5   :  { %v17051_v62 = vadd.f32 %v14332_v39, %v11375_v15  ;;  %13794 = vmatpush1.bf16.msra.mxu1 %v13793_v18  ;;  %v11656_v15 = vld [vmem:[#allocation8 + $0x48] sm:$0xff] }
 0x8d6   :  { %v17053_v35 = vadd.f32 %v14333_v7, %v11370_v58  ;;  %v13795_v39 = vpack.c.bf16 %v11658_v57, %v11656_v15  ;;  %v11655_v7 = vld [vmem:[#allocation8 + $0x40] sm:$0xff] }
 0x8d7   :  { %v13684_v38 = vpop.f32.mrb[162].mxu0  ;;  %11442 = vadd.xlane.f32.xlu0 %v17051_v62 }
 0x8d8   :  { %v11385_v11 = vadd.f32 %v13684_v38, %v16987_v22  ;;  %v11379_v40 = vpop.f32.mrb[163].mxu0  ;;  %11440 = vadd.xlane.f32.xlu1 %v17053_v35  ;;  %v11657_v38 = vld [vmem:[#allocation8 + $0x50] sm:$0xff]  ;;  %13796 = vmatprep.subr.bf16.mxu1 %v13795_v39 }
 0x8d9   :  { %v11380_v9 = vadd.f32 %v16987_v22, %v11379_v40 }
 0x8da   :  { %v17059_v51 = vadd.f32 %v14334_v32, %v11385_v11 }
 0x8db   :  { %v17061_v55 = vadd.f32 %v14335_v52, %v11380_v9  ;;  %v13797_v9 = vpack.c.bf16 %v11657_v38, %v11655_v7  ;;  %v11660_v52 = vld [vmem:[#allocation8 + $0x68] sm:$0xff] }
 0x8dc   :  { %11446 = vadd.xlane.f32.xlu0 %v17059_v51  ;;  %v13799_v53 = vpack.c.bf16 %v11662_v2, %v11660_v52 }
 0x8dd   :  { %11444 = vadd.xlane.f32.xlu1 %v17061_v55  ;;  %13798 = vmatpush1.bf16.msra.mxu1 %v13797_v9 }
 0x8de   :  { %13800 = vmatprep.subr.bf16.mxu1 %v13799_v53 }
 0x8df   :  { %v13687_v46 = vpop.f32.mrb[164].mxu0 }
 0x8e0   :  { %v11395_v10 = vadd.f32 %v13687_v46, %v16987_v22  ;;  %v11389_v33 = vpop.f32.mrb[165].mxu0 }
 0x8e1   :  { %v11390_v29 = vadd.f32 %v16987_v22, %v11389_v33  ;;  %v11661_v33 = vld [vmem:[#allocation8 + $0x70] sm:$0xff] }
 0x8e2   :  { %v17067_v23 = vadd.f32 %v14336_v50, %v11395_v10  ;;  %v11659_v10 = vld [vmem:[#allocation8 + $0x60] sm:$0xff] }
 0x8e3   :  { %v17069_v42 = vadd.f32 %v14337_v14, %v11390_v29  ;;  %v13801_v50 = vpack.c.bf16 %v11661_v33, %v11659_v10  ;;  %v11666_v14 = vld [vmem:[#allocation8 + $0x98] sm:$0xff] }
 0x8e4   :  { %11450 = vadd.xlane.f32.xlu0 %v17067_v23  ;;  %v13690_v47 = vpop.f32.mrb[166].mxu0 }
 0x8e5   :  { %v11405_v36 = vadd.f32 %v13690_v47, %v16987_v22  ;;  %11448 = vadd.xlane.f32.xlu1 %v17069_v42  ;;  %v11399_v19 = vpop.f32.mrb[167].mxu0  ;;  %13802 = vmatpush1.bf16.msra.mxu1 %v13801_v50 }
 0x8e6   :  { %v11400_v21 = vadd.f32 %v16987_v22, %v11399_v19  ;;  %v17088_v22 = vsub.f32 %v17030_v4, %v11460_v49  ;;  %v11491_v4 = vmul.f32 %v17093_v54, %v17093_v54  ;;  %v11670_v19 = vld [vmem:[#allocation8 + $0xb8] sm:$0xff] }
 0x8e7   :  { %v17078_v31 = vadd.f32 %v14338_v60, %v11405_v36  ;;  %v11668_v36 = vld [vmem:[#allocation8 + $0xa8] sm:$0xff]  ;;  %v11669_v60 = vld [vmem:[#allocation8 + $0xb0] sm:$0xff] }
 0x8e8   :  { %v17083_v16 = vadd.f32 %v14339_v5, %v11400_v21  ;;  %v11492_v24 = vmul.f32 %v17088_v22, %v17088_v22  ;;  %v11667_v21 = vld [vmem:[#allocation8 + $0xa0] sm:$0xff]  ;;  %v13807_v49 = vpack.c.bf16 %v11670_v19, %v11668_v36  ;;  %v11674_v5 = vld [vmem:[#allocation8 + $0xd8] sm:$0xff] }
 0x8e9   :  { %11454 = vadd.xlane.f32.xlu0 %v17078_v31 }
 0x8ea   :  { %11452 = vadd.xlane.f32.xlu1 %v17083_v16 }
 0x8ed   :  { %11507 = vadd.xlane.f32.xlu0 %v11490_v34  ;;  %v13809_v34 = vpack.c.bf16 %v11669_v60, %v11667_v21 }
 0x8ee   :  { %11505 = vadd.xlane.f32.xlu1 %v11489_v8  ;;  %v13811_v8 = vpack.c.bf16 %v11674_v5, %v11672_v17 }
 0x8f1   :  { %11511 = vadd.xlane.f32.xlu0 %v11492_v24  ;;  %v11678_v24 = vld [vmem:[#allocation8 + $0xf8] sm:$0xff] }
 0x8f2   :  { %11509 = vadd.xlane.f32.xlu1 %v11491_v4  ;;  %v13813_v4 = vpack.c.bf16 %v11673_v41, %v11671_v20  ;;  %v13815_v61 = vpack.c.bf16 %v11678_v24, %v11676_v13 }
 0x8fa   :  { %v11435_v58 = vpop.xlane.xlu0 %11434 }
 0x8fb   :  { %v11462_v11 = vmul.f32 0.0078125, %v11435_v58  ;;  %v11433_v40 = vpop.xlane.xlu1 %11432 }
 0x8fc   :  { %v11461_v44 = vmul.f32 0.0078125, %v11433_v40 }
 0x8fd   :  { %v17102_v32 = vsub.f32 %v17035_v3, %v11462_v11  ;;  %v11664_v3 = vld [vmem:[#allocation8 + $0x88] sm:$0xff] }
 0x8fe   :  { %v17105_v46 = vsub.f32 %v17037_v1, %v11461_v44  ;;  %v13803_v56 = vpack.c.bf16 %v11666_v14, %v11664_v3  ;;  %v11665_v1 = vld [vmem:[#allocation8 + $0x90] sm:$0xff] }
 0x8ff   :  { %v11494_v29 = vmul.f32 %v17102_v32, %v17102_v32  ;;  %v13805_v47 = vpack.c.bf16 %v11665_v1, %v11663_v30 }
 0x900   :  { %v11493_v43 = vmul.f32 %v17105_v46, %v17105_v46  ;;  %13804 = vmatprep.subr.bf16.mxu1 %v13803_v56 }
 0x901   :  { %11515 = vadd.xlane.f32.xlu0 %v11494_v29  ;;  %13806 = vmatpush1.bf16.msra.mxu1 %v13805_v47 }
 0x902   :  { %11513 = vadd.xlane.f32.xlu1 %v11493_v43  ;;  %13808 = vmatprep.subr.bf16.mxu1 %v13807_v49 }
 0x905   :  { %13810 = vmatpush1.bf16.msra.mxu1 %v13809_v34 }
 0x906   :  { %13812 = vmatprep.subr.bf16.mxu1 %v13811_v8 }
 0x909   :  { %13814 = vmatpush1.bf16.msra.mxu1 %v13813_v4 }
 0x90a   :  { %13816 = vmatprep.subr.bf16.mxu1 %v13815_v61 }
 0x90d   :  { %13818 = vmatpush1.bf16.msra.mxu1 %v13817_v27 }
 0x92f   :  { %v11439_v26 = vpop.xlane.xlu0 %11438 }
 0x930   :  { %v11464_v37 = vmul.f32 0.0078125, %v11439_v26  ;;  %v11437_v59 = vpop.xlane.xlu1 %11436  ;;  %v17171_v26 = vld [vmem:[%s17569_s6] ss:$0 sm:$0xff] }
 0x931   :  { %v11463_v45 = vmul.f32 0.0078125, %v11437_v59 }
 0x932   :  { %v17112_v18 = vsub.f32 %v17043_v28, %v11464_v37 }
 0x933   :  { %v17115_v15 = vsub.f32 %v17045_v48, %v11463_v45 }
 0x934   :  { %v11496_v57 = vmul.f32 %v17112_v18, %v17112_v18 }
 0x935   :  { %v11495_v58 = vmul.f32 %v17115_v15, %v17115_v15 }
 0x936   :  { %11519 = vadd.xlane.f32.xlu0 %v11496_v57 }
 0x937   :  { %11517 = vadd.xlane.f32.xlu1 %v11495_v58 }
 0x964   :  { %v11443_v39 = vpop.xlane.xlu0 %11442 }
 0x965   :  { %v11466_v7 = vmul.f32 0.0078125, %v11443_v39  ;;  %v11441_v38 = vpop.xlane.xlu1 %11440 }
 0x966   :  { %v11465_v11 = vmul.f32 0.0078125, %v11441_v38 }
 0x967   :  { %v17122_v40 = vsub.f32 %v17051_v62, %v11466_v7 }
 0x968   :  { %v17125_v28 = vsub.f32 %v17053_v35, %v11465_v11 }
 0x969   :  { %v11447_v48 = vpop.xlane.xlu0 %11446  ;;  %v11498_v9 = vmul.f32 %v17122_v40, %v17122_v40 }
 0x96a   :  { %v11468_v44 = vmul.f32 0.0078125, %v11447_v48  ;;  %v11445_v52 = vpop.xlane.xlu1 %11444  ;;  %v11497_v2 = vmul.f32 %v17125_v28, %v17125_v28 }
 0x96b   :  { %v11467_v53 = vmul.f32 0.0078125, %v11445_v52  ;;  %11523 = vadd.xlane.f32.xlu0 %v11498_v9 }
 0x96c   :  { %v17132_v10 = vsub.f32 %v17059_v51, %v11468_v44  ;;  %11521 = vadd.xlane.f32.xlu1 %v11497_v2 }
 0x96d   :  { %v17135_v62 = vsub.f32 %v17061_v55, %v11467_v53 }
 0x96e   :  { %v11500_v35 = vmul.f32 %v17132_v10, %v17132_v10 }
 0x96f   :  { %v11499_v33 = vmul.f32 %v17135_v62, %v17135_v62 }
 0x970   :  { %11527 = vadd.xlane.f32.xlu0 %v11500_v35 }
 0x971   :  { %v11451_v29 = vpop.xlane.xlu0 %11450  ;;  %11525 = vadd.xlane.f32.xlu1 %v11499_v33 }
 0x972   :  { %v11470_v50 = vmul.f32 0.0078125, %v11451_v29  ;;  %v11449_v43 = vpop.xlane.xlu1 %11448 }
 0x973   :  { %v11469_v3 = vmul.f32 0.0078125, %v11449_v43 }
 0x974   :  { %v17142_v14 = vsub.f32 %v17067_v23, %v11470_v50 }
 0x975   :  { %v17145_v51 = vsub.f32 %v17069_v42, %v11469_v3 }
 0x976   :  { %v11455_v55 = vpop.xlane.xlu0 %11454  ;;  %v11502_v56 = vmul.f32 %v17142_v14, %v17142_v14 }
 0x977   :  { %v11472_v30 = vmul.f32 0.0078125, %v11455_v55  ;;  %v11453_v1 = vpop.xlane.xlu1 %11452  ;;  %v11501_v47 = vmul.f32 %v17145_v51, %v17145_v51 }
 0x978   :  { %v11471_v36 = vmul.f32 0.0078125, %v11453_v1  ;;  %11531 = vadd.xlane.f32.xlu0 %v11502_v56  ;;  %v11884_v56 = vld [vmem:[#allocation10] sm:$0xff]  ;;  %v11885_v1 = vld [vmem:[#allocation10 + $0x8] sm:$0xff] }
 0x979   :  { %v17152_v19 = vsub.f32 %v17078_v31, %v11472_v30  ;;  %11529 = vadd.xlane.f32.xlu1 %v11501_v47  ;;  %v11902_v47 = vld [vmem:[#allocation10 + $0x90] sm:$0xff] }
 0x97a   :  { %v17155_v23 = vsub.f32 %v17083_v16, %v11471_v36  ;;  %v11508_v42 = vpop.xlane.xlu0 %11507  ;;  %v11903_v36 = vld [vmem:[#allocation10 + $0x98] sm:$0xff] }
 0x97b   :  { %v11538_v21 = vmul.f32 0.0078125, %v11508_v42  ;;  %v11506_v49 = vpop.xlane.xlu1 %11505  ;;  %v11504_v60 = vmul.f32 %v17152_v19, %v17152_v19  ;;  %v13821_v42 = vpack.c.bf16 %v11885_v1, %v11884_v56 }
 0x97c   :  { %v11537_v17 = vmul.f32 0.0078125, %v11506_v49  ;;  %v11503_v5 = vmul.f32 %v17155_v23, %v17155_v23  ;;  %v11886_v49 = vld [vmem:[#allocation10 + $0x10] sm:$0xff] }
 0x97d   :  { %v11554_v34 = vadd.f32 1e-06, %v11538_v21  ;;  %11535 = vadd.xlane.f32.xlu0 %v11504_v60  ;;  %v13823_v21 = vpack.c.bf16 %v11903_v36, %v11902_v47  ;;  %v11887_v60 = vld [vmem:[#allocation10 + $0x18] sm:$0xff] }
 0x97e   :  { %v11553_v8 = vadd.f32 1e-06, %v11537_v17  ;;  %v11512_v20 = vpop.xlane.xlu0 %11511  ;;  %11533 = vadd.xlane.f32.xlu1 %v11503_v5  ;;  %v11904_v17 = vld [vmem:[#allocation10 + $0xa0] sm:$0xff]  ;;  %v11905_v5 = vld [vmem:[#allocation10 + $0xa8] sm:$0xff] }
 0x97f   :  { %14260 = vrsqrt.f32 %v11554_v34  ;;  %v11540_v31 = vmul.f32 0.0078125, %v11512_v20  ;;  %v11510_v41 = vpop.xlane.xlu1 %11509  ;;  %v13825_v34 = vpack.c.bf16 %v11887_v60, %v11886_v49  ;;  %v11888_v20 = vld [vmem:[#allocation10 + $0x20] sm:$0xff]  ;;  %v11914_v49 = vld [vmem:[#allocation10 + $0xf0] sm:$0xff]  ;;  %v11915_v60 = vld [vmem:[#allocation10 + $0xf8] sm:$0xff] }
 0x980   :  { %14262 = vrsqrt.f32 %v11553_v8  ;;  %v11539_v16 = vmul.f32 0.0078125, %v11510_v41  ;;  %v13827_v8 = vpack.c.bf16 %v11905_v5, %v11904_v17  ;;  %v11906_v41 = vld [vmem:[#allocation10 + $0xb0] sm:$0xff]  ;;  %v13847_v17 = vpack.c.bf16 %v11915_v60, %v11914_v49 }
 0x981   :  { %v11556_v13 = vadd.f32 1e-06, %v11540_v31  ;;  %v11889_v31 = vld [vmem:[#allocation10 + $0x28] sm:$0xff]  ;;  %v11898_v5 = vld [vmem:[#allocation10 + $0x70] sm:$0xff] }
 0x982   :  { %v11555_v24 = vadd.f32 1e-06, %v11539_v16  ;;  %v11907_v16 = vld [vmem:[#allocation10 + $0xb8] sm:$0xff] }
 0x984   :  { %14264 = vrsqrt.f32 %v11555_v24  ;;  %v13831_v24 = vpack.c.bf16 %v11907_v16, %v11906_v41 }
 0x985   :  { %14266 = vrsqrt.f32 %v11556_v13  ;;  %v13829_v13 = vpack.c.bf16 %v11889_v31, %v11888_v20 }
 0x989   :  { %v14261_v4 = vpop.eup %14260 }
 0x98a   :  { %v14263_v61 = vpop.eup %14262  ;;  %v11586_v27 = vmul.f32 %v14261_v4, %v17076_v6  ;;  %v11890_v4 = vld [vmem:[#allocation10 + $0x30] sm:$0xff] }
 0x98b   :  { %v11585_v25 = vmul.f32 %v14263_v61, %v17081_v12  ;;  %v11891_v61 = vld [vmem:[#allocation10 + $0x38] sm:$0xff] }
 0x98c   :  { %v11609_v7 = vmul.f32 %v17164_v0, %v11586_v27  ;;  %v11909_v27 = vld [vmem:[#allocation10 + $0xc8] sm:$0xff] }
 0x98d   :  { %v11608_v37 = vmul.f32 %v17164_v0, %v11585_v25  ;;  %v11908_v25 = vld [vmem:[#allocation10 + $0xc0] sm:$0xff] }
 0x98e   :  { %v14265_v59 = vpop.eup %14264  ;;  %v11516_v45 = vpop.xlane.xlu0 %11515  ;;  %v17182_v9 = vadd.f32 %v17171_v26, %v11609_v7  ;;  %v11911_v7 = vld [vmem:[#allocation10 + $0xd8] sm:$0xff] }
 0x98f   :  { %v11542_v57 = vmul.f32 0.0078125, %v11516_v45  ;;  %v11514_v58 = vpop.xlane.xlu1 %11513  ;;  %v17175_v39 = vadd.f32 %v17171_v26, %v11608_v37  ;;  %v11587_v12 = vmul.f32 %v14265_v59, %v17093_v54  ;;  %v14267_v38 = vpop.eup %14266  ;;  %v13833_v37 = vpack.c.bf16 %v11891_v61, %v11890_v4  ;;  %v11892_v45 = vld [vmem:[#allocation10 + $0x40] sm:$0xff] }
 0x990   :  { %v11541_v6 = vmul.f32 0.0078125, %v11514_v58  ;;  %v11588_v52 = vmul.f32 %v14267_v38, %v17088_v22  ;;  %v13835_v59 = vpack.c.bf16 %v11909_v27, %v11908_v25  ;;  %v11910_v58 = vld [vmem:[#allocation10 + $0xd0] sm:$0xff] }
 0x991   :  { %v11558_v11 = vadd.f32 1e-06, %v11542_v57  ;;  %11756 = vmatmul.mubr.f32.vlgmr.msra.gmra.mrb[152].mxu1 %v17175_v39  ;;  %v11610_v44 = vmul.f32 %v17164_v0, %v11587_v12  ;;  %v11893_v57 = vld [vmem:[#allocation10 + $0x48] sm:$0xff]  ;;  %v13839_v38 = vpack.c.bf16 %v11911_v7, %v11910_v58 }
 0x992   :  { %v11557_v48 = vadd.f32 1e-06, %v11541_v6  ;;  %11761 = vmatprep.mubr.f32.mxu1 %v17687_v63  ;;  %v11611_v2 = vmul.f32 %v17164_v0, %v11588_v52  ;;  %v13837_v12 = vpack.c.bf16 %v11893_v57, %v11892_v45  ;;  %v11894_v6 = vld [vmem:[#allocation10 + $0x50] sm:$0xff] }
 0x993   :  { %14268 = vrsqrt.f32 %v11558_v11  ;;  %v17189_v54 = vadd.f32 %v17171_v26, %v11610_v44  ;;  %v11895_v11 = vld [vmem:[#allocation10 + $0x58] sm:$0xff]  ;;  %v11913_v44 = vld [vmem:[#allocation10 + $0xe8] sm:$0xff] }
 0x994   :  { %14270 = vrsqrt.f32 %v11557_v48  ;;  %v17195_v53 = vadd.f32 %v17171_v26, %v11611_v2  ;;  %v11912_v48 = vld [vmem:[#allocation10 + $0xe0] sm:$0xff]  ;;  %v13841_v52 = vpack.c.bf16 %v11895_v11, %v11894_v6 }
 0x995   :  { %11762 = vmatmul.mubr.f32.gmra.mrb[154].mxu1 %v17182_v9  ;;  %v13843_v2 = vpack.c.bf16 %v11913_v44, %v11912_v48 }
 0x996   :  { %11767 = vmatprep.mubr.f32.mxu1 %v17687_v63 }
 0x999   :  { %11768 = vmatmul.mubr.f32.gmra.mrb[156].mxu1 %v17189_v54 }
 0x99a   :  { %11773 = vmatprep.mubr.f32.mxu1 %v17687_v63 }
 0x99d   :  { %v14269_v35 = vpop.eup %14268  ;;  %11774 = vmatmul.mubr.f32.gmra.mrb[158].mxu1 %v17195_v53 }
 0x99e   :  { %v14271_v22 = vpop.eup %14270  ;;  %11779 = vmatprep.mubr.f32.mxu1 %v17687_v63  ;;  %v11590_v29 = vmul.f32 %v14269_v35, %v17102_v32  ;;  %v11901_v32 = vld [vmem:[#allocation10 + $0x88] sm:$0xff] }
 0x99f   :  { %v11589_v33 = vmul.f32 %v14271_v22, %v17105_v46  ;;  %v11900_v46 = vld [vmem:[#allocation10 + $0x80] sm:$0xff] }
 0x9a0   :  { %v11613_v3 = vmul.f32 %v17164_v0, %v11590_v29  ;;  %v13819_v30 = vpack.c.bf16 %v11901_v32, %v11900_v46 }
 0x9a1   :  { %v11612_v50 = vmul.f32 %v17164_v0, %v11589_v33 }
 0x9a2   :  { %v17209_v55 = vadd.f32 %v17171_v26, %v11613_v3  ;;  %13820 = vmatprep.subr.bf16.mxu0 %v13819_v30  ;;  %13851 = vmatprep.subr.bf16.mxu1 %v13819_v30 }
 0x9a3   :  { %v17203_v43 = vadd.f32 %v17171_v26, %v11612_v50  ;;  %13822 = vmatpush3.bf16.msra.mxu0 %v13821_v42  ;;  %13859 = vmatpush3.bf16.msra.mxu1 %v13821_v42 }
 0x9a4   :  { %13824 = vmatprep.subr.bf16.mxu0 %v13823_v21  ;;  %13852 = vmatprep.subr.bf16.mxu1 %v13823_v21 }
 0x9a5   :  { %11780 = vmatmul.mubr.f32.gmra.mrb[160].mxu1 %v17203_v43 }
 0x9a6   :  { %11785 = vmatprep.mubr.f32.mxu1 %v17687_v63 }
 0x9a7   :  { %13826 = vmatpush3.bf16.msra.mxu0 %v13825_v34  ;;  %13860 = vmatpush3.bf16.msra.mxu1 %v13825_v34  ;;  %v11899_v34 = vld [vmem:[#allocation10 + $0x78] sm:$0xff] }
 0x9a8   :  { %13828 = vmatprep.subr.bf16.mxu0 %v13827_v8  ;;  %13853 = vmatprep.subr.bf16.mxu1 %v13827_v8  ;;  %v13849_v8 = vpack.c.bf16 %v11899_v34, %v11898_v5 }
 0x9a9   :  { %11786 = vmatmul.mubr.f32.gmra.mrb[162].mxu1 %v17209_v55 }
 0x9aa   :  { %11791 = vmatprep.mubr.f32.mxu1 %v17687_v63 }
 0x9ab   :  { %13830 = vmatpush3.bf16.msra.mxu0 %v13829_v13  ;;  %13861 = vmatpush3.bf16.msra.mxu1 %v13829_v13 }
 0x9ac   :  { %13832 = vmatprep.subr.bf16.mxu0 %v13831_v24  ;;  %13854 = vmatprep.subr.bf16.mxu1 %v13831_v24 }
 0x9af   :  { %13834 = vmatpush3.bf16.msra.mxu0 %v13833_v37  ;;  %13862 = vmatpush3.bf16.msra.mxu1 %v13833_v37 }
 0x9b0   :  { %13836 = vmatprep.subr.bf16.mxu0 %v13835_v59  ;;  %13855 = vmatprep.subr.bf16.mxu1 %v13835_v59 }
 0x9b3   :  { %13838 = vmatpush3.bf16.msra.mxu0 %v13837_v12  ;;  %13863 = vmatpush3.bf16.msra.mxu1 %v13837_v12 }
 0x9b4   :  { %13840 = vmatprep.subr.bf16.mxu0 %v13839_v38  ;;  %13856 = vmatprep.subr.bf16.mxu1 %v13839_v38 }
 0x9b7   :  { %13842 = vmatpush3.bf16.msra.mxu0 %v13841_v52  ;;  %13864 = vmatpush3.bf16.msra.mxu1 %v13841_v52 }
 0x9b8   :  { %13844 = vmatprep.subr.bf16.mxu0 %v13843_v2  ;;  %13857 = vmatprep.subr.bf16.mxu1 %v13843_v2 }
 0x9c3   :  { %v11520_v35 = vpop.xlane.xlu0 %11519 }
 0x9c4   :  { %v11544_v22 = vmul.f32 0.0078125, %v11520_v35  ;;  %v11518_v33 = vpop.xlane.xlu1 %11517 }
 0x9c5   :  { %v11543_v29 = vmul.f32 0.0078125, %v11518_v33 }
 0x9c6   :  { %v11560_v50 = vadd.f32 1e-06, %v11544_v22 }
 0x9c7   :  { %v11559_v3 = vadd.f32 1e-06, %v11543_v29 }
 0x9c8   :  { %14272 = vrsqrt.f32 %v11560_v50 }
 0x9c9   :  { %14274 = vrsqrt.f32 %v11559_v3 }
 0x9d2   :  { %v14273_v46 = vpop.eup %14272 }
 0x9d3   :  { %v14275_v32 = vpop.eup %14274  ;;  %v11592_v30 = vmul.f32 %v14273_v46, %v17112_v18  ;;  %v11897_v18 = vld [vmem:[#allocation10 + $0x68] sm:$0xff] }
 0x9d4   :  { %v11591_v56 = vmul.f32 %v14275_v32, %v17115_v15  ;;  %v11896_v15 = vld [vmem:[#allocation10 + $0x60] sm:$0xff] }
 0x9d5   :  { %v11615_v36 = vmul.f32 %v17164_v0, %v11592_v30  ;;  %v13845_v21 = vpack.c.bf16 %v11897_v18, %v11896_v15 }
 0x9d6   :  { %v11614_v1 = vmul.f32 %v17164_v0, %v11591_v56 }
 0x9d7   :  { %v17223_v42 = vadd.f32 %v17171_v26, %v11615_v36  ;;  %13846 = vmatpush3.bf16.msra.mxu0 %v13845_v21  ;;  %13865 = vmatpush3.bf16.msra.mxu1 %v13845_v21 }
 0x9d8   :  { %v17217_v47 = vadd.f32 %v17171_v26, %v11614_v1  ;;  %13848 = vmatprep.subr.bf16.mxu0 %v13847_v17  ;;  %13858 = vmatprep.subr.bf16.mxu1 %v13847_v17 }
 0x9da   :  { %11792 = vmatmul.mubr.f32.gmra.mrb[164].mxu1 %v17217_v47 }
 0x9db   :  { %11797 = vmatprep.mubr.f32.mxu1 %v17687_v63  ;;  %13850 = vmatpush3.bf16.msra.mxu0 %v13849_v8 }
 0x9dc   :  { %13866 = vmatpush3.bf16.msra.mxu1 %v13849_v8 }
 0x9de   :  { %11798 = vmatmul.mubr.f32.gmra.mrb[166].mxu1 %v17223_v42 }
 0x9df   :  { %11803 = vmatprep.mubr.f32.mxu1 %v17687_v63 }
 0x9f8   :  { %v11524_v20 = vpop.xlane.xlu0 %11523 }
 0x9f9   :  { %v11546_v31 = vmul.f32 0.0078125, %v11524_v20  ;;  %v11522_v41 = vpop.xlane.xlu1 %11521 }
 0x9fa   :  { %v11545_v16 = vmul.f32 0.0078125, %v11522_v41 }
 0x9fb   :  { %v11562_v13 = vadd.f32 1e-06, %v11546_v31 }
 0x9fc   :  { %v11561_v24 = vadd.f32 1e-06, %v11545_v16 }
 0x9fd   :  { %14276 = vrsqrt.f32 %v11562_v13  ;;  %v11528_v4 = vpop.xlane.xlu0 %11527  ;;  %v17853_v13 = vld [vmem:[#allocation16_spill] sm:$0xff] }
 0x9fe   :  { %14278 = vrsqrt.f32 %v11561_v24  ;;  %v11548_v61 = vmul.f32 0.0078125, %v11528_v4  ;;  %v11526_v25 = vpop.xlane.xlu1 %11525  ;;  %v17854_v24 = vsub.s32 0, %v17853_v13 }
 0x9ff   :  { %v11547_v27 = vmul.f32 0.0078125, %v11526_v25 }
 0xa00   :  { %v11564_v37 = vadd.f32 1e-06, %v11548_v61  ;;  %v17855_v61 = vsub.s32 1, %v17853_v13 }
 0xa01   :  { %v11563_v59 = vadd.f32 1e-06, %v11547_v27 }
 0xa03   :  { %14280 = vrsqrt.f32 %v11563_v59 }
 0xa04   :  { %14282 = vrsqrt.f32 %v11564_v37 }
 0xa05   :  { %v11532_v45 = vpop.xlane.xlu0 %11531 }
 0xa06   :  { %v11550_v57 = vmul.f32 0.0078125, %v11532_v45  ;;  %v11530_v58 = vpop.xlane.xlu1 %11529 }
 0xa07   :  { %v14277_v7 = vpop.eup %14276  ;;  %v11549_v12 = vmul.f32 0.0078125, %v11530_v58 }
 0xa08   :  { %v14279_v38 = vpop.eup %14278  ;;  %v11566_v6 = vadd.f32 1e-06, %v11550_v57  ;;  %v11594_v44 = vmul.f32 %v14277_v7, %v17122_v40 }
 0xa09   :  { %v11565_v11 = vadd.f32 1e-06, %v11549_v12  ;;  %v11593_v48 = vmul.f32 %v14279_v38, %v17125_v28 }
 0xa0a   :  { %v11536_v52 = vpop.xlane.xlu0 %11535  ;;  %v11617_v3 = vmul.f32 %v17164_v0, %v11594_v44 }
 0xa0b   :  { %14284 = vrsqrt.f32 %v11565_v11  ;;  %v11534_v2 = vpop.xlane.xlu1 %11533  ;;  %v11616_v35 = vmul.f32 %v17164_v0, %v11593_v48  ;;  %v11552_v22 = vmul.f32 0.0078125, %v11536_v52 }
 0xa0c   :  { %14286 = vrsqrt.f32 %v11566_v6  ;;  %v11551_v33 = vmul.f32 0.0078125, %v11534_v2  ;;  %v17238_v56 = vadd.f32 %v17171_v26, %v11617_v3 }
 0xa0d   :  { %v14281_v29 = vpop.eup %14280  ;;  %v17231_v50 = vadd.f32 %v17171_v26, %v11616_v35  ;;  %v11568_v40 = vadd.f32 1e-06, %v11552_v22 }
 0xa0e   :  { %v14283_v46 = vpop.eup %14282  ;;  %v11567_v32 = vadd.f32 1e-06, %v11551_v33  ;;  %v11595_v28 = vmul.f32 %v14281_v29, %v17135_v62 }
 0xa0f   :  { %11804 = vmatmul.mubr.f32.gmra.mrb[168].mxu1 %v17231_v50  ;;  %v11596_v1 = vmul.f32 %v14283_v46, %v17132_v10 }
 0xa10   :  { %14288 = vrsqrt.f32 %v11567_v32  ;;  %11809 = vmatprep.mubr.f32.mxu1 %v17687_v63  ;;  %v11618_v30 = vmul.f32 %v17164_v0, %v11595_v28 }
 0xa11   :  { %14290 = vrsqrt.f32 %v11568_v40  ;;  %v11619_v15 = vmul.f32 %v17164_v0, %v11596_v1 }
 0xa12   :  { %v17245_v62 = vadd.f32 %v17171_v26, %v11618_v30 }
 0xa13   :  { %11810 = vmatmul.mubr.f32.gmra.mrb[170].mxu1 %v17238_v56  ;;  %v17252_v10 = vadd.f32 %v17171_v26, %v11619_v15 }
 0xa14   :  { %11815 = vmatprep.mubr.f32.mxu1 %v17687_v63 }
 0xa15   :  { %v14285_v36 = vpop.eup %14284 }
 0xa16   :  { %v14287_v18 = vpop.eup %14286  ;;  %v11597_v21 = vmul.f32 %v14285_v36, %v17145_v51 }
 0xa17   :  { %11816 = vmatmul.mubr.f32.gmra.mrb[172].mxu1 %v17245_v62  ;;  %v11598_v60 = vmul.f32 %v14287_v18, %v17142_v14 }
 0xa18   :  { %11821 = vmatprep.mubr.f32.mxu1 %v17687_v63  ;;  %v11620_v49 = vmul.f32 %v17164_v0, %v11597_v21 }
 0xa19   :  { %v11621_v51 = vmul.f32 %v17164_v0, %v11598_v60 }
 0xa1a   :  { %v14289_v17 = vpop.eup %14288  ;;  %v17259_v5 = vadd.f32 %v17171_v26, %v11620_v49 }
 0xa1b   :  { %11822 = vmatmul.mubr.f32.gmra.mrb[174].mxu1 %v17252_v10  ;;  %v11599_v34 = vmul.f32 %v14289_v17, %v17155_v23  ;;  %v14291_v8 = vpop.eup %14290  ;;  %v17266_v20 = vadd.f32 %v17171_v26, %v11621_v51 }
 0xa1c   :  { %11827 = vmatprep.mubr.f32.mxu1 %v17687_v63  ;;  %v11600_v31 = vmul.f32 %v14291_v8, %v17152_v19  ;;  %v11679_v19 = vld [vmem:[%s17571_s8] sm:$0x3] }
 0xa1d   :  { %v11622_v14 = vmul.f32 %v17164_v0, %v11599_v34  ;;  %v17287_v4 = vrot.slane %v11679_v19, %v17854_v24 }
 0xa1e   :  { %v11623_v23 = vmul.f32 %v17164_v0, %v11600_v31  ;;  %v17291_v0 = vrot.slane %v11679_v19, %v17855_v61 }
 0xa1f   :  { %11828 = vmatmul.mubr.f32.gmra.mrb[176].mxu1 %v17259_v5  ;;  %v17273_v41 = vadd.f32 %v17171_v26, %v11622_v14 }
 0xa20   :  { %11833 = vmatprep.mubr.f32.mxu1 %v17687_v63  ;;  %v17279_v16 = vadd.f32 %v17171_v26, %v11623_v23 }
 0xa23   :  { %11834 = vmatmul.mubr.f32.gmra.mrb[178].mxu1 %v17266_v20 }
 0xa24   :  { %11839 = vmatprep.mubr.f32.mxu1 %v17687_v63 }
 0xa27   :  { %11840 = vmatmul.mubr.f32.gmra.mrb[180].mxu1 %v17273_v41 }
 0xa28   :  { %11845 = vmatprep.mubr.f32.mxu1 %v17687_v63 }
 0xa2b   :  { %11846 = vmatmul.mubr.f32.gmra.mrb[182].mxu1 %v17279_v16 }
 0xa64   :  { %v11757_v25 = vpop.f32.mrb[152].mxu1 }
 0xa65   :  { %v11758_v63 = vadd.f32 %v11757_v25, %v17287_v4  ;;  %v11759_v27 = vpop.f32.mrb[153].mxu1 }
 0xa66   :  { %v11760_v26 = vadd.f32 %v11759_v27, %v17291_v0 }
 0xa67   :  { %v11852_v45 = vmax.f32 %v11758_v63, 0.0 }
 0xa68   :  { %v11853_v37 = vmax.f32 %v11760_v26, 0.0  ;;  %v11763_v59 = vpop.f32.mrb[154].mxu1 }
 0xa69   :  { %v11764_v57 = vadd.f32 %v11763_v59, %v17287_v4  ;;  %v11765_v58 = vpop.f32.mrb[155].mxu1 }
 0xa6a   :  { %v11766_v7 = vadd.f32 %v11765_v58, %v17291_v0  ;;  %11987 = vmatprep.mubr.f32.mxu0 %v11853_v37 }
 0xa6b   :  { %11988 = vmatmul.mubr.f32.vlgmr.msra.gmra.mrb[168].mxu0 %v11852_v45  ;;  %v11854_v6 = vmax.f32 %v11764_v57, 0.0 }
 0xa6c   :  { %v11855_v12 = vmax.f32 %v11766_v7, 0.0  ;;  %v11769_v38 = vpop.f32.mrb[156].mxu1 }
 0xa6d   :  { %v11770_v11 = vadd.f32 %v11769_v38, %v17287_v4  ;;  %v11771_v48 = vpop.f32.mrb[157].mxu1 }
 0xa6e   :  { %v11772_v44 = vadd.f32 %v11771_v48, %v17291_v0  ;;  %11992 = vmatprep.mubr.f32.mxu0 %v11855_v12 }
 0xa6f   :  { %11993 = vmatmul.mubr.f32.gmra.mrb[170].mxu0 %v11854_v6  ;;  %v11856_v35 = vmax.f32 %v11770_v11, 0.0 }
 0xa70   :  { %v11857_v52 = vmax.f32 %v11772_v44, 0.0  ;;  %v11775_v2 = vpop.f32.mrb[158].mxu1 }
 0xa71   :  { %v11776_v22 = vadd.f32 %v11775_v2, %v17287_v4  ;;  %v11777_v33 = vpop.f32.mrb[159].mxu1 }
 0xa72   :  { %v11778_v29 = vadd.f32 %v11777_v33, %v17291_v0  ;;  %11997 = vmatprep.mubr.f32.mxu0 %v11857_v52 }
 0xa73   :  { %11998 = vmatmul.mubr.f32.gmra.mrb[172].mxu0 %v11856_v35  ;;  %v11858_v46 = vmax.f32 %v11776_v22, 0.0 }
 0xa74   :  { %v11859_v3 = vmax.f32 %v11778_v29, 0.0 }
 0xa76   :  { %12002 = vmatprep.mubr.f32.mxu0 %v11859_v3 }
 0xa77   :  { %12003 = vmatmul.mubr.f32.gmra.mrb[174].mxu0 %v11858_v46 }
 0xa78   :  { %v11781_v32 = vpop.f32.mrb[160].mxu1 }
 0xa79   :  { %v11782_v28 = vadd.f32 %v11781_v32, %v17287_v4  ;;  %v11783_v40 = vpop.f32.mrb[161].mxu1 }
 0xa7a   :  { %v11784_v30 = vadd.f32 %v11783_v40, %v17291_v0 }
 0xa7b   :  { %v11860_v15 = vmax.f32 %v11782_v28, 0.0 }
 0xa7c   :  { %v11861_v1 = vmax.f32 %v11784_v30, 0.0  ;;  %v11787_v36 = vpop.f32.mrb[162].mxu1 }
 0xa7d   :  { %v11788_v18 = vadd.f32 %v11787_v36, %v17287_v4  ;;  %v11789_v21 = vpop.f32.mrb[163].mxu1 }
 0xa7e   :  { %v11790_v49 = vadd.f32 %v11789_v21, %v17291_v0  ;;  %12007 = vmatprep.mubr.f32.mxu0 %v11861_v1 }
 0xa7f   :  { %12008 = vmatmul.mubr.f32.gmra.mrb[176].mxu0 %v11860_v15  ;;  %v11862_v17 = vmax.f32 %v11788_v18, 0.0 }
 0xa80   :  { %v11863_v60 = vmax.f32 %v11790_v49, 0.0 }
 0xa82   :  { %12012 = vmatprep.mubr.f32.mxu0 %v11863_v60 }
 0xa83   :  { %12013 = vmatmul.mubr.f32.gmra.mrb[178].mxu0 %v11862_v17 }
 0xaad   :  { %v11793_v51 = vpop.f32.mrb[164].mxu1 }
 0xaae   :  { %v11794_v34 = vadd.f32 %v11793_v51, %v17287_v4  ;;  %v11795_v8 = vpop.f32.mrb[165].mxu1 }
 0xaaf   :  { %v11796_v14 = vadd.f32 %v11795_v8, %v17291_v0 }
 0xab0   :  { %v11864_v19 = vmax.f32 %v11794_v34, 0.0 }
 0xab1   :  { %v11865_v31 = vmax.f32 %v11796_v14, 0.0  ;;  %v11799_v23 = vpop.f32.mrb[166].mxu1 }
 0xab2   :  { %v11800_v13 = vadd.f32 %v11799_v23, %v17287_v4  ;;  %v11801_v24 = vpop.f32.mrb[167].mxu1 }
 0xab3   :  { %v11802_v61 = vadd.f32 %v11801_v24, %v17291_v0  ;;  %12017 = vmatprep.mubr.f32.mxu0 %v11865_v31 }
 0xab4   :  { %12018 = vmatmul.mubr.f32.gmra.mrb[180].mxu0 %v11864_v19  ;;  %v11866_v63 = vmax.f32 %v11800_v13, 0.0 }
 0xab5   :  { %v11867_v25 = vmax.f32 %v11802_v61, 0.0 }
 0xab7   :  { %12022 = vmatprep.mubr.f32.mxu0 %v11867_v25 }
 0xab8   :  { %12023 = vmatmul.mubr.f32.gmra.mrb[182].mxu0 %v11866_v63 }
 0xae2   :  { %v11805_v27 = vpop.f32.mrb[168].mxu1 }
 0xae3   :  { %v11806_v26 = vadd.f32 %v11805_v27, %v17287_v4  ;;  %v11807_v37 = vpop.f32.mrb[169].mxu1 }
 0xae4   :  { %v11808_v59 = vadd.f32 %v11807_v37, %v17291_v0 }
 0xae5   :  { %v11868_v58 = vmax.f32 %v11806_v26, 0.0 }
 0xae6   :  { %v11869_v45 = vmax.f32 %v11808_v59, 0.0  ;;  %v11811_v57 = vpop.f32.mrb[170].mxu1  ;;  %v17328_v59 = vld [vmem:[%s17573_s10] ss:$0 sm:$0xff] }
 0xae7   :  { %v11812_v7 = vadd.f32 %v11811_v57, %v17287_v4  ;;  %v11813_v12 = vpop.f32.mrb[171].mxu1 }
 0xae8   :  { %v11814_v38 = vadd.f32 %v11813_v12, %v17291_v0  ;;  %12027 = vmatprep.mubr.f32.mxu0 %v11869_v45 }
 0xae9   :  { %12028 = vmatmul.mubr.f32.gmra.mrb[184].mxu0 %v11868_v58  ;;  %v11870_v48 = vmax.f32 %v11812_v7, 0.0 }
 0xaea   :  { %v11871_v6 = vmax.f32 %v11814_v38, 0.0  ;;  %v11817_v11 = vpop.f32.mrb[172].mxu1 }
 0xaeb   :  { %v11818_v44 = vadd.f32 %v11817_v11, %v17287_v4  ;;  %v11819_v52 = vpop.f32.mrb[173].mxu1 }
 0xaec   :  { %v11820_v2 = vadd.f32 %v11819_v52, %v17291_v0  ;;  %12032 = vmatprep.mubr.f32.mxu0 %v11871_v6 }
 0xaed   :  { %12033 = vmatmul.mubr.f32.gmra.mrb[186].mxu0 %v11870_v48  ;;  %v11872_v33 = vmax.f32 %v11818_v44, 0.0 }
 0xaee   :  { %v11873_v35 = vmax.f32 %v11820_v2, 0.0  ;;  %v11823_v22 = vpop.f32.mrb[174].mxu1 }
 0xaef   :  { %v11824_v29 = vadd.f32 %v11823_v22, %v17287_v4  ;;  %v11825_v3 = vpop.f32.mrb[175].mxu1 }
 0xaf0   :  { %v11826_v46 = vadd.f32 %v11825_v3, %v17291_v0  ;;  %12037 = vmatprep.mubr.f32.mxu0 %v11873_v35 }
 0xaf1   :  { %12038 = vmatmul.mubr.f32.gmra.mrb[188].mxu0 %v11872_v33  ;;  %v11874_v40 = vmax.f32 %v11824_v29, 0.0 }
 0xaf2   :  { %v11875_v32 = vmax.f32 %v11826_v46, 0.0  ;;  %v11829_v28 = vpop.f32.mrb[176].mxu1 }
 0xaf3   :  { %v11830_v30 = vadd.f32 %v11829_v28, %v17287_v4  ;;  %v11831_v1 = vpop.f32.mrb[177].mxu1 }
 0xaf4   :  { %v11832_v36 = vadd.f32 %v11831_v1, %v17291_v0  ;;  %12042 = vmatprep.mubr.f32.mxu0 %v11875_v32 }
 0xaf5   :  { %12043 = vmatmul.mubr.f32.gmra.mrb[190].mxu0 %v11874_v40  ;;  %v11876_v21 = vmax.f32 %v11830_v30, 0.0 }
 0xaf6   :  { %v11877_v15 = vmax.f32 %v11832_v36, 0.0  ;;  %v11835_v18 = vpop.f32.mrb[178].mxu1 }
 0xaf7   :  { %v11836_v49 = vadd.f32 %v11835_v18, %v17287_v4  ;;  %v11837_v60 = vpop.f32.mrb[179].mxu1 }
 0xaf8   :  { %v11838_v17 = vadd.f32 %v11837_v60, %v17291_v0  ;;  %12047 = vmatprep.mubr.f32.mxu1 %v11877_v15 }
 0xaf9   :  { %12048 = vmatmul.mubr.f32.vlgmr.msra.gmra.mrb[184].mxu1 %v11876_v21  ;;  %v11878_v8 = vmax.f32 %v11836_v49, 0.0 }
 0xafa   :  { %v11879_v51 = vmax.f32 %v11838_v17, 0.0  ;;  %v11841_v34 = vpop.f32.mrb[180].mxu1 }
 0xafb   :  { %v11842_v14 = vadd.f32 %v11841_v34, %v17287_v4  ;;  %v11843_v31 = vpop.f32.mrb[181].mxu1 }
 0xafc   :  { %v11844_v23 = vadd.f32 %v11843_v31, %v17291_v0  ;;  %12052 = vmatprep.mubr.f32.mxu1 %v11879_v51 }
 0xafd   :  { %12053 = vmatmul.mubr.f32.gmra.mrb[186].mxu1 %v11878_v8  ;;  %v11880_v24 = vmax.f32 %v11842_v14, 0.0 }
 0xafe   :  { %v11881_v19 = vmax.f32 %v11844_v23, 0.0  ;;  %v11847_v13 = vpop.f32.mrb[182].mxu1 }
 0xaff   :  { %v11848_v61 = vadd.f32 %v11847_v13, %v17287_v4  ;;  %v11849_v25 = vpop.f32.mrb[183].mxu1 }
 0xb00   :  { %v11850_v63 = vadd.f32 %v11849_v25, %v17291_v0  ;;  %12057 = vmatprep.mubr.f32.mxu1 %v11881_v19 }
 0xb01   :  { %12058 = vmatmul.mubr.f32.gmra.mrb[188].mxu1 %v11880_v24  ;;  %v11882_v26 = vmax.f32 %v11848_v61, 0.0 }
 0xb02   :  { %v11883_v27 = vmax.f32 %v11850_v63, 0.0 }
 0xb04   :  { %12062 = vmatprep.mubr.f32.mxu1 %v11883_v27 }
 0xb05   :  { %12063 = vmatmul.mubr.f32.gmra.mrb[190].mxu1 %v11882_v26 }
 0xb3e   :  { %v12891_v37 = vpop.f32.mrb[168].mxu0 }
 0xb3f   :  { %v12892_v45 = vpop.f32.mrb[169].mxu0 }
 0xb40   :  { %v12893_v57 = vadd.f32 %v12892_v45, %v12891_v37 }
 0xb42   :  { %v11990_v58 = vadd.f32 %v12893_v57, %v17328_v59  ;;  %v12894_v4 = vpop.f32.mrb[170].mxu0 }
 0xb43   :  { %v12895_v7 = vpop.f32.mrb[171].mxu0 }
 0xb44   :  { %v12896_v12 = vadd.f32 %v12895_v7, %v12894_v4  ;;  %v17332_v0 = vadd.f32 %v11990_v58, %v17175_v39 }
 0xb46   :  { %v11995_v38 = vadd.f32 %v12896_v12, %v17328_v59  ;;  %v12897_v6 = vpop.f32.mrb[172].mxu0  ;;  %12084 = vadd.xlane.f32.xlu1 %v17332_v0 }
 0xb47   :  { %v12898_v11 = vpop.f32.mrb[173].mxu0 }
 0xb48   :  { %v12899_v48 = vadd.f32 %v12898_v11, %v12897_v6  ;;  %v17337_v44 = vadd.f32 %v11995_v38, %v17182_v9 }
 0xb4a   :  { %v12000_v52 = vadd.f32 %v12899_v48, %v17328_v59  ;;  %v12900_v2 = vpop.f32.mrb[174].mxu0  ;;  %12086 = vadd.xlane.f32.xlu0 %v17337_v44 }
 0xb4b   :  { %v12901_v35 = vpop.f32.mrb[175].mxu0 }
 0xb4c   :  { %v12902_v22 = vadd.f32 %v12901_v35, %v12900_v2  ;;  %v17342_v39 = vadd.f32 %v12000_v52, %v17189_v54 }
 0xb4e   :  { %v12005_v33 = vadd.f32 %v12902_v22, %v17328_v59  ;;  %12088 = vadd.xlane.f32.xlu1 %v17342_v39 }
 0xb50   :  { %v17347_v29 = vadd.f32 %v12005_v33, %v17195_v53 }
 0xb52   :  { %12090 = vadd.xlane.f32.xlu0 %v17347_v29  ;;  %v12903_v9 = vpop.f32.mrb[176].mxu0 }
 0xb53   :  { %v12904_v3 = vpop.f32.mrb[177].mxu0 }
 0xb54   :  { %v12905_v46 = vadd.f32 %v12904_v3, %v12903_v9 }
 0xb56   :  { %v12010_v32 = vadd.f32 %v12905_v46, %v17328_v59  ;;  %v12906_v28 = vpop.f32.mrb[178].mxu0 }
 0xb57   :  { %v12907_v40 = vpop.f32.mrb[179].mxu0 }
 0xb58   :  { %v12908_v30 = vadd.f32 %v12907_v40, %v12906_v28  ;;  %v17352_v54 = vadd.f32 %v12010_v32, %v17203_v43 }
 0xb5a   :  { %v12015_v1 = vadd.f32 %v12908_v30, %v17328_v59  ;;  %12092 = vadd.xlane.f32.xlu1 %v17352_v54 }
 0xb5c   :  { %v17357_v53 = vadd.f32 %v12015_v1, %v17209_v55 }
 0xb5e   :  { %12094 = vadd.xlane.f32.xlu0 %v17357_v53 }
 0xb87   :  { %v12909_v36 = vpop.f32.mrb[180].mxu0 }
 0xb88   :  { %v12910_v15 = vpop.f32.mrb[181].mxu0 }
 0xb89   :  { %v12911_v18 = vadd.f32 %v12910_v15, %v12909_v36 }
 0xb8b   :  { %v12020_v21 = vadd.f32 %v12911_v18, %v17328_v59  ;;  %v12912_v49 = vpop.f32.mrb[182].mxu0 }
 0xb8c   :  { %v12913_v60 = vpop.f32.mrb[183].mxu0 }
 0xb8d   :  { %v12914_v17 = vadd.f32 %v12913_v60, %v12912_v49  ;;  %v17362_v43 = vadd.f32 %v12020_v21, %v17217_v47 }
 0xb8f   :  { %v12025_v51 = vadd.f32 %v12914_v17, %v17328_v59  ;;  %12096 = vadd.xlane.f32.xlu1 %v17362_v43 }
 0xb91   :  { %v17367_v55 = vadd.f32 %v12025_v51, %v17223_v42 }
 0xb93   :  { %12098 = vadd.xlane.f32.xlu0 %v17367_v55 }
 0xbbc   :  { %v12915_v34 = vpop.f32.mrb[184].mxu0 }
 0xbbd   :  { %v12916_v8 = vpop.f32.mrb[185].mxu0 }
 0xbbe   :  { %v12917_v14 = vadd.f32 %v12916_v8, %v12915_v34 }
 0xbc0   :  { %v12030_v31 = vadd.f32 %v12917_v14, %v17328_v59  ;;  %v12918_v23 = vpop.f32.mrb[186].mxu0 }
 0xbc1   :  { %v12919_v19 = vpop.f32.mrb[187].mxu0 }
 0xbc2   :  { %v12920_v13 = vadd.f32 %v12919_v19, %v12918_v23  ;;  %v17372_v47 = vadd.f32 %v12030_v31, %v17231_v50 }
 0xbc4   :  { %v12035_v24 = vadd.f32 %v12920_v13, %v17328_v59  ;;  %v12921_v61 = vpop.f32.mrb[188].mxu0  ;;  %12100 = vadd.xlane.f32.xlu1 %v17372_v47 }
 0xbc5   :  { %v12922_v42 = vpop.f32.mrb[189].mxu0 }
 0xbc6   :  { %v12923_v25 = vadd.f32 %v12922_v42, %v12921_v61  ;;  %v17377_v63 = vadd.f32 %v12035_v24, %v17238_v56 }
 0xbc8   :  { %v12040_v27 = vadd.f32 %v12923_v25, %v17328_v59  ;;  %v12924_v26 = vpop.f32.mrb[190].mxu0  ;;  %12102 = vadd.xlane.f32.xlu0 %v17377_v63 }
 0xbc9   :  { %v12925_v37 = vpop.f32.mrb[191].mxu0 }
 0xbca   :  { %v12926_v45 = vadd.f32 %v12925_v37, %v12924_v26  ;;  %v17382_v50 = vadd.f32 %v12040_v27, %v17245_v62 }
 0xbcc   :  { %v12045_v57 = vadd.f32 %v12926_v45, %v17328_v59  ;;  %v12927_v58 = vpop.f32.mrb[184].mxu1  ;;  %12104 = vadd.xlane.f32.xlu1 %v17382_v50 }
 0xbcd   :  { %v12928_v4 = vpop.f32.mrb[185].mxu1 }
 0xbce   :  { %v12929_v7 = vadd.f32 %v12928_v4, %v12927_v58  ;;  %v17387_v56 = vadd.f32 %v12045_v57, %v17252_v10 }
 0xbd0   :  { %v12050_v12 = vadd.f32 %v12929_v7, %v17328_v59  ;;  %v12930_v38 = vpop.f32.mrb[186].mxu1  ;;  %12106 = vadd.xlane.f32.xlu0 %v17387_v56 }
 0xbd1   :  { %v12931_v6 = vpop.f32.mrb[187].mxu1 }
 0xbd2   :  { %v12932_v11 = vadd.f32 %v12931_v6, %v12930_v38  ;;  %v17392_v62 = vadd.f32 %v12050_v12, %v17259_v5 }
 0xbd3   :  { %v12085_v48 = vpop.xlane.xlu1 %12084 }
 0xbd4   :  { %v12055_v52 = vadd.f32 %v12932_v11, %v17328_v59  ;;  %v12933_v2 = vpop.f32.mrb[188].mxu1  ;;  %12108 = vadd.xlane.f32.xlu1 %v17392_v62  ;;  %v12116_v22 = vmul.f32 0.0078125, %v12085_v48 }
 0xbd5   :  { %v12934_v35 = vpop.f32.mrb[189].mxu1 }
 0xbd6   :  { %v12935_v10 = vadd.f32 %v12934_v35, %v12933_v2  ;;  %v17397_v33 = vadd.f32 %v12055_v52, %v17266_v20  ;;  %v17402_v32 = vsub.f32 %v17332_v0, %v12116_v22 }
 0xbd7   :  { %v12087_v9 = vpop.xlane.xlu0 %12086 }
 0xbd8   :  { %v12060_v3 = vadd.f32 %v12935_v10, %v17328_v59  ;;  %v12936_v46 = vpop.f32.mrb[190].mxu1  ;;  %12110 = vadd.xlane.f32.xlu0 %v17397_v33  ;;  %v12117_v28 = vmul.f32 0.0078125, %v12087_v9  ;;  %v12148_v21 = vmul.f32 %v17402_v32, %v17402_v32 }
 0xbd9   :  { %v12937_v5 = vpop.f32.mrb[191].mxu1 }
 0xbda   :  { %v12938_v40 = vadd.f32 %v12937_v5, %v12936_v46  ;;  %v17405_v30 = vadd.f32 %v12060_v3, %v17273_v41  ;;  %v17410_v15 = vsub.f32 %v17337_v44, %v12117_v28 }
 0xbdb   :  { %v12089_v1 = vpop.xlane.xlu1 %12088 }
 0xbdc   :  { %v12065_v36 = vadd.f32 %v12938_v40, %v17328_v59  ;;  %v12118_v20 = vmul.f32 0.0078125, %v12089_v1  ;;  %12112 = vadd.xlane.f32.xlu1 %v17405_v30  ;;  %v12149_v44 = vmul.f32 %v17410_v15, %v17410_v15 }
 0xbde   :  { %v17413_v18 = vsub.f32 %v17342_v39, %v12118_v20  ;;  %v17416_v0 = vadd.f32 %v12065_v36, %v17279_v16 }
 0xbdf   :  { %v12091_v41 = vpop.xlane.xlu0 %12090 }
 0xbe0   :  { %v12119_v49 = vmul.f32 0.0078125, %v12091_v41  ;;  %12114 = vadd.xlane.f32.xlu0 %v17416_v0  ;;  %12164 = vadd.xlane.f32.xlu1 %v12148_v21  ;;  %v12150_v39 = vmul.f32 %v17413_v18, %v17413_v18 }
 0xbe2   :  { %v17422_v59 = vsub.f32 %v17347_v29, %v12119_v49 }
 0xbe4   :  { %12166 = vadd.xlane.f32.xlu0 %v12149_v44  ;;  %12168 = vadd.xlane.f32.xlu1 %v12150_v39  ;;  %v12151_v16 = vmul.f32 %v17422_v59, %v17422_v59 }
 0xbe7   :  { %v12093_v60 = vpop.xlane.xlu1 %12092 }
 0xbe8   :  { %v12120_v17 = vmul.f32 0.0078125, %v12093_v60  ;;  %12170 = vadd.xlane.f32.xlu0 %v12151_v16 }
 0xbea   :  { %v17431_v51 = vsub.f32 %v17352_v54, %v12120_v17 }
 0xbeb   :  { %v12095_v34 = vpop.xlane.xlu0 %12094 }
 0xbec   :  { %v12121_v29 = vmul.f32 0.0078125, %v12095_v34  ;;  %v12152_v8 = vmul.f32 %v17431_v51, %v17431_v51  ;;  %v17493_v34 = vld [vmem:[%s17574_s11] ss:$0 sm:$0xff]  ;;  %s14496_s11 = smov [#allocation11]  }
 0xbee   :  { %v17436_v14 = vsub.f32 %v17357_v53, %v12121_v29  ;;  %12172 = vadd.xlane.f32.xlu1 %v12152_v8 }
 0xbf0   :  { %v12153_v31 = vmul.f32 %v17436_v14, %v17436_v14 }
 0xbf2   :  { %12174 = vadd.xlane.f32.xlu0 %v12153_v31  ;;  %v17499_v31 = vld [vmem:[%s17575_s12] ss:$0 sm:$0xff]  ;;  %s12327_s12 = sshll.u32 %s14496_s11, 4  ;;  %s12328_s12 = int_to_ptr.vmem [resolvable:$true] %s12327_s12 }
 0xbf3   :  { %s14450_s14 = scalar_lea.vmem %s12328_s12, 2048  ;;  %p14455_p13 = scmp.lt.s32.totalorder %s12328_s12, %s12328_s12 }
 0xbf4   :  { %p14451_p12 = scmp.ne.s32.totalorder %s12328_s12, %s14450_s14  ;;  %p14456_p0 = scmp.lt.s32.totalorder %s14450_s14, %s14450_s14 }
 0xbf6   :  { %p14457_p1 = por %p14456_p0, %p14455_p13 }
 0xbf8   :  { %p14458_p2 = pnand %p14457_p1, %p14451_p12 }
 0xc1c   :  { %v12097_v23 = vpop.xlane.xlu1 %12096 }
 0xc1d   :  { %v12122_v19 = vmul.f32 0.0078125, %v12097_v23 }
 0xc1f   :  { %v17441_v13 = vsub.f32 %v17362_v43, %v12122_v19 }
 0xc20   :  { %v12099_v54 = vpop.xlane.xlu0 %12098 }
 0xc21   :  { %v12123_v24 = vmul.f32 0.0078125, %v12099_v54  ;;  %v12154_v61 = vmul.f32 %v17441_v13, %v17441_v13 }
 0xc23   :  { %v17446_v42 = vsub.f32 %v17367_v55, %v12123_v24  ;;  %12176 = vadd.xlane.f32.xlu1 %v12154_v61 }
 0xc25   :  { %v12155_v53 = vmul.f32 %v17446_v42, %v17446_v42 }
 0xc27   :  { %12178 = vadd.xlane.f32.xlu0 %v12155_v53 }
 0xc51   :  { %v12101_v25 = vpop.xlane.xlu1 %12100 }
 0xc52   :  { %v12124_v27 = vmul.f32 0.0078125, %v12101_v25 }
 0xc54   :  { %v17451_v26 = vsub.f32 %v17372_v47, %v12124_v27 }
 0xc55   :  { %v12103_v43 = vpop.xlane.xlu0 %12102 }
 0xc56   :  { %v12125_v37 = vmul.f32 0.0078125, %v12103_v43  ;;  %v12156_v45 = vmul.f32 %v17451_v26, %v17451_v26 }
 0xc58   :  { %v17456_v57 = vsub.f32 %v17377_v63, %v12125_v37  ;;  %12180 = vadd.xlane.f32.xlu1 %v12156_v45 }
 0xc59   :  { %v12105_v55 = vpop.xlane.xlu1 %12104 }
 0xc5a   :  { %v12126_v58 = vmul.f32 0.0078125, %v12105_v55  ;;  %v12157_v4 = vmul.f32 %v17456_v57, %v17456_v57 }
 0xc5c   :  { %v17461_v7 = vsub.f32 %v17382_v50, %v12126_v58  ;;  %12182 = vadd.xlane.f32.xlu0 %v12157_v4 }
 0xc5d   :  { %v12107_v47 = vpop.xlane.xlu0 %12106 }
 0xc5e   :  { %v12127_v12 = vmul.f32 0.0078125, %v12107_v47  ;;  %v12158_v38 = vmul.f32 %v17461_v7, %v17461_v7 }
 0xc60   :  { %v17466_v6 = vsub.f32 %v17387_v56, %v12127_v12  ;;  %12184 = vadd.xlane.f32.xlu1 %v12158_v38 }
 0xc61   :  { %v12109_v63 = vpop.xlane.xlu1 %12108 }
 0xc62   :  { %v12128_v11 = vmul.f32 0.0078125, %v12109_v63  ;;  %v12159_v48 = vmul.f32 %v17466_v6, %v17466_v6 }
 0xc64   :  { %v17471_v52 = vsub.f32 %v17392_v62, %v12128_v11  ;;  %12186 = vadd.xlane.f32.xlu0 %v12159_v48 }
 0xc65   :  { %v12111_v50 = vpop.xlane.xlu0 %12110 }
 0xc66   :  { %v12129_v2 = vmul.f32 0.0078125, %v12111_v50  ;;  %v12160_v35 = vmul.f32 %v17471_v52, %v17471_v52 }
 0xc68   :  { %v17476_v22 = vsub.f32 %v17397_v33, %v12129_v2  ;;  %12188 = vadd.xlane.f32.xlu1 %v12160_v35 }
 0xc69   :  { %v12113_v56 = vpop.xlane.xlu1 %12112 }
 0xc6a   :  { %v12130_v10 = vmul.f32 0.0078125, %v12113_v56  ;;  %v12161_v9 = vmul.f32 %v17476_v22, %v17476_v22 }
 0xc6c   :  { %v17481_v3 = vsub.f32 %v17405_v30, %v12130_v10  ;;  %12190 = vadd.xlane.f32.xlu0 %v12161_v9 }
 0xc6d   :  { %v12115_v62 = vpop.xlane.xlu0 %12114  ;;  %v12165_v46 = vpop.xlane.xlu1 %12164 }
 0xc6e   :  { %v12131_v5 = vmul.f32 0.0078125, %v12115_v62  ;;  %v12196_v28 = vmul.f32 0.0078125, %v12165_v46  ;;  %v12162_v40 = vmul.f32 %v17481_v3, %v17481_v3 }
 0xc70   :  { %v17486_v33 = vsub.f32 %v17416_v0, %v12131_v5  ;;  %v12212_v1 = vadd.f32 1e-06, %v12196_v28  ;;  %12192 = vadd.xlane.f32.xlu1 %v12162_v40 }
 0xc71   :  { %v12167_v36 = vpop.xlane.xlu0 %12166  ;;  %v12169_v20 = vpop.xlane.xlu1 %12168 }
 0xc72   :  { %14292 = vrsqrt.f32 %v12212_v1  ;;  %v12197_v21 = vmul.f32 0.0078125, %v12167_v36  ;;  %v12198_v41 = vmul.f32 0.0078125, %v12169_v20  ;;  %v12163_v30 = vmul.f32 %v17486_v33, %v17486_v33 }
 0xc74   :  { %v12213_v49 = vadd.f32 1e-06, %v12197_v21  ;;  %v12214_v44 = vadd.f32 1e-06, %v12198_v41  ;;  %12194 = vadd.xlane.f32.xlu0 %v12163_v30 }
 0xc75   :  { %v12171_v39 = vpop.xlane.xlu0 %12170 }
 0xc76   :  { %14294 = vrsqrt.f32 %v12213_v49  ;;  %v12199_v16 = vmul.f32 0.0078125, %v12171_v39 }
 0xc77   :  { %14296 = vrsqrt.f32 %v12214_v44 }
 0xc78   :  { %v12215_v60 = vadd.f32 1e-06, %v12199_v16 }
 0xc7a   :  { %14298 = vrsqrt.f32 %v12215_v60 }
 0xc7b   :  { %v12173_v0 = vpop.xlane.xlu1 %12172 }
 0xc7c   :  { %v14293_v17 = vpop.eup %14292  ;;  %v12200_v29 = vmul.f32 0.0078125, %v12173_v0 }
 0xc7d   :  { %v12244_v8 = vmul.f32 %v14293_v17, %v17402_v32 }
 0xc7e   :  { %v12216_v23 = vadd.f32 1e-06, %v12200_v29 }
 0xc7f   :  { %v12267_v19 = vmul.f32 %v17493_v34, %v12244_v8  ;;  %v12175_v54 = vpop.xlane.xlu0 %12174 }
 0xc80   :  { %v14295_v24 = vpop.eup %14294  ;;  %14300 = vrsqrt.f32 %v12216_v23  ;;  %v12201_v61 = vmul.f32 0.0078125, %v12175_v54 }
 0xc81   :  { %v14297_v53 = vpop.eup %14296  ;;  %v12290_v25 = vadd.f32 %v17499_v31, %v12267_v19  ;;  %v12245_v27 = vmul.f32 %v14295_v24, %v17410_v15 }
 0xc82   :  { %v12246_v43 = vmul.f32 %v14297_v53, %v17413_v18  ;;  %v12217_v32 = vadd.f32 1e-06, %v12201_v61 }
 0xc83   :  { %12306 = vst [vmem:[#allocation11] sm:$0xff] %v12290_v25  ;;  %v12268_v37 = vmul.f32 %v17493_v34, %v12245_v27 }
 0xc84   :  { %v14299_v45 = vpop.eup %14298  ;;  %v12269_v55 = vmul.f32 %v17493_v34, %v12246_v43  ;;  %14302 = vrsqrt.f32 %v12217_v32 }
 0xc85   :  { %v12291_v58 = vadd.f32 %v17499_v31, %v12268_v37  ;;  %v12247_v4 = vmul.f32 %v14299_v45, %v17422_v59 }
 0xc86   :  { %v12292_v47 = vadd.f32 %v17499_v31, %v12269_v55 }
 0xc87   :  { %12307 = vst [vmem:[#allocation11 + $0x8] sm:$0xff] %v12291_v58  ;;  %v12270_v12 = vmul.f32 %v17493_v34, %v12247_v4 }
 0xc88   :  { %12308 = vst [vmem:[#allocation11 + $0x10] sm:$0xff] %v12292_v47 }
 0xc89   :  { %v12293_v15 = vadd.f32 %v17499_v31, %v12270_v12 }
 0xc8a   :  { %v14301_v18 = vpop.eup %14300 }
 0xc8b   :  { %12309 = vst [vmem:[#allocation11 + $0x18] sm:$0xff] %v12293_v15  ;;  %v12248_v38 = vmul.f32 %v14301_v18, %v17431_v51 }
 0xc8d   :  { %v12271_v63 = vmul.f32 %v17493_v34, %v12248_v38 }
 0xc8e   :  { %v14303_v11 = vpop.eup %14302 }
 0xc8f   :  { %v12294_v48 = vadd.f32 %v17499_v31, %v12271_v63  ;;  %v12249_v50 = vmul.f32 %v14303_v11, %v17436_v14 }
 0xc91   :  { %12310 = vst [vmem:[#allocation11 + $0x20] sm:$0xff] %v12294_v48  ;;  %v12272_v59 = vmul.f32 %v17493_v34, %v12249_v50 }
 0xc93   :  { %v12295_v2 = vadd.f32 %v17499_v31, %v12272_v59 }
 0xc95   :  { %12311 = vst [vmem:[#allocation11 + $0x28] sm:$0xff] %v12295_v2 }
 0xcb0   :  { %v12177_v35 = vpop.xlane.xlu1 %12176 }
 0xcb1   :  { %v12202_v56 = vmul.f32 0.0078125, %v12177_v35 }
 0xcb3   :  { %v12218_v10 = vadd.f32 1e-06, %v12202_v56 }
 0xcb4   :  { %v12179_v9 = vpop.xlane.xlu0 %12178 }
 0xcb5   :  { %14304 = vrsqrt.f32 %v12218_v10  ;;  %v12203_v62 = vmul.f32 0.0078125, %v12179_v9 }
 0xcb7   :  { %v12219_v51 = vadd.f32 1e-06, %v12203_v62 }
 0xcb9   :  { %14306 = vrsqrt.f32 %v12219_v51 }
 0xcbf   :  { %v14305_v46 = vpop.eup %14304 }
 0xcc0   :  { %v12250_v5 = vmul.f32 %v14305_v46, %v17441_v13 }
 0xcc2   :  { %v12273_v28 = vmul.f32 %v17493_v34, %v12250_v5 }
 0xcc3   :  { %v14307_v14 = vpop.eup %14306 }
 0xcc4   :  { %v12296_v40 = vadd.f32 %v17499_v31, %v12273_v28  ;;  %v12251_v1 = vmul.f32 %v14307_v14, %v17446_v42 }
 0xcc6   :  { %12312 = vst [vmem:[#allocation11 + $0x30] sm:$0xff] %v12296_v40  ;;  %v12274_v36 = vmul.f32 %v17493_v34, %v12251_v1 }
 0xcc8   :  { %v12297_v20 = vadd.f32 %v17499_v31, %v12274_v36 }
 0xcca   :  { %12313 = vst [vmem:[#allocation11 + $0x38] sm:$0xff] %v12297_v20 }
 0xce5   :  { %v12181_v21 = vpop.xlane.xlu1 %12180 }
 0xce6   :  { %v12204_v41 = vmul.f32 0.0078125, %v12181_v21 }
 0xce8   :  { %v12220_v30 = vadd.f32 1e-06, %v12204_v41 }
 0xce9   :  { %v12183_v49 = vpop.xlane.xlu0 %12182 }
 0xcea   :  { %14308 = vrsqrt.f32 %v12220_v30  ;;  %v12205_v44 = vmul.f32 0.0078125, %v12183_v49 }
 0xcec   :  { %v12221_v13 = vadd.f32 1e-06, %v12205_v44 }
 0xced   :  { %v12185_v39 = vpop.xlane.xlu1 %12184 }
 0xcee   :  { %14310 = vrsqrt.f32 %v12221_v13  ;;  %v12206_v16 = vmul.f32 0.0078125, %v12185_v39 }
 0xcf0   :  { %v12222_v60 = vadd.f32 1e-06, %v12206_v16 }
 0xcf1   :  { %v12187_v0 = vpop.xlane.xlu0 %12186 }
 0xcf2   :  { %14312 = vrsqrt.f32 %v12222_v60  ;;  %v12207_v42 = vmul.f32 0.0078125, %v12187_v0 }
 0xcf4   :  { %v14309_v17 = vpop.eup %14308  ;;  %v12223_v29 = vadd.f32 1e-06, %v12207_v42 }
 0xcf5   :  { %v12252_v8 = vmul.f32 %v14309_v17, %v17451_v26  ;;  %v12189_v23 = vpop.xlane.xlu1 %12188 }
 0xcf6   :  { %14314 = vrsqrt.f32 %v12223_v29  ;;  %v12208_v19 = vmul.f32 0.0078125, %v12189_v23 }
 0xcf7   :  { %v12275_v54 = vmul.f32 %v17493_v34, %v12252_v8 }
 0xcf8   :  { %v14311_v24 = vpop.eup %14310  ;;  %v12224_v61 = vadd.f32 1e-06, %v12208_v19 }
 0xcf9   :  { %v12298_v53 = vadd.f32 %v17499_v31, %v12275_v54  ;;  %v12253_v25 = vmul.f32 %v14311_v24, %v17456_v57  ;;  %v12191_v27 = vpop.xlane.xlu0 %12190 }
 0xcfa   :  { %14316 = vrsqrt.f32 %v12224_v61  ;;  %v12209_v43 = vmul.f32 0.0078125, %v12191_v27 }
 0xcfb   :  { %12314 = vst [vmem:[#allocation11 + $0x40] sm:$0xff] %v12298_v53  ;;  %v12276_v32 = vmul.f32 %v17493_v34, %v12253_v25 }
 0xcfc   :  { %v14313_v37 = vpop.eup %14312  ;;  %v12225_v45 = vadd.f32 1e-06, %v12209_v43 }
 0xcfd   :  { %v12299_v26 = vadd.f32 %v17499_v31, %v12276_v32  ;;  %v12254_v55 = vmul.f32 %v14313_v37, %v17461_v7  ;;  %v12193_v58 = vpop.xlane.xlu1 %12192 }
 0xcfe   :  { %14318 = vrsqrt.f32 %v12225_v45  ;;  %v12210_v4 = vmul.f32 0.0078125, %v12193_v58 }
 0xcff   :  { %12315 = vst [vmem:[#allocation11 + $0x48] sm:$0xff] %v12299_v26  ;;  %v12277_v47 = vmul.f32 %v17493_v34, %v12254_v55 }
 0xd00   :  { %v14315_v12 = vpop.eup %14314  ;;  %v12226_v57 = vadd.f32 1e-06, %v12210_v4 }
 0xd01   :  { %v12300_v15 = vadd.f32 %v17499_v31, %v12277_v47  ;;  %v12255_v18 = vmul.f32 %v14315_v12, %v17466_v6  ;;  %v12195_v38 = vpop.xlane.xlu0 %12194 }
 0xd02   :  { %14320 = vrsqrt.f32 %v12226_v57  ;;  %v12211_v63 = vmul.f32 0.0078125, %v12195_v38 }
 0xd03   :  { %12316 = vst [vmem:[#allocation11 + $0x50] sm:$0xff] %v12300_v15  ;;  %v12278_v11 = vmul.f32 %v17493_v34, %v12255_v18 }
 0xd04   :  { %v14317_v48 = vpop.eup %14316  ;;  %v12227_v7 = vadd.f32 1e-06, %v12211_v63 }
 0xd05   :  { %v12301_v50 = vadd.f32 %v17499_v31, %v12278_v11  ;;  %v12256_v59 = vmul.f32 %v14317_v48, %v17471_v52 }
 0xd06   :  { %14322 = vrsqrt.f32 %v12227_v7 }
 0xd07   :  { %12317 = vst [vmem:[#allocation11 + $0x58] sm:$0xff] %v12301_v50  ;;  %v12279_v2 = vmul.f32 %v17493_v34, %v12256_v59 }
 0xd08   :  { %v14319_v35 = vpop.eup %14318 }
 0xd09   :  { %v12302_v56 = vadd.f32 %v17499_v31, %v12279_v2  ;;  %v12257_v6 = vmul.f32 %v14319_v35, %v17476_v22 }
 0xd0b   :  { %12318 = vst [vmem:[#allocation11 + $0x60] sm:$0xff] %v12302_v56  ;;  %v12280_v10 = vmul.f32 %v17493_v34, %v12257_v6 }
 0xd0c   :  { %v14321_v9 = vpop.eup %14320 }
 0xd0d   :  { %v12303_v62 = vadd.f32 %v17499_v31, %v12280_v10  ;;  %v12258_v51 = vmul.f32 %v14321_v9, %v17481_v3 }
 0xd0f   :  { %12319 = vst [vmem:[#allocation11 + $0x68] sm:$0xff] %v12303_v62  ;;  %v12281_v52 = vmul.f32 %v17493_v34, %v12258_v51 }
 0xd10   :  { %v14323_v46 = vpop.eup %14322 }
 0xd11   :  { %v12304_v5 = vadd.f32 %v17499_v31, %v12281_v52  ;;  %v12259_v28 = vmul.f32 %v14323_v46, %v17486_v33 }
 0xd13   :  { %12320 = vst [vmem:[#allocation11 + $0x70] sm:$0xff] %v12304_v5  ;;  %v12282_v22 = vmul.f32 %v17493_v34, %v12259_v28 }
 0xd15   :  { %v12305_v14 = vadd.f32 %v17499_v31, %v12282_v22 }
 0xd17   :  { %12321 = vst [vmem:[#allocation11 + $0x78] sm:$0xff] %v12305_v14 }
 0xd18   :  { %14461 = shalt.err (!%p14458_p2)
}
 0xd19   :  { %s14462_s17 = scalar_lea.hbm %s17576_s13, 2048 }
 0xd1a   :  { %p14463_p3 = scmp.ne.s32.totalorder %s17576_s13, %s14462_s17  ;;  %p14466_p4 = scmp.lt.u32.totalorder %s14462_s17, %s17576_s13 }
 0xd1c   :  { %p14468_p5 = pnand %p14466_p4, %p14463_p3 }
 0xd1e   :  { %14471 = shalt.err (!%p14468_p5)
}
 0xd1f   :  { %12333 = dma.vmem_to_hbm [thread:$0]  %s12328_s12, 2048, %s17576_s13, [#allocation4], %s14487_s7, %s14487_s7, %s14488_s23  }
 0xd20   :  { %14478 = dma.done.wait [#allocation4], 2048  }
 0xd21   :  { %14479 = vsyncadd [#allocation4], 4294965248 }
 0xd22   :  { %12337 = vsyncpa [#allocation3], 1 }
 0xd23   :  { %12338 = vsyncpa [#allocation6], 1 }
 0xd24   :  { %12339 = vsyncpa [#allocation9], 1 }
 0xd25   :  { %12340 = vsyncpa [#allocation4], 1 }

</bundles_post_ra>
